<compile_context>
chip_gen: v7x
topology: tpu7x:2x2x1
jax: 0.10.0
libtpu: 0.0.40
codegen_flags: <defaults>
</compile_context>

<pallas_src>
import functools

import jax
import jax.numpy as jnp
import numpy as np
from jax import lax
from jax.experimental import pallas as pl
from jax.experimental.pallas import tpu as pltpu

EPS = 1e-5  # PyTorch BatchNorm2d default


def _round_up(x, m):
    return ((x + m - 1) // m) * m


@functools.lru_cache(maxsize=None)
def _vmem_limit_bytes():
    try:
        kind = jax.devices()[0].device_kind.lower()
    except Exception:  # pragma: no cover - defensive
        kind = ""
    if "v7" in kind:
        return 52 * 1024 * 1024      # 64 MiB physical on v7x -> leave headroom
    if "v5" in kind or "v6" in kind:
        return 96 * 1024 * 1024      # 128 MiB physical -> allow bigger tiles
    return 48 * 1024 * 1024


def _pick_row_tile(ho, wp2, cap_rows=4096):
    best = 1
    for d in range(1, ho + 1):
        if ho % d == 0 and d * wp2 <= cap_rows:
            best = d
    return best


# --------------------------------------------------------------------------- #
# Kernel 1: conv1 (3x3, stride 1/2) [+ 1x1 shortcut conv] + partial BN stats
# --------------------------------------------------------------------------- #

def conv1_kernel(x_ref, w1_ref, *rest, taps, m_rows, store_off, wp2, wo,
                 downsample):
    """One (image, out-channel-chunk) grid step.

    x_ref : (1, P, Lph, Cin) bf16 flat padded input (P phases; P=1 if stride 1)
    w1_ref: (9, Cin, CW) bf16 conv1 weights for this channel chunk
    ws_ref: (Cin, CW) bf16 1x1 shortcut weights            [downsample only]
    raw1  : (1, L2, CW) bf16 conv1 output in conv2's padded flat layout
    stats1: (1, 2, CW) f32 per-image (sum, sum_sq) over valid pixels
    raws / statss: same for the shortcut conv              [downsample only]
    acc_ref: (M, CW) f32 VMEM scratch accumulator
    """
    if downsample:
        ws_ref, raw1_ref, stats1_ref, raws_ref, statss_ref, acc_ref = rest
    else:
        raw1_ref, stats1_ref, acc_ref = rest
        ws_ref = raws_ref = statss_ref = None

    # 9 shifted matmuls accumulated into VMEM scratch (in-place MRB acc on v7x).
    ph0, off0 = taps[0]
    acc_ref[...] = jnp.dot(x_ref[0, ph0, pl.ds(off0, m_rows), :], w1_ref[0],
                           preferred_element_type=jnp.float32)
    for t in range(1, 9):
        ph, off = taps[t]
        acc_ref[...] += jnp.dot(x_ref[0, ph, pl.ds(off, m_rows), :], w1_ref[t],
                                preferred_element_type=jnp.float32)
    acc = acc_ref[...]

    # Only the aligned interior store (no full-block zero fill: conv2 masks the
    # never-written border rows with a select).
    raw1_ref[0, pl.ds(store_off, m_rows), :] = acc.astype(raw1_ref.dtype)

    # Valid-output mask from an in-kernel iota (no mask input DMA).
    q = lax.broadcasted_iota(jnp.int32, (m_rows, 1), 0)
    valid = (q % wp2) < wo
    accm = jnp.where(valid, acc, 0.0)
    stats1_ref[0, 0:1, :] = jnp.sum(accm, axis=0, keepdims=True)
    stats1_ref[0, 1:2, :] = jnp.sum(accm * accm, axis=0, keepdims=True)

    if downsample:
        # Shortcut 1x1 stride-2 conv == phase (1,1) of the space-to-depth input.
        acc_s = jnp.dot(x_ref[0, 3, pl.ds(0, m_rows), :], ws_ref[...],
                        preferred_element_type=jnp.float32)
        raws_ref[0] = acc_s.astype(raws_ref.dtype)
        sm = jnp.where(valid, acc_s, 0.0)
        statss_ref[0, 0:1, :] = jnp.sum(sm, axis=0, keepdims=True)
        statss_ref[0, 1:2, :] = jnp.sum(sm * sm, axis=0, keepdims=True)


def conv1_call(flat, w1bf, wsbf, *, taps, m_rows, store_off, l2, wp2, wo,
               out_c, cw, downsample):
    N, P, Lph, Cin = flat.shape
    nch = out_c // cw
    kernel = functools.partial(conv1_kernel, taps=taps, m_rows=m_rows,
                               store_off=store_off, wp2=wp2, wo=wo,
                               downsample=downsample)

    in_specs = [pl.BlockSpec((1, P, Lph, Cin), lambda n, c: (n, 0, 0, 0)),
                pl.BlockSpec((9, Cin, cw), lambda n, c: (0, 0, c))]
    inputs = [flat, w1bf]
    if downsample:
        in_specs.append(pl.BlockSpec((Cin, cw), lambda n, c: (0, c)))
        inputs.append(wsbf)

    out_shape = [jax.ShapeDtypeStruct((N, l2, out_c), jnp.bfloat16),
                 jax.ShapeDtypeStruct((N, 2, out_c), jnp.float32)]
    out_specs = [pl.BlockSpec((1, l2, cw), lambda n, c: (n, 0, c)),
                 pl.BlockSpec((1, 2, cw), lambda n, c: (n, 0, c))]
    if downsample:
        out_shape += [jax.ShapeDtypeStruct((N, m_rows, out_c), jnp.bfloat16),
                      jax.ShapeDtypeStruct((N, 2, out_c), jnp.float32)]
        out_specs += [pl.BlockSpec((1, m_rows, cw), lambda n, c: (n, 0, c)),
                      pl.BlockSpec((1, 2, cw), lambda n, c: (n, 0, c))]

    return pl.pallas_call(
        kernel,
        out_shape=tuple(out_shape),
        grid=(N, nch),
        in_specs=in_specs,
        out_specs=tuple(out_specs),
        scratch_shapes=[pltpu.VMEM((m_rows, cw), jnp.float32)],
        compiler_params=pltpu.CompilerParams(
            dimension_semantics=("parallel", "parallel"),
            vmem_limit_bytes=_vmem_limit_bytes()),
    )(*inputs)


# --------------------------------------------------------------------------- #
# Kernel 2: fused bn1+relu (on the fly) + grouped 3x3 conv2 + partial bn2 stats
# --------------------------------------------------------------------------- #

def conv2_kernel(raw1_ref, aff1_ref, w2_ref, raw2_ref, stats2_ref, act_bf,
                 acc_ref, *, offs, m_rows, store_off, wp2, wo, ho):
    scale = aff1_ref[0:1, :]
    shift = aff1_ref[1:2, :]
    l2 = raw1_ref.shape[1]
    act = jnp.maximum(raw1_ref[0].astype(jnp.float32) * scale + shift, 0.0)

    # Interior mask from iota: zeros out conv padding, junk columns and the
    # never-written (stale) border rows of raw1.  Must be a select (NaN-safe).
    f = lax.broadcasted_iota(jnp.int32, (l2, 1), 0)
    rel = f - store_off
    interior = (rel >= 0) & (rel < ho * wp2) & ((rel % wp2) < wo)
    act_bf[...] = jnp.where(interior, act, 0.0).astype(jnp.bfloat16)

    acc_ref[...] = jnp.dot(act_bf[pl.ds(offs[0], m_rows), :], w2_ref[0, 0],
                           preferred_element_type=jnp.float32)
    for t in range(1, 9):
        acc_ref[...] += jnp.dot(act_bf[pl.ds(offs[t], m_rows), :], w2_ref[0, t],
                                preferred_element_type=jnp.float32)
    acc = acc_ref[...]
    raw2_ref[0] = acc.astype(raw2_ref.dtype)

    q = lax.broadcasted_iota(jnp.int32, (m_rows, 1), 0)
    valid = (q % wp2) < wo
    accm = jnp.where(valid, acc, 0.0)
    stats2_ref[0, 0:1, :] = jnp.sum(accm, axis=0, keepdims=True)
    stats2_ref[0, 1:2, :] = jnp.sum(accm * accm, axis=0, keepdims=True)


def conv2_call(raw1, aff1, w2bd, *, offs, m_rows, store_off, wp2, wo, ho, cw):
    N, L2, out_c = raw1.shape
    nch = out_c // cw
    kernel = functools.partial(conv2_kernel, offs=offs, m_rows=m_rows,
                               store_off=store_off, wp2=wp2, wo=wo, ho=ho)
    return pl.pallas_call(
        kernel,
        out_shape=(jax.ShapeDtypeStruct((N, m_rows, out_c), jnp.bfloat16),
                   jax.ShapeDtypeStruct((N, 2, out_c), jnp.float32)),
        grid=(N, nch),
        in_specs=[pl.BlockSpec((1, L2, cw), lambda n, c: (n, 0, c)),
                  pl.BlockSpec((2, cw), lambda n, c: (0, c)),
                  pl.BlockSpec((1, 9, cw, cw), lambda n, c: (c, 0, 0, 0))],
        out_specs=(pl.BlockSpec((1, m_rows, cw), lambda n, c: (n, 0, c)),
                   pl.BlockSpec((1, 2, cw), lambda n, c: (n, 0, c))),
        scratch_shapes=[pltpu.VMEM((L2, cw), jnp.bfloat16),
                        pltpu.VMEM((m_rows, cw), jnp.float32)],
        compiler_params=pltpu.CompilerParams(
            dimension_semantics=("parallel", "parallel"),
            vmem_limit_bytes=_vmem_limit_bytes()),
    )(raw1, aff1, w2bd)


# --------------------------------------------------------------------------- #
# Kernel 3: bn2 + (bn_shortcut) residual add + final relu (elementwise)
# --------------------------------------------------------------------------- #

def finalize_kernel(raw2_ref, res_ref, aff2_ref, *rest, wo, downsample):
    if downsample:
        affs_ref, o_ref = rest
    else:
        (o_ref,) = rest
    y = raw2_ref[0].astype(jnp.float32)[:, :wo, :]
    y = jnp.maximum(y * aff2_ref[0] + aff2_ref[1], 0.0)
    if downsample:
        r = res_ref[0].astype(jnp.float32)[:, :wo, :]
        r = r * affs_ref[0] + affs_ref[1]
    else:
        r = res_ref[0].astype(jnp.float32)
    o_ref[0] = jnp.maximum(y + r, 0.0)


def finalize_call(raw2_r, res, aff2, affs, *, wo, ho, wp2, out_c, downsample):
    N = raw2_r.shape[0]
    th = _pick_row_tile(ho, wp2)
    wres = res.shape[2]                 # Wp2 (downsample) or Wo (identity)
    kernel = functools.partial(finalize_kernel, wo=wo, downsample=downsample)
    in_specs = [pl.BlockSpec((1, th, wp2, out_c), lambda n, h: (n, h, 0, 0)),
                pl.BlockSpec((1, th, wres, out_c), lambda n, h: (n, h, 0, 0)),
                pl.BlockSpec((2, out_c), lambda n, h: (0, 0))]
    inputs = [raw2_r, res, aff2]
    if downsample:
        in_specs.append(pl.BlockSpec((2, out_c), lambda n, h: (0, 0)))
        inputs.append(affs)
    return pl.pallas_call(
        kernel,
        out_shape=jax.ShapeDtypeStruct((N, ho, wo, out_c), jnp.float32),
        grid=(N, ho // th),
        in_specs=in_specs,
        out_specs=pl.BlockSpec((1, th, wo, out_c), lambda n, h: (n, h, 0, 0)),
        compiler_params=pltpu.CompilerParams(
            dimension_semantics=("parallel", "parallel"),
            vmem_limit_bytes=_vmem_limit_bytes()),
    )(*inputs)


# --------------------------------------------------------------------------- #
# Forward wrapper
# --------------------------------------------------------------------------- #

def resnext_block_forward(x_nchw, params, *, num_group):
    in_c = x_nchw.shape[1]
    out_c = params["w1"].shape[-1]
    downsample = in_c != out_c
    stride = 2 if downsample else 1
    G = num_group
    cg = out_c // G

    # NCHW -> NHWC, cast to bf16 once (MXU operands + identity residual).
    x = jnp.transpose(x_nchw, (0, 2, 3, 1)).astype(jnp.bfloat16)
    N, H, W, _ = x.shape
    Ho, Wo = H // stride, W // stride
    Wp2 = _round_up(Wo + 2, 8)          # 8-aligned row pitch of all flat layouts
    m_rows = Ho * Wp2
    store_off = 2 * Wp2                 # 16-aligned interior offset (bf16 tiles)
    l2 = m_rows + 3 * Wp2 + 8           # padded flat length of conv1's output
    cnt = float(N * Ho * Wo)

    # TODO(synk): for very large feature maps, add a spatial row-block grid axis
    # (halo'd flat tiles) so per-step blocks stay within v7x's 64 MiB VMEM.
    if stride == 1:
        # One merged pad: spatial halo + pitch padding + tail rows, all in bf16.
        xpad = jnp.pad(x, ((0, 0), (1, 2), (1, Wp2 - W - 1), (0, 0)))
        flat = xpad.reshape(N, 1, (H + 3) * Wp2, in_c)
        taps1 = tuple((0, ki * Wp2 + kj) for ki in range(3) for kj in range(3))
    else:
        xpad = jnp.pad(x, ((0, 0), (1, 1), (1, 1), (0, 0)))
        phases = [xpad[:, a::2, b::2, :] for a in (0, 1) for b in (0, 1)]
        ph = jnp.stack(phases, axis=1)                     # (N,4,Ho+1,Wo+1,Cin)
        ph = jnp.pad(ph, ((0, 0), (0, 0), (0, 1), (0, Wp2 - Wo - 1), (0, 0)))
        flat = ph.reshape(N, 4, (Ho + 2) * Wp2, in_c)
        taps1 = tuple(((ki % 2) * 2 + (kj % 2), (ki // 2) * Wp2 + (kj // 2))
                      for ki in range(3) for kj in range(3))

    # conv1 / shortcut weights (bf16 MXU operands).
    # TODO(synk): for Cin < 256, fold the 3 same-row taps along K (K=3*Cin) to
    # raise MXU depth utilization on v6e/v7x.
    cw1 = out_c if out_c <= 256 else (
        256 if out_c % 256 == 0 else (128 if out_c % 128 == 0 else out_c))
    w1bf = params["w1"].reshape(9, in_c, out_c).astype(jnp.bfloat16)
    wsbf = params["ws"].astype(jnp.bfloat16) if downsample else None

    outs = conv1_call(flat, w1bf, wsbf, taps=taps1, m_rows=m_rows,
                      store_off=store_off, l2=l2, wp2=Wp2, wo=Wo,
                      out_c=out_c, cw=cw1, downsample=downsample)
    if downsample:
        raw1, stats1, raws, statss = outs
    else:
        raw1, stats1 = outs

    def affine(stats, gamma, beta):
        s = jnp.sum(stats, axis=0)                         # (2, out_c)
        mean = s[0] / cnt
        var = jnp.maximum(s[1] / cnt - mean * mean, 0.0)
        scale = gamma * lax.rsqrt(var + EPS)
        shift = beta - mean * scale
        return jnp.stack([scale, shift], axis=0)

    aff1 = affine(stats1, params["g1"], params["b1"])

    # Grouped conv2: pack groups into lane-dense (<=128-lane) chunks with a
    # block-diagonal weight so output stores stay unmasked (cap kept at 128).
    target = max(1, 128 // cg)
    gc = 1
    for d in range(1, G + 1):
        if G % d == 0 and d <= target:
            gc = d
    cw2 = gc * cg
    nch2 = G // gc
    w2r = params["w2"].reshape(G, 9, cg, cg).reshape(nch2, gc, 9, cg, cg)
    eye = jnp.eye(gc, dtype=jnp.float32)
    w2bd = jnp.einsum("ngtij,gh->ntgihj", w2r, eye).reshape(
        nch2, 9, cw2, cw2).astype(jnp.bfloat16)
    offs2 = tuple((store_off - Wp2 - 1) + ki * Wp2 + kj
                  for ki in range(3) for kj in range(3))

    raw2, stats2 = conv2_call(raw1, aff1, w2bd, offs=offs2, m_rows=m_rows,
                              store_off=store_off, wp2=Wp2, wo=Wo, ho=Ho,
                              cw=cw2)
    aff2 = affine(stats2, params["g2"], params["b2"])

    # ---- residual branch + finalize ----
    raw2_r = raw2.reshape(N, Ho, Wp2, out_c)               # free reshape
    if downsample:
        affs = affine(statss, params["gs"], params["bs"])
        res = raws.reshape(N, Ho, Wp2, out_c)
    else:
        affs = None
        res = x                                            # fed directly (bf16)
    out_nhwc = finalize_call(raw2_r, res, aff2, affs, wo=Wo, ho=Ho, wp2=Wp2,
                             out_c=out_c, downsample=downsample)
    return jnp.transpose(out_nhwc, (0, 3, 1, 2))           # back to NCHW


# ---------------------- deterministic parameter init ----------------------- #

def init_params(key, in_c, out_c, num_group):
    G = num_group
    cg = out_c // G
    downsample = in_c != out_c
    ks = jax.random.split(key, 9)
    p = {
        "w1": jax.random.normal(ks[0], (3, 3, in_c, out_c), jnp.float32) * (2.0 / (9 * in_c)) ** 0.5,
        "g1": 1.0 + 0.1 * jax.random.normal(ks[1], (out_c,), jnp.float32),
        "b1": 0.1 * jax.random.normal(ks[2], (out_c,), jnp.float32),
        "w2": jax.random.normal(ks[3], (G, 3, 3, cg, cg), jnp.float32) * (2.0 / (9 * cg)) ** 0.5,
        "g2": 1.0 + 0.1 * jax.random.normal(ks[4], (out_c,), jnp.float32),
        "b2": 0.1 * jax.random.normal(ks[5], (out_c,), jnp.float32),
    }
    if downsample:
        p["ws"] = jax.random.normal(ks[6], (in_c, out_c), jnp.float32) * (2.0 / in_c) ** 0.5
        p["gs"] = 1.0 + 0.1 * jax.random.normal(ks[7], (out_c,), jnp.float32)
        p["bs"] = 0.1 * jax.random.normal(ks[8], (out_c,), jnp.float32)
    return p


# ------------------------- pure-JAX reference check ------------------------ #

def reference_forward(x_nchw, params, *, num_group):
    dn = ("NHWC", "HWIO", "NHWC")
    in_c = x_nchw.shape[1]
    out_c = params["w1"].shape[-1]
    downsample = in_c != out_c
    stride = 2 if downsample else 1
    G = num_group
    x = jnp.transpose(x_nchw, (0, 2, 3, 1)).astype(jnp.float32)

    def bn(y, gamma, beta):
        mean = jnp.mean(y, axis=(0, 1, 2), keepdims=True)
        var = jnp.mean((y - mean) ** 2, axis=(0, 1, 2), keepdims=True)
        return (y - mean) * lax.rsqrt(var + EPS) * gamma + beta

    y = lax.conv_general_dilated(x, params["w1"], (stride, stride), ((1, 1), (1, 1)),
                                 dimension_numbers=dn, precision=lax.Precision.HIGHEST)
    y = jax.nn.relu(bn(y, params["g1"], params["b1"]))

    w2 = params["w2"]
    cg_i, cg_o = w2.shape[3], w2.shape[4]
    w2_hwio = jnp.transpose(w2, (1, 2, 3, 0, 4)).reshape(3, 3, cg_i, G * cg_o)
    y = lax.conv_general_dilated(y, w2_hwio, (1, 1), ((1, 1), (1, 1)),
                                 dimension_numbers=dn, feature_group_count=G,
                                 precision=lax.Precision.HIGHEST)
    y = jax.nn.relu(bn(y, params["g2"], params["b2"]))

    if downsample:
        xs = lax.conv_general_dilated(x, params["ws"][None, None], (stride, stride), ((0, 0), (0, 0)),
                                      dimension_numbers=dn, precision=lax.Precision.HIGHEST)
        xs = bn(xs, params["gs"], params["bs"])
    else:
        xs = x
    out = jax.nn.relu(y + xs)
    return jnp.transpose(out, (0, 3, 1, 2))


# ----------------------------------- main ----------------------------------- #

if __name__ == "__main__":
    key = jax.random.PRNGKey(0)
    kx, kp, kx2, kp2 = jax.random.split(key, 4)

    # Case 1: downsample path (in != out, stride 2).
    N, in_c, H, W = 2, 16, 16, 16
    out_c, num_group = 32, 4
    x = jax.random.normal(kx, (N, in_c, H, W), jnp.float32)
    params = init_params(kp, in_c, out_c, num_group)
    fwd = jax.jit(functools.partial(resnext_block_forward, num_group=num_group))
    out = jax.block_until_ready(fwd(x, params))
    ref = reference_forward(x, params, num_group=num_group)
    # bf16 MXU operands AND bf16 inter-kernel intermediates (f32 accumulation /
    # f32 BN stats) -> tolerance loosened vs a pure-f32 pipeline.
    np.testing.assert_allclose(np.asarray(out), np.asarray(ref), atol=5e-2, rtol=5e-2)

    # Case 2: identity shortcut path (in == out, stride 1).
    N2, c2, H2, W2, G2 = 2, 32, 8, 8, 4
    x2 = jax.random.normal(kx2, (N2, c2, H2, W2), jnp.float32)
    params2 = init_params(kp2, c2, c2, G2)
    fwd2 = jax.jit(functools.partial(resnext_block_forward, num_group=G2))
    out2 = jax.block_until_ready(fwd2(x2, params2))
    ref2 = reference_forward(x2, params2, num_group=G2)
    np.testing.assert_allclose(np.asarray(out2), np.asarray(ref2), atol=5e-2, rtol=5e-2)

    print("KERNEL_OK")
</pallas_src>

<mosaic_0001>
module attributes {stable_mosaic.version = 11 : i64} {
  func.func @conv1_kernel(%arg0: i32, %arg1: i32, %arg2: memref<1x4x160x16xbf16, #tpu.memory_space<vmem>>, %arg3: memref<9x16x32xbf16, #tpu.memory_space<vmem>>, %arg4: memref<16x32xbf16, #tpu.memory_space<vmem>>, %arg5: memref<1x184x32xbf16, #tpu.memory_space<vmem>>, %arg6: memref<1x2x32xf32, #tpu.memory_space<vmem>>, %arg7: memref<1x128x32xbf16, #tpu.memory_space<vmem>>, %arg8: memref<1x2x32xf32, #tpu.memory_space<vmem>>, %arg9: memref<128x32xf32, #tpu.memory_space<vmem>>) attributes {dimension_semantics = [#tpu.dimension_semantics<parallel>, #tpu.dimension_semantics<parallel>], iteration_bounds = array<i64: 2, 1>, scalar_prefetch = 0 : i64, scratch_operands = 1 : i64, tpu.core_type = #tpu.core_type<tc>, window_params = [{transform_indices = @transform_0, window_bounds = array<i64: 1, 4, 160, 16>}, {transform_indices = @transform_1, window_bounds = array<i64: 9, 16, 32>}, {transform_indices = @transform_2, window_bounds = array<i64: 16, 32>}, {transform_indices = @transform_3, window_bounds = array<i64: 1, 184, 32>}, {transform_indices = @transform_4, window_bounds = array<i64: 1, 2, 32>}, {transform_indices = @transform_5, window_bounds = array<i64: 1, 128, 32>}, {transform_indices = @transform_6, window_bounds = array<i64: 1, 2, 32>}]} {
    %c0 = arith.constant 0 : index
    %c0_0 = arith.constant 0 : index
    %c0_1 = arith.constant 0 : index
    %c0_2 = arith.constant 0 : index
    %0 = vector.load %arg2[%c0, %c0_0, %c0_1, %c0_2] : memref<1x4x160x16xbf16, #tpu.memory_space<vmem>>, vector<1x1x128x16xbf16>
    %1 = vector.shape_cast %0 : vector<1x1x128x16xbf16> to vector<128x16xbf16>
    %c0_3 = arith.constant 0 : index
    %c0_4 = arith.constant 0 : index
    %c0_5 = arith.constant 0 : index
    %2 = vector.load %arg3[%c0_3, %c0_4, %c0_5] : memref<9x16x32xbf16, #tpu.memory_space<vmem>>, vector<1x16x32xbf16>
    %3 = vector.shape_cast %2 : vector<1x16x32xbf16> to vector<16x32xbf16>
    %cst = arith.constant dense<0.000000e+00> : vector<128x32xf32>
    %4 = tpu.matmul %1, %3, %cst {dimension_numbers = #tpu.dot_dimension_numbers<[1], [0], [0], [1], [0, 0, 1, 1], [], []>} : vector<128x16xbf16>, vector<16x32xbf16>, vector<128x32xf32> -> vector<128x32xf32>
    %c0_6 = arith.constant 0 : index
    %c0_7 = arith.constant 0 : index
    %5 = vector.load %arg9[%c0_6, %c0_7] : memref<128x32xf32, #tpu.memory_space<vmem>>, vector<128x32xf32>
    tpu.vector_store %arg9[%c0_6, %c0_7], %4 {strides = array<i32>} : memref<128x32xf32, #tpu.memory_space<vmem>>, vector<128x32xf32>,
    %c0_8 = arith.constant 0 : index
    %c0_9 = arith.constant 0 : index
    %6 = vector.load %arg9[%c0_8, %c0_9] : memref<128x32xf32, #tpu.memory_space<vmem>>, vector<128x32xf32>
    %c0_10 = arith.constant 0 : index
    %c1 = arith.constant 1 : index
    %c0_11 = arith.constant 0 : index
    %c0_12 = arith.constant 0 : index
    %7 = vector.load %arg2[%c0_10, %c1, %c0_11, %c0_12] : memref<1x4x160x16xbf16, #tpu.memory_space<vmem>>, vector<1x1x128x16xbf16>
    %8 = vector.shape_cast %7 : vector<1x1x128x16xbf16> to vector<128x16xbf16>
    %c1_13 = arith.constant 1 : index
    %c0_14 = arith.constant 0 : index
    %c0_15 = arith.constant 0 : index
    %9 = vector.load %arg3[%c1_13, %c0_14, %c0_15] : memref<9x16x32xbf16, #tpu.memory_space<vmem>>, vector<1x16x32xbf16>
    %10 = vector.shape_cast %9 : vector<1x16x32xbf16> to vector<16x32xbf16>
    %cst_16 = arith.constant dense<0.000000e+00> : vector<128x32xf32>
    %11 = tpu.matmul %8, %10, %cst_16 {dimension_numbers = #tpu.dot_dimension_numbers<[1], [0], [0], [1], [0, 0, 1, 1], [], []>} : vector<128x16xbf16>, vector<16x32xbf16>, vector<128x32xf32> -> vector<128x32xf32>
    %12 = arith.addf %6, %11 : vector<128x32xf32>
    %c0_17 = arith.constant 0 : index
    %c0_18 = arith.constant 0 : index
    %13 = vector.load %arg9[%c0_17, %c0_18] : memref<128x32xf32, #tpu.memory_space<vmem>>, vector<128x32xf32>
    tpu.vector_store %arg9[%c0_17, %c0_18], %12 {strides = array<i32>} : memref<128x32xf32, #tpu.memory_space<vmem>>, vector<128x32xf32>,
    %c0_19 = arith.constant 0 : index
    %c0_20 = arith.constant 0 : index
    %14 = vector.load %arg9[%c0_19, %c0_20] : memref<128x32xf32, #tpu.memory_space<vmem>>, vector<128x32xf32>
    %c0_21 = arith.constant 0 : index
    %c0_22 = arith.constant 0 : index
    %c1_23 = arith.constant 1 : index
    %c0_24 = arith.constant 0 : index
    %15 = vector.load %arg2[%c0_21, %c0_22, %c1_23, %c0_24] : memref<1x4x160x16xbf16, #tpu.memory_space<vmem>>, vector<1x1x128x16xbf16>
    %16 = vector.shape_cast %15 : vector<1x1x128x16xbf16> to vector<128x16xbf16>
    %c2 = arith.constant 2 : index
    %c0_25 = arith.constant 0 : index
    %c0_26 = arith.constant 0 : index
    %17 = vector.load %arg3[%c2, %c0_25, %c0_26] : memref<9x16x32xbf16, #tpu.memory_space<vmem>>, vector<1x16x32xbf16>
    %18 = vector.shape_cast %17 : vector<1x16x32xbf16> to vector<16x32xbf16>
    %cst_27 = arith.constant dense<0.000000e+00> : vector<128x32xf32>
    %19 = tpu.matmul %16, %18, %cst_27 {dimension_numbers = #tpu.dot_dimension_numbers<[1], [0], [0], [1], [0, 0, 1, 1], [], []>} : vector<128x16xbf16>, vector<16x32xbf16>, vector<128x32xf32> -> vector<128x32xf32>
    %20 = arith.addf %14, %19 : vector<128x32xf32>
    %c0_28 = arith.constant 0 : index
    %c0_29 = arith.constant 0 : index
    %21 = vector.load %arg9[%c0_28, %c0_29] : memref<128x32xf32, #tpu.memory_space<vmem>>, vector<128x32xf32>
    tpu.vector_store %arg9[%c0_28, %c0_29], %20 {strides = array<i32>} : memref<128x32xf32, #tpu.memory_space<vmem>>, vector<128x32xf32>,
    %c0_30 = arith.constant 0 : index
    %c0_31 = arith.constant 0 : index
    %22 = vector.load %arg9[%c0_30, %c0_31] : memref<128x32xf32, #tpu.memory_space<vmem>>, vector<128x32xf32>
    %c0_32 = arith.constant 0 : index
    %c2_33 = arith.constant 2 : index
    %c0_34 = arith.constant 0 : index
    %c0_35 = arith.constant 0 : index
    %23 = vector.load %arg2[%c0_32, %c2_33, %c0_34, %c0_35] : memref<1x4x160x16xbf16, #tpu.memory_space<vmem>>, vector<1x1x128x16xbf16>
    %24 = vector.shape_cast %23 : vector<1x1x128x16xbf16> to vector<128x16xbf16>
    %c3 = arith.constant 3 : index
    %c0_36 = arith.constant 0 : index
    %c0_37 = arith.constant 0 : index
    %25 = vector.load %arg3[%c3, %c0_36, %c0_37] : memref<9x16x32xbf16, #tpu.memory_space<vmem>>, vector<1x16x32xbf16>
    %26 = vector.shape_cast %25 : vector<1x16x32xbf16> to vector<16x32xbf16>
    %cst_38 = arith.constant dense<0.000000e+00> : vector<128x32xf32>
    %27 = tpu.matmul %24, %26, %cst_38 {dimension_numbers = #tpu.dot_dimension_numbers<[1], [0], [0], [1], [0, 0, 1, 1], [], []>} : vector<128x16xbf16>, vector<16x32xbf16>, vector<128x32xf32> -> vector<128x32xf32>
    %28 = arith.addf %22, %27 : vector<128x32xf32>
    %c0_39 = arith.constant 0 : index
    %c0_40 = arith.constant 0 : index
    %29 = vector.load %arg9[%c0_39, %c0_40] : memref<128x32xf32, #tpu.memory_space<vmem>>, vector<128x32xf32>
    tpu.vector_store %arg9[%c0_39, %c0_40], %28 {strides = array<i32>} : memref<128x32xf32, #tpu.memory_space<vmem>>, vector<128x32xf32>,
    %c0_41 = arith.constant 0 : index
    %c0_42 = arith.constant 0 : index
    %30 = vector.load %arg9[%c0_41, %c0_42] : memref<128x32xf32, #tpu.memory_space<vmem>>, vector<128x32xf32>
    %c0_43 = arith.constant 0 : index
    %c3_44 = arith.constant 3 : index
    %c0_45 = arith.constant 0 : index
    %c0_46 = arith.constant 0 : index
    %31 = vector.load %arg2[%c0_43, %c3_44, %c0_45, %c0_46] : memref<1x4x160x16xbf16, #tpu.memory_space<vmem>>, vector<1x1x128x16xbf16>
    %32 = vector.shape_cast %31 : vector<1x1x128x16xbf16> to vector<128x16xbf16>
    %c4 = arith.constant 4 : index
    %c0_47 = arith.constant 0 : index
    %c0_48 = arith.constant 0 : index
    %33 = vector.load %arg3[%c4, %c0_47, %c0_48] : memref<9x16x32xbf16, #tpu.memory_space<vmem>>, vector<1x16x32xbf16>
    %34 = vector.shape_cast %33 : vector<1x16x32xbf16> to vector<16x32xbf16>
    %cst_49 = arith.constant dense<0.000000e+00> : vector<128x32xf32>
    %35 = tpu.matmul %32, %34, %cst_49 {dimension_numbers = #tpu.dot_dimension_numbers<[1], [0], [0], [1], [0, 0, 1, 1], [], []>} : vector<128x16xbf16>, vector<16x32xbf16>, vector<128x32xf32> -> vector<128x32xf32>
    %36 = arith.addf %30, %35 : vector<128x32xf32>
    %c0_50 = arith.constant 0 : index
    %c0_51 = arith.constant 0 : index
    %37 = vector.load %arg9[%c0_50, %c0_51] : memref<128x32xf32, #tpu.memory_space<vmem>>, vector<128x32xf32>
    tpu.vector_store %arg9[%c0_50, %c0_51], %36 {strides = array<i32>} : memref<128x32xf32, #tpu.memory_space<vmem>>, vector<128x32xf32>,
    %c0_52 = arith.constant 0 : index
    %c0_53 = arith.constant 0 : index
    %38 = vector.load %arg9[%c0_52, %c0_53] : memref<128x32xf32, #tpu.memory_space<vmem>>, vector<128x32xf32>
    %c0_54 = arith.constant 0 : index
    %c2_55 = arith.constant 2 : index
    %c1_56 = arith.constant 1 : index
    %c0_57 = arith.constant 0 : index
    %39 = vector.load %arg2[%c0_54, %c2_55, %c1_56, %c0_57] : memref<1x4x160x16xbf16, #tpu.memory_space<vmem>>, vector<1x1x128x16xbf16>
    %40 = vector.shape_cast %39 : vector<1x1x128x16xbf16> to vector<128x16xbf16>
    %c5 = arith.constant 5 : index
    %c0_58 = arith.constant 0 : index
    %c0_59 = arith.constant 0 : index
    %41 = vector.load %arg3[%c5, %c0_58, %c0_59] : memref<9x16x32xbf16, #tpu.memory_space<vmem>>, vector<1x16x32xbf16>
    %42 = vector.shape_cast %41 : vector<1x16x32xbf16> to vector<16x32xbf16>
    %cst_60 = arith.constant dense<0.000000e+00> : vector<128x32xf32>
    %43 = tpu.matmul %40, %42, %cst_60 {dimension_numbers = #tpu.dot_dimension_numbers<[1], [0], [0], [1], [0, 0, 1, 1], [], []>} : vector<128x16xbf16>, vector<16x32xbf16>, vector<128x32xf32> -> vector<128x32xf32>
    %44 = arith.addf %38, %43 : vector<128x32xf32>
    %c0_61 = arith.constant 0 : index
    %c0_62 = arith.constant 0 : index
    %45 = vector.load %arg9[%c0_61, %c0_62] : memref<128x32xf32, #tpu.memory_space<vmem>>, vector<128x32xf32>
    tpu.vector_store %arg9[%c0_61, %c0_62], %44 {strides = array<i32>} : memref<128x32xf32, #tpu.memory_space<vmem>>, vector<128x32xf32>,
    %c0_63 = arith.constant 0 : index
    %c0_64 = arith.constant 0 : index
    %46 = vector.load %arg9[%c0_63, %c0_64] : memref<128x32xf32, #tpu.memory_space<vmem>>, vector<128x32xf32>
    %c0_65 = arith.constant 0 : index
    %c0_66 = arith.constant 0 : index
    %c16 = arith.constant 16 : index
    %c0_67 = arith.constant 0 : index
    %47 = vector.load %arg2[%c0_65, %c0_66, %c16, %c0_67] : memref<1x4x160x16xbf16, #tpu.memory_space<vmem>>, vector<1x1x128x16xbf16>
    %48 = vector.shape_cast %47 : vector<1x1x128x16xbf16> to vector<128x16xbf16>
    %c6 = arith.constant 6 : index
    %c0_68 = arith.constant 0 : index
    %c0_69 = arith.constant 0 : index
    %49 = vector.load %arg3[%c6, %c0_68, %c0_69] : memref<9x16x32xbf16, #tpu.memory_space<vmem>>, vector<1x16x32xbf16>
    %50 = vector.shape_cast %49 : vector<1x16x32xbf16> to vector<16x32xbf16>
    %cst_70 = arith.constant dense<0.000000e+00> : vector<128x32xf32>
    %51 = tpu.matmul %48, %50, %cst_70 {dimension_numbers = #tpu.dot_dimension_numbers<[1], [0], [0], [1], [0, 0, 1, 1], [], []>} : vector<128x16xbf16>, vector<16x32xbf16>, vector<128x32xf32> -> vector<128x32xf32>
    %52 = arith.addf %46, %51 : vector<128x32xf32>
    %c0_71 = arith.constant 0 : index
    %c0_72 = arith.constant 0 : index
    %53 = vector.load %arg9[%c0_71, %c0_72] : memref<128x32xf32, #tpu.memory_space<vmem>>, vector<128x32xf32>
    tpu.vector_store %arg9[%c0_71, %c0_72], %52 {strides = array<i32>} : memref<128x32xf32, #tpu.memory_space<vmem>>, vector<128x32xf32>,
    %c0_73 = arith.constant 0 : index
    %c0_74 = arith.constant 0 : index
    %54 = vector.load %arg9[%c0_73, %c0_74] : memref<128x32xf32, #tpu.memory_space<vmem>>, vector<128x32xf32>
    %c0_75 = arith.constant 0 : index
    %c1_76 = arith.constant 1 : index
    %c16_77 = arith.constant 16 : index
    %c0_78 = arith.constant 0 : index
    %55 = vector.load %arg2[%c0_75, %c1_76, %c16_77, %c0_78] : memref<1x4x160x16xbf16, #tpu.memory_space<vmem>>, vector<1x1x128x16xbf16>
    %56 = vector.shape_cast %55 : vector<1x1x128x16xbf16> to vector<128x16xbf16>
    %c7 = arith.constant 7 : index
    %c0_79 = arith.constant 0 : index
    %c0_80 = arith.constant 0 : index
    %57 = vector.load %arg3[%c7, %c0_79, %c0_80] : memref<9x16x32xbf16, #tpu.memory_space<vmem>>, vector<1x16x32xbf16>
    %58 = vector.shape_cast %57 : vector<1x16x32xbf16> to vector<16x32xbf16>
    %cst_81 = arith.constant dense<0.000000e+00> : vector<128x32xf32>
    %59 = tpu.matmul %56, %58, %cst_81 {dimension_numbers = #tpu.dot_dimension_numbers<[1], [0], [0], [1], [0, 0, 1, 1], [], []>} : vector<128x16xbf16>, vector<16x32xbf16>, vector<128x32xf32> -> vector<128x32xf32>
    %60 = arith.addf %54, %59 : vector<128x32xf32>
    %c0_82 = arith.constant 0 : index
    %c0_83 = arith.constant 0 : index
    %61 = vector.load %arg9[%c0_82, %c0_83] : memref<128x32xf32, #tpu.memory_space<vmem>>, vector<128x32xf32>
    tpu.vector_store %arg9[%c0_82, %c0_83], %60 {strides = array<i32>} : memref<128x32xf32, #tpu.memory_space<vmem>>, vector<128x32xf32>,
    %c0_84 = arith.constant 0 : index
    %c0_85 = arith.constant 0 : index
    %62 = vector.load %arg9[%c0_84, %c0_85] : memref<128x32xf32, #tpu.memory_space<vmem>>, vector<128x32xf32>
    %c0_86 = arith.constant 0 : index
    %c0_87 = arith.constant 0 : index
    %c17 = arith.constant 17 : index
    %c0_88 = arith.constant 0 : index
    %63 = vector.load %arg2[%c0_86, %c0_87, %c17, %c0_88] : memref<1x4x160x16xbf16, #tpu.memory_space<vmem>>, vector<1x1x128x16xbf16>
    %64 = vector.shape_cast %63 : vector<1x1x128x16xbf16> to vector<128x16xbf16>
    %c8 = arith.constant 8 : index
    %c0_89 = arith.constant 0 : index
    %c0_90 = arith.constant 0 : index
    %65 = vector.load %arg3[%c8, %c0_89, %c0_90] : memref<9x16x32xbf16, #tpu.memory_space<vmem>>, vector<1x16x32xbf16>
    %66 = vector.shape_cast %65 : vector<1x16x32xbf16> to vector<16x32xbf16>
    %cst_91 = arith.constant dense<0.000000e+00> : vector<128x32xf32>
    %67 = tpu.matmul %64, %66, %cst_91 {dimension_numbers = #tpu.dot_dimension_numbers<[1], [0], [0], [1], [0, 0, 1, 1], [], []>} : vector<128x16xbf16>, vector<16x32xbf16>, vector<128x32xf32> -> vector<128x32xf32>
    %68 = arith.addf %62, %67 : vector<128x32xf32>
    %c0_92 = arith.constant 0 : index
    %c0_93 = arith.constant 0 : index
    %69 = vector.load %arg9[%c0_92, %c0_93] : memref<128x32xf32, #tpu.memory_space<vmem>>, vector<128x32xf32>
    tpu.vector_store %arg9[%c0_92, %c0_93], %68 {strides = array<i32>} : memref<128x32xf32, #tpu.memory_space<vmem>>, vector<128x32xf32>,
    %c0_94 = arith.constant 0 : index
    %c0_95 = arith.constant 0 : index
    %70 = vector.load %arg9[%c0_94, %c0_95] : memref<128x32xf32, #tpu.memory_space<vmem>>, vector<128x32xf32>
    %71 = arith.truncf %70 : vector<128x32xf32> to vector<128x32xbf16>
    %c0_96 = arith.constant 0 : index
    %c32 = arith.constant 32 : index
    %c0_97 = arith.constant 0 : index
    %72 = vector.load %arg5[%c0_96, %c32, %c0_97] : memref<1x184x32xbf16, #tpu.memory_space<vmem>>, vector<1x128x32xbf16>
    %73 = vector.shape_cast %72 : vector<1x128x32xbf16> to vector<128x32xbf16>
    %74 = vector.shape_cast %71 : vector<128x32xbf16> to vector<1x128x32xbf16>
    tpu.vector_store %arg5[%c0_96, %c32, %c0_97], %74 {strides = array<i32>} : memref<1x184x32xbf16, #tpu.memory_space<vmem>>, vector<1x128x32xbf16>,
    %75 = tpu.iota {dimensions = array<i32: 0>} : vector<128x1xi32>
    %c16_i32 = arith.constant 16 : i32
    %c0_i32 = arith.constant 0 : i32
    %76 = arith.cmpi eq, %c16_i32, %c0_i32 : i32
    %c1_i32 = arith.constant 1 : i32
    %77 = arith.select %76, %c1_i32, %c16_i32 : i32
    %78 = vector.broadcast %77 : i32 to vector<128x1xi32>
    %79 = arith.remsi %75, %78 : vector<128x1xi32>
    %c0_i32_98 = arith.constant 0 : i32
    %80 = vector.broadcast %c0_i32_98 : i32 to vector<128x1xi32>
    %81 = arith.cmpi ne, %79, %80 : vector<128x1xi32>
    %c0_i32_99 = arith.constant 0 : i32
    %82 = vector.broadcast %c0_i32_99 : i32 to vector<128x1xi32>
    %83 = arith.cmpi slt, %79, %82 : vector<128x1xi32>
    %c0_i32_100 = arith.constant 0 : i32
    %84 = arith.cmpi slt, %77, %c0_i32_100 : i32
    %85 = vector.broadcast %84 : i1 to vector<128x1xi1>
    %86 = vector.broadcast %85 : vector<128x1xi1> to vector<128x1xi1>
    %87 = arith.xori %83, %86 : vector<128x1xi1>
    %88 = arith.andi %87, %81 : vector<128x1xi1>
    %89 = vector.broadcast %77 : i32 to vector<128x1xi32>
    %90 = arith.addi %79, %89 : vector<128x1xi32>
    %91 = arith.select %88, %90, %79 : vector<128x1xi1>, vector<128x1xi32>
    %c8_i32 = arith.constant 8 : i32
    %92 = vector.broadcast %c8_i32 : i32 to vector<128x1xi32>
    %93 = arith.cmpi slt, %91, %92 : vector<128x1xi32>
    %cst_101 = arith.constant 0.000000e+00 : f32
    %94 = vector.shape_cast %93 : vector<128x1xi1> to vector<128x1xi1>
    %95 = vector.broadcast %94 : vector<128x1xi1> to vector<128x32xi1>
    %96 = vector.broadcast %cst_101 : f32 to vector<128x32xf32>
    %97 = arith.select %95, %70, %96 : vector<128x32xi1>, vector<128x32xf32>
    %cst_102 = arith.constant dense<0.000000e+00> : vector<32xf32>
    %98 = vector.multi_reduction <add>, %97, %cst_102 [0] : vector<128x32xf32> to vector<32xf32>
    %99 = vector.shape_cast %98 : vector<32xf32> to vector<1x32xf32>
    %c0_103 = arith.constant 0 : index
    %c0_104 = arith.constant 0 : index
    %c0_105 = arith.constant 0 : index
    %100 = vector.load %arg6[%c0_103, %c0_104, %c0_105] : memref<1x2x32xf32, #tpu.memory_space<vmem>>, vector<1x1x32xf32>
    %101 = vector.shape_cast %100 : vector<1x1x32xf32> to vector<1x32xf32>
    %102 = vector.shape_cast %99 : vector<1x32xf32> to vector<1x1x32xf32>
    tpu.vector_store %arg6[%c0_103, %c0_104, %c0_105], %102 {strides = array<i32>} : memref<1x2x32xf32, #tpu.memory_space<vmem>>, vector<1x1x32xf32>,
    %103 = arith.mulf %97, %97 : vector<128x32xf32>
    %cst_106 = arith.constant dense<0.000000e+00> : vector<32xf32>
    %104 = vector.multi_reduction <add>, %103, %cst_106 [0] : vector<128x32xf32> to vector<32xf32>
    %105 = vector.shape_cast %104 : vector<32xf32> to vector<1x32xf32>
    %c0_107 = arith.constant 0 : index
    %c1_108 = arith.constant 1 : index
    %c0_109 = arith.constant 0 : index
    %106 = vector.load %arg6[%c0_107, %c1_108, %c0_109] : memref<1x2x32xf32, #tpu.memory_space<vmem>>, vector<1x1x32xf32>
    %107 = vector.shape_cast %106 : vector<1x1x32xf32> to vector<1x32xf32>
    %108 = vector.shape_cast %105 : vector<1x32xf32> to vector<1x1x32xf32>
    tpu.vector_store %arg6[%c0_107, %c1_108, %c0_109], %108 {strides = array<i32>} : memref<1x2x32xf32, #tpu.memory_space<vmem>>, vector<1x1x32xf32>,
    %c0_110 = arith.constant 0 : index
    %c3_111 = arith.constant 3 : index
    %c0_112 = arith.constant 0 : index
    %c0_113 = arith.constant 0 : index
    %109 = vector.load %arg2[%c0_110, %c3_111, %c0_112, %c0_113] : memref<1x4x160x16xbf16, #tpu.memory_space<vmem>>, vector<1x1x128x16xbf16>
    %110 = vector.shape_cast %109 : vector<1x1x128x16xbf16> to vector<128x16xbf16>
    %c0_114 = arith.constant 0 : index
    %c0_115 = arith.constant 0 : index
    %111 = vector.load %arg4[%c0_114, %c0_115] : memref<16x32xbf16, #tpu.memory_space<vmem>>, vector<16x32xbf16>
    %cst_116 = arith.constant dense<0.000000e+00> : vector<128x32xf32>
    %112 = tpu.matmul %110, %111, %cst_116 {dimension_numbers = #tpu.dot_dimension_numbers<[1], [0], [0], [1], [0, 0, 1, 1], [], []>} : vector<128x16xbf16>, vector<16x32xbf16>, vector<128x32xf32> -> vector<128x32xf32>
    %113 = arith.truncf %112 : vector<128x32xf32> to vector<128x32xbf16>
    %c0_117 = arith.constant 0 : index
    %c0_118 = arith.constant 0 : index
    %c0_119 = arith.constant 0 : index
    %114 = vector.load %arg7[%c0_117, %c0_118, %c0_119] : memref<1x128x32xbf16, #tpu.memory_space<vmem>>, vector<1x128x32xbf16>
    %115 = vector.shape_cast %114 : vector<1x128x32xbf16> to vector<128x32xbf16>
    %116 = vector.shape_cast %113 : vector<128x32xbf16> to vector<1x128x32xbf16>
    tpu.vector_store %arg7[%c0_117, %c0_118, %c0_119], %116 {strides = array<i32>} : memref<1x128x32xbf16, #tpu.memory_space<vmem>>, vector<1x128x32xbf16>,
    %cst_120 = arith.constant 0.000000e+00 : f32
    %117 = vector.shape_cast %93 : vector<128x1xi1> to vector<128x1xi1>
    %118 = vector.broadcast %117 : vector<128x1xi1> to vector<128x32xi1>
    %119 = vector.broadcast %cst_120 : f32 to vector<128x32xf32>
    %120 = arith.select %118, %112, %119 : vector<128x32xi1>, vector<128x32xf32>
    %cst_121 = arith.constant dense<0.000000e+00> : vector<32xf32>
    %121 = vector.multi_reduction <add>, %120, %cst_121 [0] : vector<128x32xf32> to vector<32xf32>
    %122 = vector.shape_cast %121 : vector<32xf32> to vector<1x32xf32>
    %c0_122 = arith.constant 0 : index
    %c0_123 = arith.constant 0 : index
    %c0_124 = arith.constant 0 : index
    %123 = vector.load %arg8[%c0_122, %c0_123, %c0_124] : memref<1x2x32xf32, #tpu.memory_space<vmem>>, vector<1x1x32xf32>
    %124 = vector.shape_cast %123 : vector<1x1x32xf32> to vector<1x32xf32>
    %125 = vector.shape_cast %122 : vector<1x32xf32> to vector<1x1x32xf32>
    tpu.vector_store %arg8[%c0_122, %c0_123, %c0_124], %125 {strides = array<i32>} : memref<1x2x32xf32, #tpu.memory_space<vmem>>, vector<1x1x32xf32>,
    %126 = arith.mulf %120, %120 : vector<128x32xf32>
    %cst_125 = arith.constant dense<0.000000e+00> : vector<32xf32>
    %127 = vector.multi_reduction <add>, %126, %cst_125 [0] : vector<128x32xf32> to vector<32xf32>
    %128 = vector.shape_cast %127 : vector<32xf32> to vector<1x32xf32>
    %c0_126 = arith.constant 0 : index
    %c1_127 = arith.constant 1 : index
    %c0_128 = arith.constant 0 : index
    %129 = vector.load %arg8[%c0_126, %c1_127, %c0_128] : memref<1x2x32xf32, #tpu.memory_space<vmem>>, vector<1x1x32xf32>
    %130 = vector.shape_cast %129 : vector<1x1x32xf32> to vector<1x32xf32>
    %131 = vector.shape_cast %128 : vector<1x32xf32> to vector<1x1x32xf32>
    tpu.vector_store %arg8[%c0_126, %c1_127, %c0_128], %131 {strides = array<i32>} : memref<1x2x32xf32, #tpu.memory_space<vmem>>, vector<1x1x32xf32>,
    return
  }
  func.func @transform_0(%arg0: i32, %arg1: i32) -> (i32, i32, i32, i32) {
    %c0_i32 = arith.constant 0 : i32
    %c0_i32_0 = arith.constant 0 : i32
    %c0_i32_1 = arith.constant 0 : i32
    %c0_i32_2 = arith.constant 0 : i32
    return %arg0, %c0_i32, %c0_i32_0, %c0_i32_1 : i32, i32, i32, i32
  }
  func.func @transform_1(%arg0: i32, %arg1: i32) -> (i32, i32, i32) {
    %c0_i32 = arith.constant 0 : i32
    %c0_i32_0 = arith.constant 0 : i32
    %c0_i32_1 = arith.constant 0 : i32
    return %c0_i32, %c0_i32_0, %arg1 : i32, i32, i32
  }
  func.func @transform_2(%arg0: i32, %arg1: i32) -> (i32, i32) {
    %c0_i32 = arith.constant 0 : i32
    %c0_i32_0 = arith.constant 0 : i32
    return %c0_i32, %arg1 : i32, i32
  }
  func.func @transform_3(%arg0: i32, %arg1: i32) -> (i32, i32, i32) {
    %c0_i32 = arith.constant 0 : i32
    %c0_i32_0 = arith.constant 0 : i32
    return %arg0, %c0_i32, %arg1 : i32, i32, i32
  }
  func.func @transform_4(%arg0: i32, %arg1: i32) -> (i32, i32, i32) {
    %c0_i32 = arith.constant 0 : i32
    %c0_i32_0 = arith.constant 0 : i32
    return %arg0, %c0_i32, %arg1 : i32, i32, i32
  }
  func.func @transform_5(%arg0: i32, %arg1: i32) -> (i32, i32, i32) {
    %c0_i32 = arith.constant 0 : i32
    %c0_i32_0 = arith.constant 0 : i32
    return %arg0, %c0_i32, %arg1 : i32, i32, i32
  }
  func.func @transform_6(%arg0: i32, %arg1: i32) -> (i32, i32, i32) {
    %c0_i32 = arith.constant 0 : i32
    %c0_i32_0 = arith.constant 0 : i32
    return %arg0, %c0_i32, %arg1 : i32, i32, i32
  }
}

module attributes {stable_mosaic.version = 11 : i64} {
  func.func @conv2_kernel(%arg0: i32, %arg1: i32, %arg2: memref<1x184x32xbf16, #tpu.memory_space<vmem>>, %arg3: memref<2x32xf32, #tpu.memory_space<vmem>>, %arg4: memref<1x9x32x32xbf16, #tpu.memory_space<vmem>>, %arg5: memref<1x128x32xbf16, #tpu.memory_space<vmem>>, %arg6: memref<1x2x32xf32, #tpu.memory_space<vmem>>, %arg7: memref<184x32xbf16, #tpu.memory_space<vmem>>, %arg8: memref<128x32xf32, #tpu.memory_space<vmem>>) attributes {dimension_semantics = [#tpu.dimension_semantics<parallel>, #tpu.dimension_semantics<parallel>], iteration_bounds = array<i64: 2, 1>, scalar_prefetch = 0 : i64, scratch_operands = 2 : i64, tpu.core_type = #tpu.core_type<tc>, window_params = [{transform_indices = @transform_0, window_bounds = array<i64: 1, 184, 32>}, {transform_indices = @transform_1, window_bounds = array<i64: 2, 32>}, {transform_indices = @transform_2, window_bounds = array<i64: 1, 9, 32, 32>}, {transform_indices = @transform_3, window_bounds = array<i64: 1, 128, 32>}, {transform_indices = @transform_4, window_bounds = array<i64: 1, 2, 32>}]} {
    %c0 = arith.constant 0 : index
    %c0_0 = arith.constant 0 : index
    %0 = vector.load %arg3[%c0, %c0_0] : memref<2x32xf32, #tpu.memory_space<vmem>>, vector<1x32xf32>
    %c1 = arith.constant 1 : index
    %c0_1 = arith.constant 0 : index
    %1 = vector.load %arg3[%c1, %c0_1] : memref<2x32xf32, #tpu.memory_space<vmem>>, vector<1x32xf32>
    %c0_2 = arith.constant 0 : index
    %c0_3 = arith.constant 0 : index
    %c0_4 = arith.constant 0 : index
    %2 = vector.load %arg2[%c0_2, %c0_3, %c0_4] : memref<1x184x32xbf16, #tpu.memory_space<vmem>>, vector<1x184x32xbf16>
    %3 = vector.shape_cast %2 : vector<1x184x32xbf16> to vector<184x32xbf16>
    %4 = arith.extf %3 : vector<184x32xbf16> to vector<184x32xf32>
    %5 = vector.broadcast %0 : vector<1x32xf32> to vector<184x32xf32>
    %6 = arith.mulf %4, %5 : vector<184x32xf32>
    %7 = vector.broadcast %1 : vector<1x32xf32> to vector<184x32xf32>
    %8 = arith.addf %6, %7 : vector<184x32xf32>
    %cst = arith.constant 0.000000e+00 : f32
    %9 = vector.broadcast %cst : f32 to vector<184x32xf32>
    %10 = arith.maximumf %8, %9 : vector<184x32xf32>
    %11 = tpu.iota {dimensions = array<i32: 0>} : vector<184x1xi32>
    %c32_i32 = arith.constant 32 : i32
    %12 = vector.broadcast %c32_i32 : i32 to vector<184x1xi32>
    %13 = arith.subi %11, %12 : vector<184x1xi32>
    %c0_i32 = arith.constant 0 : i32
    %14 = vector.broadcast %c0_i32 : i32 to vector<184x1xi32>
    %15 = arith.cmpi sge, %13, %14 : vector<184x1xi32>
    %c128_i32 = arith.constant 128 : i32
    %16 = vector.broadcast %c128_i32 : i32 to vector<184x1xi32>
    %17 = arith.cmpi slt, %13, %16 : vector<184x1xi32>
    %18 = arith.andi %15, %17 : vector<184x1xi1>
    %c16_i32 = arith.constant 16 : i32
    %c0_i32_5 = arith.constant 0 : i32
    %19 = arith.cmpi eq, %c16_i32, %c0_i32_5 : i32
    %c1_i32 = arith.constant 1 : i32
    %20 = arith.select %19, %c1_i32, %c16_i32 : i32
    %21 = vector.broadcast %20 : i32 to vector<184x1xi32>
    %22 = arith.remsi %13, %21 : vector<184x1xi32>
    %c0_i32_6 = arith.constant 0 : i32
    %23 = vector.broadcast %c0_i32_6 : i32 to vector<184x1xi32>
    %24 = arith.cmpi ne, %22, %23 : vector<184x1xi32>
    %c0_i32_7 = arith.constant 0 : i32
    %25 = vector.broadcast %c0_i32_7 : i32 to vector<184x1xi32>
    %26 = arith.cmpi slt, %22, %25 : vector<184x1xi32>
    %c0_i32_8 = arith.constant 0 : i32
    %27 = arith.cmpi slt, %20, %c0_i32_8 : i32
    %28 = vector.broadcast %27 : i1 to vector<184x1xi1>
    %29 = vector.broadcast %28 : vector<184x1xi1> to vector<184x1xi1>
    %30 = arith.xori %26, %29 : vector<184x1xi1>
    %31 = arith.andi %30, %24 : vector<184x1xi1>
    %32 = vector.broadcast %20 : i32 to vector<184x1xi32>
    %33 = arith.addi %22, %32 : vector<184x1xi32>
    %34 = arith.select %31, %33, %22 : vector<184x1xi1>, vector<184x1xi32>
    %c8_i32 = arith.constant 8 : i32
    %35 = vector.broadcast %c8_i32 : i32 to vector<184x1xi32>
    %36 = arith.cmpi slt, %34, %35 : vector<184x1xi32>
    %37 = arith.andi %18, %36 : vector<184x1xi1>
    %cst_9 = arith.constant 0.000000e+00 : f32
    %38 = vector.shape_cast %37 : vector<184x1xi1> to vector<184x1xi1>
    %39 = vector.broadcast %38 : vector<184x1xi1> to vector<184x32xi1>
    %40 = vector.broadcast %cst_9 : f32 to vector<184x32xf32>
    %41 = arith.select %39, %10, %40 : vector<184x32xi1>, vector<184x32xf32>
    %42 = arith.truncf %41 : vector<184x32xf32> to vector<184x32xbf16>
    %c0_10 = arith.constant 0 : index
    %c0_11 = arith.constant 0 : index
    %43 = vector.load %arg7[%c0_10, %c0_11] : memref<184x32xbf16, #tpu.memory_space<vmem>>, vector<184x32xbf16>
    tpu.vector_store %arg7[%c0_10, %c0_11], %42 {strides = array<i32>} : memref<184x32xbf16, #tpu.memory_space<vmem>>, vector<184x32xbf16>,
    %c15 = arith.constant 15 : index
    %c0_12 = arith.constant 0 : index
    %44 = vector.load %arg7[%c15, %c0_12] : memref<184x32xbf16, #tpu.memory_space<vmem>>, vector<128x32xbf16>
    %c0_13 = arith.constant 0 : index
    %c0_14 = arith.constant 0 : index
    %c0_15 = arith.constant 0 : index
    %c0_16 = arith.constant 0 : index
    %45 = vector.load %arg4[%c0_13, %c0_14, %c0_15, %c0_16] : memref<1x9x32x32xbf16, #tpu.memory_space<vmem>>, vector<1x1x32x32xbf16>
    %46 = vector.shape_cast %45 : vector<1x1x32x32xbf16> to vector<32x32xbf16>
    %cst_17 = arith.constant dense<0.000000e+00> : vector<128x32xf32>
    %47 = tpu.matmul %44, %46, %cst_17 {dimension_numbers = #tpu.dot_dimension_numbers<[1], [0], [0], [1], [0, 0, 1, 1], [], []>} : vector<128x32xbf16>, vector<32x32xbf16>, vector<128x32xf32> -> vector<128x32xf32>
    %c0_18 = arith.constant 0 : index
    %c0_19 = arith.constant 0 : index
    %48 = vector.load %arg8[%c0_18, %c0_19] : memref<128x32xf32, #tpu.memory_space<vmem>>, vector<128x32xf32>
    tpu.vector_store %arg8[%c0_18, %c0_19], %47 {strides = array<i32>} : memref<128x32xf32, #tpu.memory_space<vmem>>, vector<128x32xf32>,
    %c0_20 = arith.constant 0 : index
    %c0_21 = arith.constant 0 : index
    %49 = vector.load %arg8[%c0_20, %c0_21] : memref<128x32xf32, #tpu.memory_space<vmem>>, vector<128x32xf32>
    %c16 = arith.constant 16 : index
    %c0_22 = arith.constant 0 : index
    %50 = vector.load %arg7[%c16, %c0_22] : memref<184x32xbf16, #tpu.memory_space<vmem>>, vector<128x32xbf16>
    %c0_23 = arith.constant 0 : index
    %c1_24 = arith.constant 1 : index
    %c0_25 = arith.constant 0 : index
    %c0_26 = arith.constant 0 : index
    %51 = vector.load %arg4[%c0_23, %c1_24, %c0_25, %c0_26] : memref<1x9x32x32xbf16, #tpu.memory_space<vmem>>, vector<1x1x32x32xbf16>
    %52 = vector.shape_cast %51 : vector<1x1x32x32xbf16> to vector<32x32xbf16>
    %cst_27 = arith.constant dense<0.000000e+00> : vector<128x32xf32>
    %53 = tpu.matmul %50, %52, %cst_27 {dimension_numbers = #tpu.dot_dimension_numbers<[1], [0], [0], [1], [0, 0, 1, 1], [], []>} : vector<128x32xbf16>, vector<32x32xbf16>, vector<128x32xf32> -> vector<128x32xf32>
    %54 = arith.addf %49, %53 : vector<128x32xf32>
    %c0_28 = arith.constant 0 : index
    %c0_29 = arith.constant 0 : index
    %55 = vector.load %arg8[%c0_28, %c0_29] : memref<128x32xf32, #tpu.memory_space<vmem>>, vector<128x32xf32>
    tpu.vector_store %arg8[%c0_28, %c0_29], %54 {strides = array<i32>} : memref<128x32xf32, #tpu.memory_space<vmem>>, vector<128x32xf32>,
    %c0_30 = arith.constant 0 : index
    %c0_31 = arith.constant 0 : index
    %56 = vector.load %arg8[%c0_30, %c0_31] : memref<128x32xf32, #tpu.memory_space<vmem>>, vector<128x32xf32>
    %c17 = arith.constant 17 : index
    %c0_32 = arith.constant 0 : index
    %57 = vector.load %arg7[%c17, %c0_32] : memref<184x32xbf16, #tpu.memory_space<vmem>>, vector<128x32xbf16>
    %c0_33 = arith.constant 0 : index
    %c2 = arith.constant 2 : index
    %c0_34 = arith.constant 0 : index
    %c0_35 = arith.constant 0 : index
    %58 = vector.load %arg4[%c0_33, %c2, %c0_34, %c0_35] : memref<1x9x32x32xbf16, #tpu.memory_space<vmem>>, vector<1x1x32x32xbf16>
    %59 = vector.shape_cast %58 : vector<1x1x32x32xbf16> to vector<32x32xbf16>
    %cst_36 = arith.constant dense<0.000000e+00> : vector<128x32xf32>
    %60 = tpu.matmul %57, %59, %cst_36 {dimension_numbers = #tpu.dot_dimension_numbers<[1], [0], [0], [1], [0, 0, 1, 1], [], []>} : vector<128x32xbf16>, vector<32x32xbf16>, vector<128x32xf32> -> vector<128x32xf32>
    %61 = arith.addf %56, %60 : vector<128x32xf32>
    %c0_37 = arith.constant 0 : index
    %c0_38 = arith.constant 0 : index
    %62 = vector.load %arg8[%c0_37, %c0_38] : memref<128x32xf32, #tpu.memory_space<vmem>>, vector<128x32xf32>
    tpu.vector_store %arg8[%c0_37, %c0_38], %61 {strides = array<i32>} : memref<128x32xf32, #tpu.memory_space<vmem>>, vector<128x32xf32>,
    %c0_39 = arith.constant 0 : index
    %c0_40 = arith.constant 0 : index
    %63 = vector.load %arg8[%c0_39, %c0_40] : memref<128x32xf32, #tpu.memory_space<vmem>>, vector<128x32xf32>
    %c31 = arith.constant 31 : index
    %c0_41 = arith.constant 0 : index
    %64 = vector.load %arg7[%c31, %c0_41] : memref<184x32xbf16, #tpu.memory_space<vmem>>, vector<128x32xbf16>
    %c0_42 = arith.constant 0 : index
    %c3 = arith.constant 3 : index
    %c0_43 = arith.constant 0 : index
    %c0_44 = arith.constant 0 : index
    %65 = vector.load %arg4[%c0_42, %c3, %c0_43, %c0_44] : memref<1x9x32x32xbf16, #tpu.memory_space<vmem>>, vector<1x1x32x32xbf16>
    %66 = vector.shape_cast %65 : vector<1x1x32x32xbf16> to vector<32x32xbf16>
    %cst_45 = arith.constant dense<0.000000e+00> : vector<128x32xf32>
    %67 = tpu.matmul %64, %66, %cst_45 {dimension_numbers = #tpu.dot_dimension_numbers<[1], [0], [0], [1], [0, 0, 1, 1], [], []>} : vector<128x32xbf16>, vector<32x32xbf16>, vector<128x32xf32> -> vector<128x32xf32>
    %68 = arith.addf %63, %67 : vector<128x32xf32>
    %c0_46 = arith.constant 0 : index
    %c0_47 = arith.constant 0 : index
    %69 = vector.load %arg8[%c0_46, %c0_47] : memref<128x32xf32, #tpu.memory_space<vmem>>, vector<128x32xf32>
    tpu.vector_store %arg8[%c0_46, %c0_47], %68 {strides = array<i32>} : memref<128x32xf32, #tpu.memory_space<vmem>>, vector<128x32xf32>,
    %c0_48 = arith.constant 0 : index
    %c0_49 = arith.constant 0 : index
    %70 = vector.load %arg8[%c0_48, %c0_49] : memref<128x32xf32, #tpu.memory_space<vmem>>, vector<128x32xf32>
    %c32 = arith.constant 32 : index
    %c0_50 = arith.constant 0 : index
    %71 = vector.load %arg7[%c32, %c0_50] : memref<184x32xbf16, #tpu.memory_space<vmem>>, vector<128x32xbf16>
    %c0_51 = arith.constant 0 : index
    %c4 = arith.constant 4 : index
    %c0_52 = arith.constant 0 : index
    %c0_53 = arith.constant 0 : index
    %72 = vector.load %arg4[%c0_51, %c4, %c0_52, %c0_53] : memref<1x9x32x32xbf16, #tpu.memory_space<vmem>>, vector<1x1x32x32xbf16>
    %73 = vector.shape_cast %72 : vector<1x1x32x32xbf16> to vector<32x32xbf16>
    %cst_54 = arith.constant dense<0.000000e+00> : vector<128x32xf32>
    %74 = tpu.matmul %71, %73, %cst_54 {dimension_numbers = #tpu.dot_dimension_numbers<[1], [0], [0], [1], [0, 0, 1, 1], [], []>} : vector<128x32xbf16>, vector<32x32xbf16>, vector<128x32xf32> -> vector<128x32xf32>
    %75 = arith.addf %70, %74 : vector<128x32xf32>
    %c0_55 = arith.constant 0 : index
    %c0_56 = arith.constant 0 : index
    %76 = vector.load %arg8[%c0_55, %c0_56] : memref<128x32xf32, #tpu.memory_space<vmem>>, vector<128x32xf32>
    tpu.vector_store %arg8[%c0_55, %c0_56], %75 {strides = array<i32>} : memref<128x32xf32, #tpu.memory_space<vmem>>, vector<128x32xf32>,
    %c0_57 = arith.constant 0 : index
    %c0_58 = arith.constant 0 : index
    %77 = vector.load %arg8[%c0_57, %c0_58] : memref<128x32xf32, #tpu.memory_space<vmem>>, vector<128x32xf32>
    %c33 = arith.constant 33 : index
    %c0_59 = arith.constant 0 : index
    %78 = vector.load %arg7[%c33, %c0_59] : memref<184x32xbf16, #tpu.memory_space<vmem>>, vector<128x32xbf16>
    %c0_60 = arith.constant 0 : index
    %c5 = arith.constant 5 : index
    %c0_61 = arith.constant 0 : index
    %c0_62 = arith.constant 0 : index
    %79 = vector.load %arg4[%c0_60, %c5, %c0_61, %c0_62] : memref<1x9x32x32xbf16, #tpu.memory_space<vmem>>, vector<1x1x32x32xbf16>
    %80 = vector.shape_cast %79 : vector<1x1x32x32xbf16> to vector<32x32xbf16>
    %cst_63 = arith.constant dense<0.000000e+00> : vector<128x32xf32>
    %81 = tpu.matmul %78, %80, %cst_63 {dimension_numbers = #tpu.dot_dimension_numbers<[1], [0], [0], [1], [0, 0, 1, 1], [], []>} : vector<128x32xbf16>, vector<32x32xbf16>, vector<128x32xf32> -> vector<128x32xf32>
    %82 = arith.addf %77, %81 : vector<128x32xf32>
    %c0_64 = arith.constant 0 : index
    %c0_65 = arith.constant 0 : index
    %83 = vector.load %arg8[%c0_64, %c0_65] : memref<128x32xf32, #tpu.memory_space<vmem>>, vector<128x32xf32>
    tpu.vector_store %arg8[%c0_64, %c0_65], %82 {strides = array<i32>} : memref<128x32xf32, #tpu.memory_space<vmem>>, vector<128x32xf32>,
    %c0_66 = arith.constant 0 : index
    %c0_67 = arith.constant 0 : index
    %84 = vector.load %arg8[%c0_66, %c0_67] : memref<128x32xf32, #tpu.memory_space<vmem>>, vector<128x32xf32>
    %c47 = arith.constant 47 : index
    %c0_68 = arith.constant 0 : index
    %85 = vector.load %arg7[%c47, %c0_68] : memref<184x32xbf16, #tpu.memory_space<vmem>>, vector<128x32xbf16>
    %c0_69 = arith.constant 0 : index
    %c6 = arith.constant 6 : index
    %c0_70 = arith.constant 0 : index
    %c0_71 = arith.constant 0 : index
    %86 = vector.load %arg4[%c0_69, %c6, %c0_70, %c0_71] : memref<1x9x32x32xbf16, #tpu.memory_space<vmem>>, vector<1x1x32x32xbf16>
    %87 = vector.shape_cast %86 : vector<1x1x32x32xbf16> to vector<32x32xbf16>
    %cst_72 = arith.constant dense<0.000000e+00> : vector<128x32xf32>
    %88 = tpu.matmul %85, %87, %cst_72 {dimension_numbers = #tpu.dot_dimension_numbers<[1], [0], [0], [1], [0, 0, 1, 1], [], []>} : vector<128x32xbf16>, vector<32x32xbf16>, vector<128x32xf32> -> vector<128x32xf32>
    %89 = arith.addf %84, %88 : vector<128x32xf32>
    %c0_73 = arith.constant 0 : index
    %c0_74 = arith.constant 0 : index
    %90 = vector.load %arg8[%c0_73, %c0_74] : memref<128x32xf32, #tpu.memory_space<vmem>>, vector<128x32xf32>
    tpu.vector_store %arg8[%c0_73, %c0_74], %89 {strides = array<i32>} : memref<128x32xf32, #tpu.memory_space<vmem>>, vector<128x32xf32>,
    %c0_75 = arith.constant 0 : index
    %c0_76 = arith.constant 0 : index
    %91 = vector.load %arg8[%c0_75, %c0_76] : memref<128x32xf32, #tpu.memory_space<vmem>>, vector<128x32xf32>
    %c48 = arith.constant 48 : index
    %c0_77 = arith.constant 0 : index
    %92 = vector.load %arg7[%c48, %c0_77] : memref<184x32xbf16, #tpu.memory_space<vmem>>, vector<128x32xbf16>
    %c0_78 = arith.constant 0 : index
    %c7 = arith.constant 7 : index
    %c0_79 = arith.constant 0 : index
    %c0_80 = arith.constant 0 : index
    %93 = vector.load %arg4[%c0_78, %c7, %c0_79, %c0_80] : memref<1x9x32x32xbf16, #tpu.memory_space<vmem>>, vector<1x1x32x32xbf16>
    %94 = vector.shape_cast %93 : vector<1x1x32x32xbf16> to vector<32x32xbf16>
    %cst_81 = arith.constant dense<0.000000e+00> : vector<128x32xf32>
    %95 = tpu.matmul %92, %94, %cst_81 {dimension_numbers = #tpu.dot_dimension_numbers<[1], [0], [0], [1], [0, 0, 1, 1], [], []>} : vector<128x32xbf16>, vector<32x32xbf16>, vector<128x32xf32> -> vector<128x32xf32>
    %96 = arith.addf %91, %95 : vector<128x32xf32>
    %c0_82 = arith.constant 0 : index
    %c0_83 = arith.constant 0 : index
    %97 = vector.load %arg8[%c0_82, %c0_83] : memref<128x32xf32, #tpu.memory_space<vmem>>, vector<128x32xf32>
    tpu.vector_store %arg8[%c0_82, %c0_83], %96 {strides = array<i32>} : memref<128x32xf32, #tpu.memory_space<vmem>>, vector<128x32xf32>,
    %c0_84 = arith.constant 0 : index
    %c0_85 = arith.constant 0 : index
    %98 = vector.load %arg8[%c0_84, %c0_85] : memref<128x32xf32, #tpu.memory_space<vmem>>, vector<128x32xf32>
    %c49 = arith.constant 49 : index
    %c0_86 = arith.constant 0 : index
    %99 = vector.load %arg7[%c49, %c0_86] : memref<184x32xbf16, #tpu.memory_space<vmem>>, vector<128x32xbf16>
    %c0_87 = arith.constant 0 : index
    %c8 = arith.constant 8 : index
    %c0_88 = arith.constant 0 : index
    %c0_89 = arith.constant 0 : index
    %100 = vector.load %arg4[%c0_87, %c8, %c0_88, %c0_89] : memref<1x9x32x32xbf16, #tpu.memory_space<vmem>>, vector<1x1x32x32xbf16>
    %101 = vector.shape_cast %100 : vector<1x1x32x32xbf16> to vector<32x32xbf16>
    %cst_90 = arith.constant dense<0.000000e+00> : vector<128x32xf32>
    %102 = tpu.matmul %99, %101, %cst_90 {dimension_numbers = #tpu.dot_dimension_numbers<[1], [0], [0], [1], [0, 0, 1, 1], [], []>} : vector<128x32xbf16>, vector<32x32xbf16>, vector<128x32xf32> -> vector<128x32xf32>
    %103 = arith.addf %98, %102 : vector<128x32xf32>
    %c0_91 = arith.constant 0 : index
    %c0_92 = arith.constant 0 : index
    %104 = vector.load %arg8[%c0_91, %c0_92] : memref<128x32xf32, #tpu.memory_space<vmem>>, vector<128x32xf32>
    tpu.vector_store %arg8[%c0_91, %c0_92], %103 {strides = array<i32>} : memref<128x32xf32, #tpu.memory_space<vmem>>, vector<128x32xf32>,
    %c0_93 = arith.constant 0 : index
    %c0_94 = arith.constant 0 : index
    %105 = vector.load %arg8[%c0_93, %c0_94] : memref<128x32xf32, #tpu.memory_space<vmem>>, vector<128x32xf32>
    %106 = arith.truncf %105 : vector<128x32xf32> to vector<128x32xbf16>
    %c0_95 = arith.constant 0 : index
    %c0_96 = arith.constant 0 : index
    %c0_97 = arith.constant 0 : index
    %107 = vector.load %arg5[%c0_95, %c0_96, %c0_97] : memref<1x128x32xbf16, #tpu.memory_space<vmem>>, vector<1x128x32xbf16>
    %108 = vector.shape_cast %107 : vector<1x128x32xbf16> to vector<128x32xbf16>
    %109 = vector.shape_cast %106 : vector<128x32xbf16> to vector<1x128x32xbf16>
    tpu.vector_store %arg5[%c0_95, %c0_96, %c0_97], %109 {strides = array<i32>} : memref<1x128x32xbf16, #tpu.memory_space<vmem>>, vector<1x128x32xbf16>,
    %110 = tpu.iota {dimensions = array<i32: 0>} : vector<128x1xi32>
    %c16_i32_98 = arith.constant 16 : i32
    %c0_i32_99 = arith.constant 0 : i32
    %111 = arith.cmpi eq, %c16_i32_98, %c0_i32_99 : i32
    %c1_i32_100 = arith.constant 1 : i32
    %112 = arith.select %111, %c1_i32_100, %c16_i32_98 : i32
    %113 = vector.broadcast %112 : i32 to vector<128x1xi32>
    %114 = arith.remsi %110, %113 : vector<128x1xi32>
    %c0_i32_101 = arith.constant 0 : i32
    %115 = vector.broadcast %c0_i32_101 : i32 to vector<128x1xi32>
    %116 = arith.cmpi ne, %114, %115 : vector<128x1xi32>
    %c0_i32_102 = arith.constant 0 : i32
    %117 = vector.broadcast %c0_i32_102 : i32 to vector<128x1xi32>
    %118 = arith.cmpi slt, %114, %117 : vector<128x1xi32>
    %c0_i32_103 = arith.constant 0 : i32
    %119 = arith.cmpi slt, %112, %c0_i32_103 : i32
    %120 = vector.broadcast %119 : i1 to vector<128x1xi1>
    %121 = vector.broadcast %120 : vector<128x1xi1> to vector<128x1xi1>
    %122 = arith.xori %118, %121 : vector<128x1xi1>
    %123 = arith.andi %122, %116 : vector<128x1xi1>
    %124 = vector.broadcast %112 : i32 to vector<128x1xi32>
    %125 = arith.addi %114, %124 : vector<128x1xi32>
    %126 = arith.select %123, %125, %114 : vector<128x1xi1>, vector<128x1xi32>
    %c8_i32_104 = arith.constant 8 : i32
    %127 = vector.broadcast %c8_i32_104 : i32 to vector<128x1xi32>
    %128 = arith.cmpi slt, %126, %127 : vector<128x1xi32>
    %cst_105 = arith.constant 0.000000e+00 : f32
    %129 = vector.shape_cast %128 : vector<128x1xi1> to vector<128x1xi1>
    %130 = vector.broadcast %129 : vector<128x1xi1> to vector<128x32xi1>
    %131 = vector.broadcast %cst_105 : f32 to vector<128x32xf32>
    %132 = arith.select %130, %105, %131 : vector<128x32xi1>, vector<128x32xf32>
    %cst_106 = arith.constant dense<0.000000e+00> : vector<32xf32>
    %133 = vector.multi_reduction <add>, %132, %cst_106 [0] : vector<128x32xf32> to vector<32xf32>
    %134 = vector.shape_cast %133 : vector<32xf32> to vector<1x32xf32>
    %c0_107 = arith.constant 0 : index
    %c0_108 = arith.constant 0 : index
    %c0_109 = arith.constant 0 : index
    %135 = vector.load %arg6[%c0_107, %c0_108, %c0_109] : memref<1x2x32xf32, #tpu.memory_space<vmem>>, vector<1x1x32xf32>
    %136 = vector.shape_cast %135 : vector<1x1x32xf32> to vector<1x32xf32>
    %137 = vector.shape_cast %134 : vector<1x32xf32> to vector<1x1x32xf32>
    tpu.vector_store %arg6[%c0_107, %c0_108, %c0_109], %137 {strides = array<i32>} : memref<1x2x32xf32, #tpu.memory_space<vmem>>, vector<1x1x32xf32>,
    %138 = arith.mulf %132, %132 : vector<128x32xf32>
    %cst_110 = arith.constant dense<0.000000e+00> : vector<32xf32>
    %139 = vector.multi_reduction <add>, %138, %cst_110 [0] : vector<128x32xf32> to vector<32xf32>
    %140 = vector.shape_cast %139 : vector<32xf32> to vector<1x32xf32>
    %c0_111 = arith.constant 0 : index
    %c1_112 = arith.constant 1 : index
    %c0_113 = arith.constant 0 : index
    %141 = vector.load %arg6[%c0_111, %c1_112, %c0_113] : memref<1x2x32xf32, #tpu.memory_space<vmem>>, vector<1x1x32xf32>
    %142 = vector.shape_cast %141 : vector<1x1x32xf32> to vector<1x32xf32>
    %143 = vector.shape_cast %140 : vector<1x32xf32> to vector<1x1x32xf32>
    tpu.vector_store %arg6[%c0_111, %c1_112, %c0_113], %143 {strides = array<i32>} : memref<1x2x32xf32, #tpu.memory_space<vmem>>, vector<1x1x32xf32>,
    return
  }
  func.func @transform_0(%arg0: i32, %arg1: i32) -> (i32, i32, i32) {
    %c0_i32 = arith.constant 0 : i32
    %c0_i32_0 = arith.constant 0 : i32
    return %arg0, %c0_i32, %arg1 : i32, i32, i32
  }
  func.func @transform_1(%arg0: i32, %arg1: i32) -> (i32, i32) {
    %c0_i32 = arith.constant 0 : i32
    %c0_i32_0 = arith.constant 0 : i32
    return %c0_i32, %arg1 : i32, i32
  }
  func.func @transform_2(%arg0: i32, %arg1: i32) -> (i32, i32, i32, i32) {
    %c0_i32 = arith.constant 0 : i32
    %c0_i32_0 = arith.constant 0 : i32
    %c0_i32_1 = arith.constant 0 : i32
    %c0_i32_2 = arith.constant 0 : i32
    return %arg1, %c0_i32, %c0_i32_0, %c0_i32_1 : i32, i32, i32, i32
  }
  func.func @transform_3(%arg0: i32, %arg1: i32) -> (i32, i32, i32) {
    %c0_i32 = arith.constant 0 : i32
    %c0_i32_0 = arith.constant 0 : i32
    return %arg0, %c0_i32, %arg1 : i32, i32, i32
  }
  func.func @transform_4(%arg0: i32, %arg1: i32) -> (i32, i32, i32) {
    %c0_i32 = arith.constant 0 : i32
    %c0_i32_0 = arith.constant 0 : i32
    return %arg0, %c0_i32, %arg1 : i32, i32, i32
  }
}

module attributes {stable_mosaic.version = 11 : i64} {
  func.func @finalize_kernel(%arg0: i32, %arg1: i32, %arg2: memref<1x8x16x32xbf16, #tpu.memory_space<vmem>>, %arg3: memref<1x8x16x32xbf16, #tpu.memory_space<vmem>>, %arg4: memref<2x32xf32, #tpu.memory_space<vmem>>, %arg5: memref<2x32xf32, #tpu.memory_space<vmem>>, %arg6: memref<1x8x8x32xf32, #tpu.memory_space<vmem>>) attributes {dimension_semantics = [#tpu.dimension_semantics<parallel>, #tpu.dimension_semantics<parallel>], iteration_bounds = array<i64: 2, 1>, scalar_prefetch = 0 : i64, scratch_operands = 0 : i64, tpu.core_type = #tpu.core_type<tc>, window_params = [{transform_indices = @transform_0, window_bounds = array<i64: 1, 8, 16, 32>}, {transform_indices = @transform_1, window_bounds = array<i64: 1, 8, 16, 32>}, {pipeline_mode = #tpu.pipeline_mode<synchronous>, transform_indices = @transform_2, window_bounds = array<i64: 2, 32>}, {pipeline_mode = #tpu.pipeline_mode<synchronous>, transform_indices = @transform_3, window_bounds = array<i64: 2, 32>}, {transform_indices = @transform_4, window_bounds = array<i64: 1, 8, 8, 32>}]} {
    %c0 = arith.constant 0 : index
    %c0_0 = arith.constant 0 : index
    %c0_1 = arith.constant 0 : index
    %c0_2 = arith.constant 0 : index
    %0 = vector.load %arg2[%c0, %c0_0, %c0_1, %c0_2] : memref<1x8x16x32xbf16, #tpu.memory_space<vmem>>, vector<1x8x16x32xbf16>
    %1 = vector.shape_cast %0 : vector<1x8x16x32xbf16> to vector<8x16x32xbf16>
    %2 = arith.extf %1 : vector<8x16x32xbf16> to vector<8x16x32xf32>
    %3 = vector.extract_strided_slice %2 {offsets = [0, 0, 0], sizes = [8, 8, 32], strides = [1, 1, 1]} : vector<8x16x32xf32> to vector<8x8x32xf32>
    %c0_3 = arith.constant 0 : index
    %c0_4 = arith.constant 0 : index
    %4 = vector.load %arg4[%c0_3, %c0_4] : memref<2x32xf32, #tpu.memory_space<vmem>>, vector<1x32xf32>
    %5 = vector.shape_cast %4 : vector<1x32xf32> to vector<32xf32>
    %6 = vector.shape_cast %5 : vector<32xf32> to vector<1x1x32xf32>
    %7 = vector.broadcast %6 : vector<1x1x32xf32> to vector<8x8x32xf32>
    %8 = arith.mulf %3, %7 : vector<8x8x32xf32>
    %c1 = arith.constant 1 : index
    %c0_5 = arith.constant 0 : index
    %9 = vector.load %arg4[%c1, %c0_5] : memref<2x32xf32, #tpu.memory_space<vmem>>, vector<1x32xf32>
    %10 = vector.shape_cast %9 : vector<1x32xf32> to vector<32xf32>
    %11 = vector.shape_cast %10 : vector<32xf32> to vector<1x1x32xf32>
    %12 = vector.broadcast %11 : vector<1x1x32xf32> to vector<8x8x32xf32>
    %13 = arith.addf %8, %12 : vector<8x8x32xf32>
    %cst = arith.constant 0.000000e+00 : f32
    %14 = vector.broadcast %cst : f32 to vector<8x8x32xf32>
    %15 = arith.maximumf %13, %14 : vector<8x8x32xf32>
    %c0_6 = arith.constant 0 : index
    %c0_7 = arith.constant 0 : index
    %c0_8 = arith.constant 0 : index
    %c0_9 = arith.constant 0 : index
    %16 = vector.load %arg3[%c0_6, %c0_7, %c0_8, %c0_9] : memref<1x8x16x32xbf16, #tpu.memory_space<vmem>>, vector<1x8x16x32xbf16>
    %17 = vector.shape_cast %16 : vector<1x8x16x32xbf16> to vector<8x16x32xbf16>
    %18 = arith.extf %17 : vector<8x16x32xbf16> to vector<8x16x32xf32>
    %19 = vector.extract_strided_slice %18 {offsets = [0, 0, 0], sizes = [8, 8, 32], strides = [1, 1, 1]} : vector<8x16x32xf32> to vector<8x8x32xf32>
    %c0_10 = arith.constant 0 : index
    %c0_11 = arith.constant 0 : index
    %20 = vector.load %arg5[%c0_10, %c0_11] : memref<2x32xf32, #tpu.memory_space<vmem>>, vector<1x32xf32>
    %21 = vector.shape_cast %20 : vector<1x32xf32> to vector<32xf32>
    %22 = vector.shape_cast %21 : vector<32xf32> to vector<1x1x32xf32>
    %23 = vector.broadcast %22 : vector<1x1x32xf32> to vector<8x8x32xf32>
    %24 = arith.mulf %19, %23 : vector<8x8x32xf32>
    %c1_12 = arith.constant 1 : index
    %c0_13 = arith.constant 0 : index
    %25 = vector.load %arg5[%c1_12, %c0_13] : memref<2x32xf32, #tpu.memory_space<vmem>>, vector<1x32xf32>
    %26 = vector.shape_cast %25 : vector<1x32xf32> to vector<32xf32>
    %27 = vector.shape_cast %26 : vector<32xf32> to vector<1x1x32xf32>
    %28 = vector.broadcast %27 : vector<1x1x32xf32> to vector<8x8x32xf32>
    %29 = arith.addf %24, %28 : vector<8x8x32xf32>
    %30 = arith.addf %15, %29 : vector<8x8x32xf32>
    %cst_14 = arith.constant 0.000000e+00 : f32
    %31 = vector.broadcast %cst_14 : f32 to vector<8x8x32xf32>
    %32 = arith.maximumf %30, %31 : vector<8x8x32xf32>
    %c0_15 = arith.constant 0 : index
    %c0_16 = arith.constant 0 : index
    %c0_17 = arith.constant 0 : index
    %c0_18 = arith.constant 0 : index
    %33 = vector.load %arg6[%c0_15, %c0_16, %c0_17, %c0_18] : memref<1x8x8x32xf32, #tpu.memory_space<vmem>>, vector<1x8x8x32xf32>
    %34 = vector.shape_cast %33 : vector<1x8x8x32xf32> to vector<8x8x32xf32>
    %35 = vector.shape_cast %32 : vector<8x8x32xf32> to vector<1x8x8x32xf32>
    tpu.vector_store %arg6[%c0_15, %c0_16, %c0_17, %c0_18], %35 {strides = array<i32>} : memref<1x8x8x32xf32, #tpu.memory_space<vmem>>, vector<1x8x8x32xf32>,
    return
  }
  func.func @transform_0(%arg0: i32, %arg1: i32) -> (i32, i32, i32, i32) {
    %c0_i32 = arith.constant 0 : i32
    %c0_i32_0 = arith.constant 0 : i32
    %c0_i32_1 = arith.constant 0 : i32
    return %arg0, %arg1, %c0_i32, %c0_i32_0 : i32, i32, i32, i32
  }
  func.func @transform_1(%arg0: i32, %arg1: i32) -> (i32, i32, i32, i32) {
    %c0_i32 = arith.constant 0 : i32
    %c0_i32_0 = arith.constant 0 : i32
    %c0_i32_1 = arith.constant 0 : i32
    return %arg0, %arg1, %c0_i32, %c0_i32_0 : i32, i32, i32, i32
  }
  func.func @transform_2(%arg0: i32, %arg1: i32) -> (i32, i32) {
    %c0_i32 = arith.constant 0 : i32
    %c0_i32_0 = arith.constant 0 : i32
    %c0_i32_1 = arith.constant 0 : i32
    return %c0_i32, %c0_i32_0 : i32, i32
  }
  func.func @transform_3(%arg0: i32, %arg1: i32) -> (i32, i32) {
    %c0_i32 = arith.constant 0 : i32
    %c0_i32_0 = arith.constant 0 : i32
    %c0_i32_1 = arith.constant 0 : i32
    return %c0_i32, %c0_i32_0 : i32, i32
  }
  func.func @transform_4(%arg0: i32, %arg1: i32) -> (i32, i32, i32, i32) {
    %c0_i32 = arith.constant 0 : i32
    %c0_i32_0 = arith.constant 0 : i32
    %c0_i32_1 = arith.constant 0 : i32
    return %arg0, %arg1, %c0_i32, %c0_i32_0 : i32, i32, i32, i32
  }
}

</mosaic_0001>

<bundles_post_ra>
// kernel: resnext_block_forward.5
= control target key start
LH: loop header
LB: loop body
LE: loop exit
PB: predicated region body
PF: predicated region fallthrough
CT: control target
= control target key end

     0   :  { %9 = vsyncpa [#allocation3], 0  ;;  %s897_s0 = inlined_call_operand.vmem [shape: bf16[2,8,16,32], index: 0, kind: input, shape index: {}]   ;;  %s898_s1 = inlined_call_operand.vmem [shape: bf16[2,8,16,32], index: 1, kind: input, shape index: {}]   ;;  %s899_s2 = inlined_call_operand.vmem [shape: f32[2,32], index: 2, kind: input, shape index: {}]   ;;  %s900_s3 = inlined_call_operand.vmem [shape: f32[2,32], index: 3, kind: input, shape index: {}]   ;;  %s901_s4 = inlined_call_operand.hbm [shape: f32[2,8,8,32], index: 4, kind: output, shape index: {}]  }
   0x1   :  { %11 = vsyncpa [#allocation3 + $0x1], 0  ;;  %s692_s15 = smov 0   ;;  %s694_s16 = smov 0  }
   0x2   :  { %s696_s17 = smov 0   ;;  %s698_s18 = smov 0  }
   0x3   :  { %s700_s19 = smov 0   ;;  %s702_s20 = smov 0  }
   0x4 LB: > { %s505_s21 = sadd.s32 4294967295, %s662_s20   ;;  %s506_s22 = sadd.s32 4294967294, %s662_s20   ;;  %s662_s20 = sphi %s702_s20, %s17_s20   ;;  %s658_s19 = sphi %s700_s19, %s908_s19   ;;  %s654_s18 = sphi %s698_s18, %s907_s18   ;;  %s650_s17 = sphi %s696_s17, %s906_s17   ;;  %s646_s16 = sphi %s694_s16, %s905_s16   ;;  %s642_s15 = sphi %s692_s15, %s904_s15  }
   0x5   : > { %s29_s23 = sadd.s32 1, %s658_s19  ;;  %s136_s24 = sadd.s32 1, %s650_s17 }
   0x6   : > { %p31_p0 = scmp.ge.s32.totalorder %s29_s23, 2  ;;  %p146_p1 = scmp.ne.s32.totalorder %s650_s17, %s646_s16 }
   0x7   : > { %p147_p2 = scmp.eq.s32.totalorder %s505_s21, 1  ;;  %p152_p3 = scmp.ne.s32.totalorder %s646_s16, %s642_s15 }
   0x8   : > { %s910_s23 = smov (%p31_p0, %s29_s23), 0  ;;  %p153_p5 = scmp.eq.s32.totalorder %s506_s22, 1 }
   0x9   : > { %p732_p4 = por %p147_p2, %p146_p1  ;;  %s131_s26 = ssub.s32 %s658_s19, %s910_s23 }
   0xa   : > { %p509_p6 = scmp.ge.s32.totalorder %s662_s20, 1  ;;  %p134_p7 = scmp.eq.s32.totalorder %s131_s26, 0 }
   0xb   : > { %p739_p8 = por %p153_p5, %p152_p3  ;;  %p205_p9 = scmp.lt.s32.totalorder %s662_s20, 3 }
   0xc   : > { %s745_s28 = scalar_select %p134_p7, %s650_s17, %s136_s24  }
   0xd   : > { %p206_p10 = pnand %p509_p6, %p205_p9 }
   0xe   : > { %p247_p11 = scmp.lt.s32.totalorder (!%p206_p10), %s654_s18, 1  ;;  %v762_v0 = vld [vmem:[%s899_s2] ss:$0 sm:$0xff] (!%p206_p10)  ;;  %v776_v10 = vld [vmem:[%s899_s2 + $0x1] ss:$0 sm:$0xff] (!%p206_p10)  ;;  %vm377_vm0 = vcmask (!%p206_p10), 261120  }
   0xf   : > { %209 = sbr.rel (%p206_p10) target bundleno = 66 (0x42), region = 36  ;;  %v767_v1 = vld [vmem:[%s900_s3] ss:$0 sm:$0xff] (!%p206_p10)  ;;  %v781_v11 = vld [vmem:[%s900_s3 + $0x1] ss:$0 sm:$0xff] (!%p206_p10)  ;;  %s664_s12 = smov (!%p206_p10), [#allocation2]  }
  0x10   : > { %s588_s13 = sshll.u32 (!%p206_p10), %s664_s12, 4  ;;  %s589_s13 = int_to_ptr.vmem [resolvable:$false] %s588_s13 }
  0x11   : > { %s590_s14 = scalar_lea.vmem (!%p206_p10), %s589_s13, 2048 }
  0x16   : > { %s248_s29 = scalar_select %p247_p11, %s654_s18, 1 }
  0x18   : > { %s524_s30 = sshll.u32 %s248_s29, 6  ;;  %s243_s29 = sand.u32 1, %s646_s16  }
  0x19   : > { %s752_s7 = scalar_lea.vmem %s897_s0, %s524_s30  ;;  %s757_s10 = scalar_lea.vmem %s898_s1, %s524_s30 }
  0x1a   : > { %v269_v2 = vld [vmem:[%s752_s7] ss:$8 sps:$4 sm:$0xff]   ;;  %v271_v4 = vld [vmem:[%s752_s7 + $0x10] ss:$8 sps:$4 sm:$0xff]   ;;  %s510_s30 = sshll.u32 %s243_s29, 6 }
  0x1b   : > { %v319_v3 = vld [vmem:[%s757_s10] ss:$8 sps:$4 sm:$0xff]   ;;  %v277_v5 = vunpack.c.l.bf16 %v269_v2  ;;  %v278_v7 = vunpack.c.h.bf16 %v269_v2  ;;  %v321_v9 = vld [vmem:[%s757_s10 + $0x10] ss:$8 sps:$4 sm:$0xff]   ;;  %v279_v12 = vunpack.c.l.bf16 %v271_v4  ;;  %v280_v14 = vunpack.c.h.bf16 %v271_v4  ;;  %s814_s5 = scalar_lea.vmem [#allocation2], %s510_s30 }
  0x1c   : > { %v327_v6 = vunpack.c.l.bf16 %v319_v3  ;;  %v328_v8 = vunpack.c.h.bf16 %v319_v3  ;;  %v329_v13 = vunpack.c.l.bf16 %v321_v9  ;;  %v330_v15 = vunpack.c.h.bf16 %v321_v9  ;;  %v273_v24 = vld [vmem:[%s752_s7 + $0x20] ss:$8 sps:$4 sm:$0xff]   ;;  %v275_v50 = vld [vmem:[%s752_s7 + $0x30] ss:$8 sps:$4 sm:$0xff]   ;;  %s402_s6 = sshll.u32 %s814_s5, 4  ;;  %s526_s7 = sshll.u32 %s654_s18, 10  ;;  %s838_s6 = int_to_ptr.vmem [resolvable:$true] %s402_s6 }
  0x1d   : > { %v290_v16 = vmul.f32 %v762_v0, %v277_v5  ;;  %v291_v18 = vmul.f32 %v762_v0, %v278_v7  ;;  %v292_v20 = vmul.f32 %v762_v0, %v279_v12  ;;  %v293_v22 = vmul.f32 %v762_v0, %v280_v14  ;;  %v323_v25 = vld [vmem:[%s757_s10 + $0x20] ss:$8 sps:$4 sm:$0xff]   ;;  %v325_v51 = vld [vmem:[%s757_s10 + $0x30] ss:$8 sps:$4 sm:$0xff]   ;;  %s843_s10 = scalar_lea.hbm %s901_s4, %s526_s7  ;;  %s851_s18 = scalar_lea.sflag [#allocation3], %s243_s29 }
  0x1e   : > { %v340_v17 = vmul.f32 %v767_v1, %v327_v6  ;;  %v341_v19 = vmul.f32 %v767_v1, %v328_v8  ;;  %v342_v21 = vmul.f32 %v767_v1, %v329_v13  ;;  %v343_v23 = vmul.f32 %v767_v1, %v330_v15  ;;  %s584_s11 = scalar_lea.vmem %s838_s6, 1024  ;;  %p591_p1 = scmp.lt.s32.totalorder %s838_s6, %s589_s13 }
  0x1f   : > { %v303_v26 = vadd.f32 %v776_v10, %v290_v16  ;;  %v304_v28 = vadd.f32 %v776_v10, %v291_v18  ;;  %v305_v30 = vadd.f32 %v776_v10, %v292_v20  ;;  %v306_v32 = vadd.f32 %v776_v10, %v293_v22  ;;  %p585_p12 = scmp.ne.s32.totalorder %s838_s6, %s584_s11  ;;  %p592_p2 = scmp.lt.s32.totalorder %s590_s14, %s584_s11 }
  0x20   : > { %v353_v27 = vadd.f32 %v781_v11, %v340_v17  ;;  %v354_v29 = vadd.f32 %v781_v11, %v341_v19  ;;  %v355_v31 = vadd.f32 %v781_v11, %v342_v21  ;;  %v356_v33 = vadd.f32 %v781_v11, %v343_v23 }
  0x21   : > { %v311_v34 = vmax.f32 %v303_v26, 0.0  ;;  %v312_v35 = vmax.f32 %v304_v28, 0.0  ;;  %v281_v36 = vunpack.c.l.bf16 %v273_v24  ;;  %v331_v37 = vunpack.c.l.bf16 %v323_v25  ;;  %p586_p13 = pnand %p585_p12, %p732_p4  ;;  %p593_p3 = por %p592_p2, %p591_p1 }
  0x22   : > { %v313_v38 = vmax.f32 %v305_v30, 0.0  ;;  %v314_v39 = vmax.f32 %v306_v32, 0.0  ;;  %v282_v40 = vunpack.c.h.bf16 %v273_v24  ;;  %v332_v41 = vunpack.c.h.bf16 %v323_v25 }
  0x23   : > { %v361_v42 = vadd.f32 %v353_v27, %v311_v34  ;;  %v362_v43 = vadd.f32 %v354_v29, %v312_v35  ;;  %v294_v44 = vmul.f32 %v762_v0, %v281_v36  ;;  %v344_v45 = vmul.f32 %v767_v1, %v331_v37  ;;  %p587_p0 = pneg %p586_p13 }
  0x24   : > { %v363_v46 = vadd.f32 %v355_v31, %v313_v38  ;;  %v364_v47 = vadd.f32 %v356_v33, %v314_v39  ;;  %v295_v48 = vmul.f32 %v762_v0, %v282_v40  ;;  %v345_v49 = vmul.f32 %v767_v1, %v332_v41 }
  0x25   : > { %v369_v52 = vmax.f32 %v361_v42, 0.0  ;;  %v370_v53 = vmax.f32 %v362_v43, 0.0  ;;  %v307_v54 = vadd.f32 %v776_v10, %v294_v44  ;;  %v357_v55 = vadd.f32 %v781_v11, %v344_v45  ;;  %p594_p5 = pnand %p593_p3, %p587_p0 }
  0x26   : > { %v371_v56 = vmax.f32 %v363_v46, 0.0  ;;  %v372_v57 = vmax.f32 %v364_v47, 0.0  ;;  %v308_v58 = vadd.f32 %v776_v10, %v295_v48  ;;  %v358_v59 = vadd.f32 %v781_v11, %v345_v49 }
  0x27   : > { %378 = vst.msk [vmem:[%s814_s5] sm:$0xff] %vm377_vm0, %v369_v52  ;;  %379 = vst.msk [vmem:[%s814_s5 + $0x8] sm:$0xff] %vm377_vm0, %v370_v53  ;;  %v315_v60 = vmax.f32 %v307_v54, 0.0  ;;  %v283_v61 = vunpack.c.l.bf16 %v275_v50  ;;  %v333_v62 = vunpack.c.l.bf16 %v325_v51  ;;  %v284_v63 = vunpack.c.h.bf16 %v275_v50 }
  0x28   : > { %380 = vst.msk [vmem:[%s814_s5 + $0x10] sm:$0xff] %vm377_vm0, %v371_v56  ;;  %381 = vst.msk [vmem:[%s814_s5 + $0x18] sm:$0xff] %vm377_vm0, %v372_v57  ;;  %v316_v2 = vmax.f32 %v308_v58, 0.0  ;;  %v334_v3 = vunpack.c.h.bf16 %v325_v51 }
  0x29   : > { %v365_v4 = vadd.f32 %v357_v55, %v315_v60  ;;  %v296_v5 = vmul.f32 %v762_v0, %v283_v61  ;;  %v346_v6 = vmul.f32 %v767_v1, %v333_v62  ;;  %v297_v7 = vmul.f32 %v762_v0, %v284_v63 }
  0x2a   : > { %v366_v8 = vadd.f32 %v358_v59, %v316_v2  ;;  %v347_v9 = vmul.f32 %v767_v1, %v334_v3 }
  0x2b   : > { %v373_v12 = vmax.f32 %v365_v4, 0.0  ;;  %v309_v13 = vadd.f32 %v776_v10, %v296_v5  ;;  %v359_v14 = vadd.f32 %v781_v11, %v346_v6  ;;  %v310_v15 = vadd.f32 %v776_v10, %v297_v7 }
  0x2c   : > { %v374_v16 = vmax.f32 %v366_v8, 0.0  ;;  %v360_v17 = vadd.f32 %v781_v11, %v347_v9 }
  0x2d   : > { %382 = vst.msk [vmem:[%s814_s5 + $0x20] sm:$0xff] %vm377_vm0, %v373_v12  ;;  %v317_v0 = vmax.f32 %v309_v13, 0.0  ;;  %v318_v18 = vmax.f32 %v310_v15, 0.0 }
  0x2e   : > { %383 = vst.msk [vmem:[%s814_s5 + $0x28] sm:$0xff] %vm377_vm0, %v374_v16 }
  0x2f   : > { %v367_v1 = vadd.f32 %v359_v14, %v317_v0  ;;  %v368_v19 = vadd.f32 %v360_v17, %v318_v18 }
  0x31   : > { %v375_v10 = vmax.f32 %v367_v1, 0.0  ;;  %v376_v11 = vmax.f32 %v368_v19, 0.0 }
  0x33   : > { %384 = vst.msk [vmem:[%s814_s5 + $0x30] sm:$0xff] %vm377_vm0, %v375_v10  ;;  %385 = vst.msk [vmem:[%s814_s5 + $0x38] sm:$0xff] %vm377_vm0, %v376_v11 }
  0x34   : > { %597 = shalt.err (!%p594_p5)
}
  0x35   : > { %s598_s21 = scalar_lea.hbm %s843_s10, 1024  ;;  %s602_s26 = scalar_lea.hbm %s901_s4, 2048 }
  0x36   : > { %p599_p6 = scmp.ne.s32.totalorder %s843_s10, %s598_s21  ;;  %p603_p10 = scmp.lt.u32.totalorder %s843_s10, %s901_s4 }
  0x37   : > { %p604_p11 = scmp.lt.u32.totalorder %s602_s26, %s598_s21  ;;  %p606_p13 = scmp.lt.u32.totalorder %s598_s21, %s843_s10 }
  0x38   : > { %p600_p7 = pnand %p599_p6, %p732_p4 }
  0x39   : > { %p605_p12 = por %p604_p11, %p603_p10 }
  0x3a   : > { %p601_p9 = pneg %p600_p7 }
  0x3b   : > { %p607_p0 = por %p606_p13, %p605_p12 }
  0x3d   : > { %p608_p1 = pnand %p607_p0, %p601_p9 }
  0x3f   : > { %611 = shalt.err (!%p608_p1)
}
  0x40   : > { %s665_s5 = smov 128   ;;  %s666_s7 = smov 8  }
  0x41   : > { %527 = dma.vmem_to_hbm [thread:$0]  (%p732_p4), %s838_s6, 1024, %s843_s10, %s851_s18, %s665_s5, %s665_s5, %s666_s7  }
  0x42 PF: > { %p533_p2 = scmp.ge.s32.totalorder %s662_s20, 2  ;;  %s417_s8 = sand.u32 1, %s642_s15  }
  0x43   : > { %s418_s9 = scalar_lea.sflag [#allocation3], %s417_s8 }
  0x44   : > { %p530_p3 = pnand %p533_p2, %p739_p8 }
  0x46   : > { %637 = dma.done.wait (!%p530_p3), %s418_s9, 1024  }
  0x47   : > { %639 = vsyncadd (!%p530_p3), %s418_s9, 4294966272  ;;  %s17_s20 = sadd.s32 1, %s662_s20   ;;  %s904_s15 = smov %s646_s16 }
  0x48   : > { %p14_p5 = scmp.ge.s32.totalorder %s17_s20, 4   ;;  %s905_s16 = smov %s650_s17 }
  0x49   : > { %s906_s17 = smov %s745_s28  ;;  %s907_s18 = smov %s658_s19 }
  0x4a   : > { %s908_s19 = smov %s910_s23  ;;  %16 = sbr.rel (!%p14_p5) target bundleno = 4 (0x4), region = 74 }
  0x51   :  { %423 = vsyncpa [#allocation3], 1 }
  0x52   :  { %425 = vsyncpa [#allocation3 + $0x1], 1 }

// kernel: resnext_block_forward.3
= control target key start
LH: loop header
LB: loop body
LE: loop exit
PB: predicated region body
PF: predicated region fallthrough
CT: control target
= control target key end

     0   :  { %s4546_s21 = smov 0   ;;  %s4548_s22 = smov 0   ;;  %s5083_s0 = inlined_call_operand.vmem [shape: bf16[2,4,160,16], index: 0, kind: input, shape index: {}]   ;;  %s5084_s1 = inlined_call_operand.vmem [shape: bf16[9,16,32], index: 1, kind: input, shape index: {}]   ;;  %s5085_s2 = inlined_call_operand.vmem [shape: bf16[16,32], index: 2, kind: input, shape index: {}]   ;;  %s5086_s3 = inlined_call_operand.vmem [shape: bf16[2,184,32], index: 3, kind: output, shape index: {0}]   ;;  %s5087_s4 = inlined_call_operand.vmem [shape: f32[2,2,32], index: 4, kind: output, shape index: {1}]   ;;  %s5088_s5 = inlined_call_operand.vmem [shape: bf16[2,128,32], index: 5, kind: output, shape index: {2}]   ;;  %s5089_s6 = inlined_call_operand.vmem [shape: f32[2,2,32], index: 6, kind: output, shape index: {3}]  }
   0x1   :  { %s4550_s23 = smov 0  }
   0x2 LB: > { %s29_s24 = sadd.s32 1, %s4505_s22  ;;  %p3738_p0 = scmp.ge.s32.totalorder %s4509_s23, 1  ;;  %s4509_s23 = sphi %s4550_s23, %s17_s23   ;;  %s4505_s22 = sphi %s4548_s22, %s5091_s22   ;;  %s4501_s21 = sphi %s4546_s21, %s5090_s21  }
   0x3   : > { %p31_p1 = scmp.ge.s32.totalorder %s29_s24, 2  ;;  %p257_p2 = scmp.lt.s32.totalorder %s4509_s23, 3 }
   0x5   : > { %s5093_s24 = smov (%p31_p1, %s29_s24), 0  ;;  %p258_p3 = pnand %p3738_p0, %p257_p2 }
   0x6   : > { %v4394_v0 = vld [vmem:[%s5084_s1] sm:$0xff] (!%p258_p3)   ;;  %p320_p4 = scmp.lt.s32.totalorder (!%p258_p3), %s4501_s21, 1  ;;  %v4395_v1 = vld [vmem:[%s5084_s1 + $0x8] sm:$0xff] (!%p258_p3)   ;;  %v4398_v2 = vld [vmem:[%s5084_s1 + $0x10] sm:$0xff] (!%p258_p3)   ;;  %vm428_vm0 = vcmask (!%p258_p3), 130048   ;;  %vm550_vm2 = vcmask (!%p258_p3), 261120  }
   0x7   : > { %261 = sbr.rel (%p258_p3) target bundleno = 416 (0x1a0), region = 32  ;;  %4188 = vmatprep.subr.bf16.mxu0 (!%p258_p3), %v4394_v0  ;;  %4206 = vmatprep.subr.bf16.mxu1 (!%p258_p3), %v4395_v1  ;;  %v4405_v3 = vld [vmem:[%s5084_s1 + $0x18] sm:$0xff] (!%p258_p3)   ;;  %v4589_v6 = vld [vmem:[%s5084_s1 + $0x20] sm:$0xff] (!%p258_p3)   ;;  %v4596_v8 = vld [vmem:[%s5084_s1 + $0x28] sm:$0xff] (!%p258_p3)   ;;  %vm881_vm1 = vsmask.f32 (!%p258_p3), 7424 }
   0x8   : > { %4189 = vmatpush3.bf16.msra.mxu0 (!%p258_p3), %v4394_v0  ;;  %4207 = vmatpush3.bf16.msra.mxu1 (!%p258_p3), %v4395_v1  ;;  %v4652_v58 = vld [vmem:[%s5084_s1 + $0x30] sm:$0xff] (!%p258_p3)   ;;  %vm2739_vm3 = vcmask (!%p258_p3), 257024   ;;  %vm3066_vm4 = vcmask (!%p258_p3), 253952  }
   0x9   : > { %4224 = vmatprep.subr.bf16.mxu0 (!%p258_p3), %v4398_v2  ;;  %4242 = vmatprep.subr.bf16.mxu1 (!%p258_p3), %v4405_v3 }
   0xe   : > { %s5095_s21 = smov (!%p320_p4, %s4501_s21), 1 }
   0xf   : > { %s4368_s9 = smul.u32 320, %s5095_s21  ;;  %s4065_s29 = sshll.u32 %s5095_s21, 6 }
  0x10   : > { %s4929_s8 = scalar_lea.vmem %s5088_s5, %s4065_s29  ;;  %s3741_s13 = sshll.u32 %s5095_s21, 1 }
  0x11   : > { %s4582_s12 = scalar_lea.vmem %s5083_s0, %s4368_s9  ;;  %s4369_s9 = smul.u32 92, %s5095_s21 }
  0x12   : > { %v4396_v4 = vld [vmem:[%s4582_s12] sm:$0xff]   ;;  %v4397_v5 = vld [vmem:[%s4582_s12 + $0x50] sm:$0xff]   ;;  %v4399_v7 = vld [vmem:[%s4582_s12 + $0x8] sm:$0xff]   ;;  %s362_s16 = scalar_lea.vmem %s5089_s6, %s3741_s13  ;;  %s347_s19 = scalar_lea.vmem %s5087_s4, %s3741_s13 }
  0x13   : > { %4190 = vmatprep.mubr.msk.bf16.mxu0 %vm428_vm0, %v4396_v4  ;;  %4208 = vmatprep.mubr.msk.bf16.mxu1 %vm428_vm0, %v4397_v5  ;;  %v4400_v9 = vld [vmem:[%s4582_s12 + $0x58] sm:$0xff]   ;;  %v4401_v10 = vld [vmem:[%s4582_s12 + $0x10] sm:$0xff]   ;;  %v4402_v11 = vld [vmem:[%s4582_s12 + $0x60] sm:$0xff]  }
  0x14   : > { %4191 = vmatmul.mubr.msk.bf16.vlgmr.msra.gmra.mrb[0].mxu0 %vm428_vm0, %v4399_v7  ;;  %4209 = vmatmul.mubr.msk.bf16.vlgmr.msra.gmra.mrb[0].mxu1 %vm428_vm0, %v4400_v9  ;;  %v4403_v12 = vld [vmem:[%s4582_s12 + $0x18] sm:$0xff]   ;;  %v4404_v13 = vld [vmem:[%s4582_s12 + $0x68] sm:$0xff]   ;;  %v4406_v14 = vld [vmem:[%s4582_s12 + $0x20] sm:$0xff]  }
  0x15   : > { %4225 = vmatpush3.bf16.msra.mxu0 %v4398_v2  ;;  %4194 = vmatprep.mubr.msk.bf16.mxu0 %vm428_vm0, %v4401_v10  ;;  %v4407_v15 = vld [vmem:[%s4582_s12 + $0x70] sm:$0xff]   ;;  %v4408_v16 = vld [vmem:[%s4582_s12 + $0x28] sm:$0xff]   ;;  %v4409_v17 = vld [vmem:[%s4582_s12 + $0x78] sm:$0xff]  }
  0x16   : > { %4243 = vmatpush3.bf16.msra.mxu1 %v4405_v3  ;;  %4212 = vmatprep.mubr.msk.bf16.mxu1 %vm428_vm0, %v4402_v11  ;;  %v4410_v18 = vld [vmem:[%s4582_s12 + $0x30] sm:$0xff]   ;;  %v4414_v19 = vld [vmem:[%s4582_s12] sm:$0xff]   ;;  %v4415_v20 = vld [vmem:[%s4582_s12 + $0x8] sm:$0xff]  }
  0x17   : > { %4260 = vmatprep.subr.bf16.mxu0 %v4589_v6  ;;  %4278 = vmatprep.subr.bf16.mxu1 %v4596_v8  ;;  %v4411_v21 = vld [vmem:[%s4582_s12 + $0x80] sm:$0xff]   ;;  %v883_v22 = vshrl.u32 %v4414_v19, 16  ;;  %v885_v23 = vshll.u32 %v4414_v19, 16  ;;  %v890_v24 = vshll.u32 %v4415_v20, 16  ;;  %v4418_v26 = vld [vmem:[%s4582_s12 + $0x10] sm:$0xff]   ;;  %v4412_v27 = vld [vmem:[%s4582_s12 + $0x38] sm:$0xff]  }
  0x18   : > { %v4420_v30 = vld [vmem:[%s4582_s12 + $0x18] sm:$0xff]   ;;  %v4413_v31 = vld [vmem:[%s4582_s12 + $0x88] sm:$0xff]   ;;  %v894_v32 = vshrl.u32 %v4415_v20, 16  ;;  %v898_v33 = vshll.u32 %v4418_v26, 16  ;;  %v4416_v35 = vld [vmem:[%s4582_s12 + $0xa0] sm:$0xff]   ;;  %v902_v36 = vshrl.u32 %v4418_v26, 16 }
  0x19   : > { %v887_v25 = vrot.slane %v885_v23, 1  ;;  %v892_v28 = vrot.slane %v890_v24, 1  ;;  %v906_v37 = vshll.u32 %v4420_v30, 16  ;;  %v4422_v38 = vld [vmem:[%s4582_s12 + $0x20] sm:$0xff]   ;;  %v4425_v41 = vld [vmem:[%s4582_s12 + $0x28] sm:$0xff]   ;;  %v4421_v47 = vld [vmem:[%s4582_s12 + $0xb0] sm:$0xff]  }
  0x1a   : > { %v900_v40 = vrot.slane %v898_v33, 1  ;;  %v914_v44 = vshll.u32 %v4422_v38, 16  ;;  %v4419_v46 = vld [vmem:[%s4582_s12 + $0xa8] sm:$0xff]   ;;  %v910_v48 = vshrl.u32 %v4420_v30, 16  ;;  %v918_v49 = vshrl.u32 %v4422_v38, 16  ;;  %v4427_v53 = vld [vmem:[%s4582_s12 + $0x30] sm:$0xff]  }
  0x1b   : > { %v888_v29 = vor.u32 %v887_v25, %v883_v22  ;;  %v896_v39 = vor.u32 %v894_v32, %v892_v28  ;;  %v908_v43 = vrot.slane %v906_v37, 1  ;;  %v922_v50 = vshll.u32 %v4425_v41, 16  ;;  %v4429_v55 = vld [vmem:[%s4582_s12 + $0x38] sm:$0xff]   ;;  %v4426_v62 = vld [vmem:[%s4582_s12 + $0xc0] sm:$0xff]   ;;  %v4438_v23 = vld [vmem:[%s4582_s12 + $0xb0] sm:$0xff]  }
  0x1c   : > { %4195 = vmatmul.mubr.msk.bf16.gmra.mrb[4].mxu0 %vm428_vm0, %v4403_v12  ;;  %4213 = vmatmul.mubr.msk.bf16.gmra.mrb[4].mxu1 %vm428_vm0, %v4404_v13  ;;  %v904_v42 = vor.u32 %v902_v36, %v900_v40  ;;  %v916_v52 = vrot.slane %v914_v44, 1  ;;  %v930_v59 = vshll.u32 %v4427_v53, 16  ;;  %v4423_v61 = vld [vmem:[%s4582_s12 + $0xb8] sm:$0xff]   ;;  %v926_v63 = vshrl.u32 %v4425_v41, 16  ;;  %v4434_v3 = vld [vmem:[%s4582_s12 + $0xa0] sm:$0xff]   ;;  %v4428_v12 = vld [vmem:[%s4582_s12 + $0xc8] sm:$0xff]  }
  0x1d   : > { %4198 = vmatprep.mubr.msk.bf16.mxu0 %vm428_vm0, %v4406_v14  ;;  %4216 = vmatprep.mubr.msk.bf16.mxu1 %vm428_vm0, %v4407_v15  ;;  %v893_v34 = vsel %vm881_vm1, %v888_v29, %v892_v28  ;;  %v901_v45 = vsel %vm881_vm1, %v896_v39, %v900_v40  ;;  %v912_v54 = vor.u32 %v910_v48, %v908_v43  ;;  %v924_v57 = vrot.slane %v922_v50, 1  ;;  %v4431_v4 = vld [vmem:[%s4582_s12 + $0x40] ss:$0 sps:$4 sm:$0x11]   ;;  %v4443_v11 = vld [vmem:[%s5084_s1 + $0x38] sm:$0xff]   ;;  %v4433_v29 = vld [vmem:[%s4582_s12 + $0xf0] sm:$0xff]  }
  0x1e   : > { %v909_v51 = vsel %vm881_vm1, %v904_v42, %v908_v43  ;;  %v920_v56 = vor.u32 %v918_v49, %v916_v52  ;;  %v938_v0 = vshll.u32 %v4429_v55, 16  ;;  %v934_v2 = vshrl.u32 %v4427_v53, 16  ;;  %v4440_v26 = vld [vmem:[%s4582_s12 + $0xb8] sm:$0xff]   ;;  %v4442_v36 = vld [vmem:[%s4582_s12 + $0xc0] sm:$0xff]   ;;  %v4445_v41 = vld [vmem:[%s4582_s12 + $0xc8] sm:$0xff]  }
  0x1f   : > { %v917_v60 = vsel %vm881_vm1, %v912_v54, %v916_v52  ;;  %v932_v5 = vrot.slane %v930_v59, 1  ;;  %v1661_v10 = vshll.u32 %v4434_v3, 16  ;;  %v942_v14 = vshrl.u32 %v4429_v55, 16  ;;  %v4437_v38 = vld [vmem:[%s4582_s12 + $0xf8] sm:$0xff]   ;;  %v4439_v42 = vld [vmem:[%s4582_s12 + $0x100] sm:$0xff]   ;;  %v4441_v53 = vld [vmem:[%s4582_s12 + $0x108] sm:$0xff]  }
  0x20   : > { %v925_v1 = vsel %vm881_vm1, %v920_v56, %v924_v57  ;;  %v940_v7 = vrot.slane %v938_v0, 1  ;;  %v946_v15 = vshll.u32 %v4431_v4, 16  ;;  %v1674_v30 = vshll.u32 %v4438_v23, 16  ;;  %v4454_v50 = vld [vmem:[%s5084_s1 + $0x40] sm:$0xff]   ;;  %v4444_v59 = vld [vmem:[%s4582_s12 + $0x110] sm:$0xff]  }
  0x21   : > { %v936_v9 = vor.u32 %v934_v2, %v932_v5  ;;  %v1663_v19 = vrot.slane %v1661_v10, 1  ;;  %v1678_v33 = vshrl.u32 %v4438_v23, 16  ;;  %v1686_v43 = vshrl.u32 %v4440_v26, 16  ;;  %v4460_v23 = vld [vmem:[%s4582_s12 + $0x70] sm:$0xff]  }
  0x22   : > { %v948_v22 = vrot.slane %v946_v15, 1  ;;  %v1690_v44 = vshll.u32 %v4442_v36, 16  ;;  %v1698_v49 = vshll.u32 %v4445_v41, 16  ;;  %v4452_v15 = vld [vmem:[%s4582_s12 + $0x8] sm:$0xff]  }
  0x24   : > { %4199 = vmatmul.mubr.msk.bf16.gmra.mrb[8].mxu0 %vm428_vm0, %v4408_v16  ;;  %4217 = vmatmul.mubr.msk.bf16.gmra.mrb[8].mxu1 %vm428_vm0, %v4409_v17  ;;  %v941_v16 = vsel %vm881_vm1, %v936_v9, %v940_v7  ;;  %v4430_v17 = vld [vmem:[%s4582_s12 + $0xd0] sm:$0xff]   ;;  %v1692_v52 = vrot.slane %v1690_v44, 1  ;;  %v1700_v56 = vrot.slane %v1698_v49, 1  ;;  %v4477_v49 = vld [vmem:[%s4582_s12 + $0x28] sm:$0xff]  }
  0x25   : > { %4202 = vmatprep.mubr.msk.bf16.mxu0 %vm428_vm0, %v4410_v18  ;;  %4220 = vmatprep.mubr.msk.bf16.mxu1 %vm428_vm0, %v4411_v21  ;;  %v1659_v18 = vshrl.u32 %v4434_v3, 16  ;;  %v944_v21 = vor.u32 %v942_v14, %v940_v7  ;;  %v4451_v3 = vld [vmem:[%s4582_s12 + $0xe0] ss:$0 sps:$4 sm:$0x11]   ;;  %v4450_v14 = vld [vmem:[%s4582_s12 + $0x128] sm:$0xff]  }
  0x26   : > { %v4448_v7 = vld [vmem:[%s4582_s12 + $0x120] sm:$0xff]   ;;  %v1722_v10 = vshll.u32 %v4451_v3, 16 }
  0x27   : > { %v1664_v24 = vor.u32 %v1663_v19, %v1659_v18  ;;  %v949_v28 = vsel %vm881_vm1, %v944_v21, %v948_v22  ;;  %v4455_v18 = vld [vmem:[%s4582_s12 + $0x10] sm:$0xff]   ;;  %v4456_v19 = vld [vmem:[%s4582_s12 + $0x60] sm:$0xff]   ;;  %v4458_v21 = vld [vmem:[%s4582_s12 + $0x68] sm:$0xff]  }
  0x28   : > { %v4459_v22 = vld [vmem:[%s4582_s12 + $0x20] sm:$0xff]  }
  0x29   : > { %v4483_v3 = vld [vmem:[%s4582_s12 + $0x40] sm:$0xff]  }
  0x2c   : > { %4203 = vmatmul.mubr.msk.bf16.gmra.mrb[12].mxu0 %vm428_vm0, %v4412_v27  ;;  %4221 = vmatmul.mubr.msk.bf16.gmra.mrb[12].mxu1 %vm428_vm0, %v4413_v31  ;;  %v4432_v27 = vld [vmem:[%s4582_s12 + $0xd8] sm:$0xff]  }
  0x2d   : > { %4226 = vmatprep.mubr.msk.bf16.mxu0 %vm428_vm0, %v893_v34  ;;  %4244 = vmatprep.mubr.msk.bf16.mxu1 %vm428_vm0, %v4416_v35  ;;  %v1682_v34 = vshll.u32 %v4440_v26, 16  ;;  %v1676_v35 = vrot.slane %v1674_v30, 1  ;;  %v4470_v26 = vld [vmem:[%s4582_s12 + $0x8] sm:$0xff]   ;;  %v4465_v30 = vld [vmem:[%s4582_s12 + $0x80] sm:$0xff]  }
  0x2f   : > { %v1680_v39 = vor.u32 %v1678_v33, %v1676_v35  ;;  %v1684_v40 = vrot.slane %v1682_v34, 1  ;;  %v2433_v33 = vshrl.u32 %v4470_v26, 16 }
  0x31   : > { %v1685_v48 = vsel %vm881_vm1, %v1680_v39, %v1684_v40  ;;  %v1688_v54 = vor.u32 %v1686_v43, %v1684_v40  ;;  %v4475_v39 = vld [vmem:[%s4582_s12 + $0x20] sm:$0xff]  }
  0x32   : > { %v4468_v40 = vld [vmem:[%s4582_s12 + $0x40] sm:$0xff]  }
  0x34   : > { %4227 = vmatmul.mubr.msk.bf16.vlgmr.msra.gmra.mrb[16].mxu0 %vm428_vm0, %v901_v45  ;;  %4245 = vmatmul.mubr.msk.bf16.vlgmr.msra.gmra.mrb[16].mxu1 %vm428_vm0, %v4419_v46  ;;  %v1694_v46 = vshrl.u32 %v4442_v36, 16  ;;  %v4473_v36 = vld [vmem:[%s4582_s12 + $0x18] sm:$0xff]  }
  0x35   : > { %4261 = vmatpush3.bf16.msra.mxu0 %v4589_v6  ;;  %4230 = vmatprep.mubr.msk.bf16.mxu0 %vm428_vm0, %v909_v51  ;;  %v928_v6 = vor.u32 %v926_v63, %v924_v57  ;;  %v4461_v51 = vld [vmem:[%s5085_s2] sm:$0xff]   ;;  %v4449_v57 = vld [vmem:[%s4582_s12 + $0xd8] sm:$0xff]  }
  0x36   : > { %4248 = vmatprep.mubr.msk.bf16.mxu1 %vm428_vm0, %v4421_v47  ;;  %4279 = vmatpush3.bf16.msra.mxu1 %v4596_v8  ;;  %v4435_v8 = vld [vmem:[%s4582_s12 + $0xa8] sm:$0xff]   ;;  %v4447_v47 = vld [vmem:[%s4582_s12 + $0xd0] sm:$0xff]   ;;  %v1696_v55 = vor.u32 %v1694_v46, %v1692_v52  ;;  %v1714_v0 = vshll.u32 %v4449_v57, 16  ;;  %v1718_v9 = vshrl.u32 %v4449_v57, 16  ;;  %v2452_v46 = vshrl.u32 %v4473_v36, 16 }
  0x37   : > { %4296 = vmatprep.subr.bf16.mxu0 %v4652_v58  ;;  %4314 = vmatprep.subr.bf16.mxu1 %v4443_v11  ;;  %v933_v13 = vsel %vm881_vm1, %v928_v6, %v932_v5  ;;  %v1666_v20 = vshll.u32 %v4435_v8, 16  ;;  %v1670_v31 = vshrl.u32 %v4435_v8, 16  ;;  %v1710_v63 = vshrl.u32 %v4447_v47, 16  ;;  %v4446_v6 = vld [vmem:[%s4582_s12 + $0x118] sm:$0xff]  }
  0x38   : > { %v1716_v5 = vrot.slane %v1714_v0, 1  ;;  %v2460_v57 = vshrl.u32 %v4475_v39, 16 }
  0x39   : > { %v1668_v25 = vrot.slane %v1666_v20, 1  ;;  %v4457_v20 = vld [vmem:[%s4582_s12 + $0x18] sm:$0xff]  }
  0x3b   : > { %v1669_v32 = vsel %vm881_vm1, %v1664_v24, %v1668_v25  ;;  %v1672_v37 = vor.u32 %v1670_v31, %v1668_v25  ;;  %v4462_v24 = vld [vmem:[%s4582_s12 + $0x28] sm:$0xff]   ;;  %v4463_v25 = vld [vmem:[%s4582_s12 + $0x78] sm:$0xff]  }
  0x3c   : > { %4231 = vmatmul.mubr.msk.bf16.gmra.mrb[20].mxu0 %vm428_vm0, %v917_v60  ;;  %4249 = vmatmul.mubr.msk.bf16.gmra.mrb[20].mxu1 %vm428_vm0, %v4423_v61  ;;  %v1706_v60 = vshll.u32 %v4447_v47, 16  ;;  %v1702_v61 = vshrl.u32 %v4445_v41, 16  ;;  %v4466_v31 = vld [vmem:[%s4582_s12 + $0x38] sm:$0xff]   ;;  %v2448_v41 = vshll.u32 %v4473_v36, 16  ;;  %v2456_v47 = vshll.u32 %v4475_v39, 16 }
  0x3d   : > { %4234 = vmatprep.mubr.msk.bf16.mxu0 %vm428_vm0, %v925_v1  ;;  %4252 = vmatprep.mubr.msk.bf16.mxu1 %vm428_vm0, %v4426_v62  ;;  %v1677_v45 = vsel %vm881_vm1, %v1672_v37, %v1676_v35  ;;  %v1701_v62 = vsel %vm881_vm1, %v1696_v55, %v1700_v56 }
  0x3e   : > { %v1708_v1 = vrot.slane %v1706_v60, 1  ;;  %v1704_v2 = vor.u32 %v1702_v61, %v1700_v56  ;;  %v4474_v56 = vld [vmem:[%s4582_s12 + $0xf8] sm:$0xff]   ;;  %v4476_v60 = vld [vmem:[%s4582_s12 + $0x100] sm:$0xff]  }
  0x40   : > { %v1712_v4 = vor.u32 %v1710_v63, %v1708_v1  ;;  %v1709_v8 = vsel %vm881_vm1, %v1704_v2, %v1708_v1  ;;  %v4481_v63 = vld [vmem:[%s4582_s12 + $0x38] sm:$0xff]  }
  0x44   : > { %4235 = vmatmul.mubr.msk.bf16.gmra.mrb[24].mxu0 %vm428_vm0, %v933_v13  ;;  %4253 = vmatmul.mubr.msk.bf16.gmra.mrb[24].mxu1 %vm428_vm0, %v4428_v12  ;;  %v1720_v12 = vor.u32 %v1718_v9, %v1716_v5  ;;  %v1724_v13 = vrot.slane %v1722_v10, 1  ;;  %v4480_v9 = vld [vmem:[%s4582_s12 + $0x110] sm:$0xff]   ;;  %v2484_v10 = vshrl.u32 %v4481_v63, 16 }
  0x45   : > { %4238 = vmatprep.mubr.msk.bf16.mxu0 %vm428_vm0, %v941_v16  ;;  %4256 = vmatprep.mubr.msk.bf16.mxu1 %vm428_vm0, %v4430_v17  ;;  %v4453_v17 = vld [vmem:[%s4582_s12 + $0x58] sm:$0xff]  }
  0x46   : > { %v1725_v16 = vsel %vm881_vm1, %v1720_v12, %v1724_v13 }
  0x4c   : > { %4239 = vmatmul.mubr.msk.bf16.gmra.mrb[28].mxu0 %vm428_vm0, %v949_v28  ;;  %4257 = vmatmul.mubr.msk.bf16.gmra.mrb[28].mxu1 %vm428_vm0, %v4432_v27  ;;  %v4471_v27 = vld [vmem:[%s4582_s12 + $0x10] sm:$0xff]   ;;  %v2435_v28 = vshll.u32 %v4470_v26, 16  ;;  %v4486_v26 = vld [vmem:[%s4582_s12 + $0x128] sm:$0xff]  }
  0x4d   : > { %4262 = vmatprep.mubr.msk.bf16.mxu0 %vm428_vm0, %v4433_v29  ;;  %4280 = vmatprep.mubr.msk.bf16.mxu1 %vm428_vm0, %v1669_v32  ;;  %v4464_v29 = vld [vmem:[%s4582_s12 + $0x30] sm:$0xff]   ;;  %v4467_v32 = vld [vmem:[%s4582_s12 + $0x88] sm:$0xff]   ;;  %v2440_v35 = vshll.u32 %v4471_v27, 16  ;;  %v2444_v43 = vshrl.u32 %v4471_v27, 16 }
  0x4e   : > { %v2437_v34 = vrot.slane %v2435_v28, 1 }
  0x50   : > { %v2438_v37 = vor.u32 %v2437_v34, %v2433_v33 }
  0x54   : > { %4263 = vmatmul.mubr.msk.bf16.vlgmr.msra.gmra.mrb[32].mxu0 %vm428_vm0, %v4437_v38  ;;  %4281 = vmatmul.mubr.msk.bf16.vlgmr.msra.gmra.mrb[32].mxu1 %vm428_vm0, %v1677_v45  ;;  %v2442_v38 = vrot.slane %v2440_v35, 1  ;;  %v4472_v45 = vld [vmem:[%s4582_s12 + $0xf0] sm:$0xff]  }
  0x55   : > { %4297 = vmatpush3.bf16.msra.mxu0 %v4652_v58  ;;  %4266 = vmatprep.mubr.msk.bf16.mxu0 %vm428_vm0, %v4439_v42  ;;  %v1693_v58 = vsel %vm881_vm1, %v1688_v54, %v1692_v52  ;;  %v4469_v42 = vld [vmem:[%s4582_s12 + $0x90] sm:$0xff]   ;;  %v2458_v52 = vrot.slane %v2456_v47, 1  ;;  %v2464_v54 = vshll.u32 %v4477_v49, 16 }
  0x56   : > { %4284 = vmatprep.mubr.msk.bf16.mxu1 %vm428_vm0, %v1685_v48  ;;  %4315 = vmatpush3.bf16.msra.mxu1 %v4443_v11  ;;  %v1717_v11 = vsel %vm881_vm1, %v1712_v4, %v1716_v5  ;;  %v2443_v44 = vsel %vm881_vm1, %v2438_v37, %v2442_v38  ;;  %v2450_v48 = vrot.slane %v2448_v41, 1  ;;  %v2480_v4 = vshll.u32 %v4481_v63, 16 }
  0x57   : > { %4332 = vmatprep.subr.bf16.mxu0 %v4454_v50  ;;  %4350 = vmatprep.subr.bf16.mxu1 %v4461_v51  ;;  %v2462_v0 = vor.u32 %v2460_v57, %v2458_v52 }
  0x58   : > { %v2482_v12 = vrot.slane %v2480_v4, 1 }
  0x5c   : > { %4267 = vmatmul.mubr.msk.bf16.gmra.mrb[36].mxu0 %vm428_vm0, %v4441_v53  ;;  %4285 = vmatmul.mubr.msk.bf16.gmra.mrb[36].mxu1 %vm428_vm0, %v1693_v58  ;;  %v4479_v53 = vld [vmem:[%s4582_s12 + $0x30] sm:$0xff]   ;;  %v2468_v58 = vshrl.u32 %v4477_v49, 16 }
  0x5d   : > { %4270 = vmatprep.mubr.msk.bf16.mxu0 %vm428_vm0, %v4444_v59  ;;  %4288 = vmatprep.mubr.msk.bf16.mxu1 %vm428_vm0, %v1701_v62  ;;  %v2472_v61 = vshll.u32 %v4479_v53, 16  ;;  %v2466_v62 = vrot.slane %v2464_v54, 1 }
  0x5f   : > { %v2470_v1 = vor.u32 %v2468_v58, %v2466_v62  ;;  %v2474_v2 = vrot.slane %v2472_v61, 1  ;;  %v2467_v5 = vsel %vm881_vm1, %v2462_v0, %v2466_v62 }
  0x64   : > { %4271 = vmatmul.mubr.msk.bf16.gmra.mrb[40].mxu0 %vm428_vm0, %v4446_v6  ;;  %4289 = vmatmul.mubr.msk.bf16.gmra.mrb[40].mxu1 %vm428_vm0, %v1709_v8  ;;  %v4478_v6 = vld [vmem:[%s4582_s12 + $0x108] sm:$0xff]   ;;  %v2475_v8 = vsel %vm881_vm1, %v2470_v1, %v2474_v2 }
  0x65   : > { %4274 = vmatprep.mubr.msk.bf16.mxu0 %vm428_vm0, %v4448_v7  ;;  %4292 = vmatprep.mubr.msk.bf16.mxu1 %vm428_vm0, %v1717_v11  ;;  %v2476_v7 = vshrl.u32 %v4479_v53, 16  ;;  %v2488_v11 = vshll.u32 %v4483_v3, 16 }
  0x67   : > { %v2478_v13 = vor.u32 %v2476_v7, %v2474_v2 }
  0x6c   : > { %4275 = vmatmul.mubr.msk.bf16.gmra.mrb[44].mxu0 %vm428_vm0, %v4450_v14  ;;  %4293 = vmatmul.mubr.msk.bf16.gmra.mrb[44].mxu1 %vm428_vm0, %v1725_v16  ;;  %v4485_v14 = vld [vmem:[%s4582_s12 + $0x48] ss:$0 sps:$4 sm:$0x11]   ;;  %v2490_v16 = vrot.slane %v2488_v11, 1 }
  0x6d   : > { %4298 = vmatprep.mubr.msk.bf16.mxu0 %vm428_vm0, %v4452_v15  ;;  %4316 = vmatprep.mubr.msk.bf16.mxu1 %vm428_vm0, %v4453_v17  ;;  %v2486_v15 = vor.u32 %v2484_v10, %v2482_v12  ;;  %v2483_v17 = vsel %vm881_vm1, %v2478_v13, %v2482_v12 }
  0x74   : > { %4299 = vmatmul.mubr.msk.bf16.vlgmr.msra.gmra.mrb[48].mxu0 %vm428_vm0, %v4455_v18  ;;  %4317 = vmatmul.mubr.msk.bf16.vlgmr.msra.gmra.mrb[48].mxu1 %vm428_vm0, %v4456_v19  ;;  %v4482_v18 = vld [vmem:[%s4582_s12 + $0x118] sm:$0xff]   ;;  %v2492_v19 = vshrl.u32 %v4483_v3, 16 }
  0x75   : > { %4333 = vmatpush3.bf16.msra.mxu0 %v4454_v50  ;;  %4302 = vmatprep.mubr.msk.bf16.mxu0 %vm428_vm0, %v4457_v20  ;;  %v2446_v50 = vor.u32 %v2444_v43, %v2442_v38  ;;  %v2496_v20 = vshll.u32 %v4485_v14, 16 }
  0x76   : > { %4320 = vmatprep.mubr.msk.bf16.mxu1 %vm428_vm0, %v4458_v21  ;;  %4351 = vmatpush3.bf16.msra.mxu1 %v4461_v51  ;;  %v2454_v51 = vor.u32 %v2452_v46, %v2450_v48  ;;  %v2491_v21 = vsel %vm881_vm1, %v2486_v15, %v2490_v16 }
  0x77   : > { %v2451_v55 = vsel %vm881_vm1, %v2446_v50, %v2450_v48 }
  0x78   : > { %v2459_v59 = vsel %vm881_vm1, %v2454_v51, %v2458_v52 }
  0x7c   : > { %4303 = vmatmul.mubr.msk.bf16.gmra.mrb[52].mxu0 %vm428_vm0, %v4459_v22  ;;  %4321 = vmatmul.mubr.msk.bf16.gmra.mrb[52].mxu1 %vm428_vm0, %v4460_v23  ;;  %v4484_v22 = vld [vmem:[%s4582_s12 + $0x120] sm:$0xff]   ;;  %v2494_v23 = vor.u32 %v2492_v19, %v2490_v16  ;;  %s4957_s12 = scalar_lea.vmem %s5086_s3, %s4369_s9 }
  0x7d   : > { %4306 = vmatprep.mubr.msk.bf16.mxu0 %vm428_vm0, %v4462_v24  ;;  %4324 = vmatprep.mubr.msk.bf16.mxu1 %vm428_vm0, %v4463_v25  ;;  %v2498_v24 = vrot.slane %v2496_v20, 1 }
  0x7f   : > { %v2499_v25 = vsel %vm881_vm1, %v2494_v23, %v2498_v24 }
  0x84   : > { %4307 = vmatmul.mubr.msk.bf16.gmra.mrb[56].mxu0 %vm428_vm0, %v4464_v29  ;;  %4325 = vmatmul.mubr.msk.bf16.gmra.mrb[56].mxu1 %vm428_vm0, %v4465_v30 }
  0x85   : > { %4310 = vmatprep.mubr.msk.bf16.mxu0 %vm428_vm0, %v4466_v31  ;;  %4328 = vmatprep.mubr.msk.bf16.mxu1 %vm428_vm0, %v4467_v32 }
  0x8c   : > { %4311 = vmatmul.mubr.msk.bf16.gmra.mrb[60].mxu0 %vm428_vm0, %v4468_v40  ;;  %4329 = vmatmul.mubr.msk.bf16.gmra.mrb[60].mxu1 %vm428_vm0, %v4469_v42 }
  0x8d   : > { %4334 = vmatprep.mubr.msk.bf16.mxu0 %vm428_vm0, %v2443_v44  ;;  %4352 = vmatprep.mubr.msk.bf16.mxu1 %vm428_vm0, %v4472_v45 }
  0x94   : > { %4335 = vmatmul.mubr.msk.bf16.vlgmr.msra.gmra.mrb[64].mxu0 %vm428_vm0, %v2451_v55  ;;  %4353 = vmatmul.mubr.msk.bf16.vlgmr.msra.gmra.mrb[64].mxu1 %vm428_vm0, %v4474_v56 }
  0x95   : > { %4338 = vmatprep.mubr.msk.bf16.mxu0 %vm428_vm0, %v2459_v59  ;;  %4356 = vmatprep.mubr.msk.bf16.mxu1 %vm428_vm0, %v4476_v60 }
  0x9c   : > { %4339 = vmatmul.mubr.msk.bf16.gmra.mrb[68].mxu0 %vm428_vm0, %v2467_v5  ;;  %4357 = vmatmul.mubr.msk.bf16.gmra.mrb[68].mxu1 %vm428_vm0, %v4478_v6 }
  0x9d   : > { %4342 = vmatprep.mubr.msk.bf16.mxu0 %vm428_vm0, %v2475_v8  ;;  %4360 = vmatprep.mubr.msk.bf16.mxu1 %vm428_vm0, %v4480_v9 }
  0xa4   : > { %4343 = vmatmul.mubr.msk.bf16.gmra.mrb[72].mxu0 %vm428_vm0, %v2483_v17  ;;  %4361 = vmatmul.mubr.msk.bf16.gmra.mrb[72].mxu1 %vm428_vm0, %v4482_v18 }
  0xa5   : > { %4346 = vmatprep.mubr.msk.bf16.mxu0 %vm428_vm0, %v2491_v21  ;;  %4364 = vmatprep.mubr.msk.bf16.mxu1 %vm428_vm0, %v4484_v22 }
  0xac   : > { %4347 = vmatmul.mubr.msk.bf16.gmra.mrb[76].mxu0 %vm428_vm0, %v2499_v25  ;;  %4365 = vmatmul.mubr.msk.bf16.gmra.mrb[76].mxu1 %vm428_vm0, %v4486_v26 }
  0xe7   : > { %v4192_v27 = vpop.f32.mrb[0].mxu0  ;;  %v4210_v29 = vpop.f32.mrb[0].mxu1 }
  0xe8   : > { %553 = vst.msk [vmem:[#allocation2 + $0x10] sm:$0xff] %vm550_vm2, %v4192_v27  ;;  %v487_v28 = vpop.f32.mrb[1].mxu0  ;;  %v707_v31 = vpop.f32.mrb[1].mxu1 }
  0xe9   : > { %551 = vst.msk [vmem:[#allocation2] sm:$0xff] %vm550_vm2, %v487_v28  ;;  %v4193_v30 = vpop.f32.mrb[2].mxu0  ;;  %v4211_v33 = vpop.f32.mrb[2].mxu1 }
  0xea   : > { %554 = vst.msk [vmem:[#allocation2 + $0x18] sm:$0xff] %vm550_vm2, %v4193_v30  ;;  %v490_v32 = vpop.f32.mrb[3].mxu0  ;;  %v710_v34 = vpop.f32.mrb[3].mxu1 }
  0xeb   : > { %552 = vst.msk [vmem:[#allocation2 + $0x8] sm:$0xff] %vm550_vm2, %v490_v32 }
  0xef   : > { %v569_v35 = vld [vmem:[#allocation2 + $0x10] sm:$0xff]  ;;  %v4196_v36 = vpop.f32.mrb[4].mxu0  ;;  %v4214_v40 = vpop.f32.mrb[4].mxu1 }
  0xf0   : > { %v772_v37 = vadd.f32 %v4210_v29, %v569_v35  ;;  %557 = vst.msk [vmem:[#allocation2 + $0x30] sm:$0xff] %vm550_vm2, %v4196_v36  ;;  %v567_v38 = vld [vmem:[#allocation2] sm:$0xff]  ;;  %v503_v39 = vpop.f32.mrb[5].mxu0  ;;  %v723_v44 = vpop.f32.mrb[5].mxu1 }
  0xf1   : > { %v770_v41 = vadd.f32 %v707_v31, %v567_v38  ;;  %555 = vst.msk [vmem:[#allocation2 + $0x20] sm:$0xff] %vm550_vm2, %v503_v39  ;;  %v570_v42 = vld [vmem:[#allocation2 + $0x18] sm:$0xff]  ;;  %v4197_v43 = vpop.f32.mrb[6].mxu0  ;;  %v4215_v48 = vpop.f32.mrb[6].mxu1 }
  0xf2   : > { %788 = vst.msk [vmem:[#allocation2 + $0x10] sm:$0xff] %vm550_vm2, %v772_v37  ;;  %v773_v45 = vadd.f32 %v4211_v33, %v570_v42  ;;  %558 = vst.msk [vmem:[#allocation2 + $0x38] sm:$0xff] %vm550_vm2, %v4197_v43  ;;  %v568_v46 = vld [vmem:[#allocation2 + $0x8] sm:$0xff]  ;;  %v506_v47 = vpop.f32.mrb[7].mxu0  ;;  %v726_v50 = vpop.f32.mrb[7].mxu1 }
  0xf3   : > { %786 = vst.msk [vmem:[#allocation2] sm:$0xff] %vm550_vm2, %v770_v41  ;;  %v771_v49 = vadd.f32 %v710_v34, %v568_v46  ;;  %556 = vst.msk [vmem:[#allocation2 + $0x28] sm:$0xff] %vm550_vm2, %v506_v47 }
  0xf4   : > { %789 = vst.msk [vmem:[#allocation2 + $0x18] sm:$0xff] %vm550_vm2, %v773_v45 }
  0xf5   : > { %787 = vst.msk [vmem:[#allocation2 + $0x8] sm:$0xff] %vm550_vm2, %v771_v49 }
  0xf7   : > { %v573_v51 = vld [vmem:[#allocation2 + $0x30] sm:$0xff]  ;;  %v4200_v52 = vpop.f32.mrb[8].mxu0  ;;  %v4218_v56 = vpop.f32.mrb[8].mxu1 }
  0xf8   : > { %v776_v53 = vadd.f32 %v4214_v40, %v573_v51  ;;  %561 = vst.msk [vmem:[#allocation2 + $0x50] sm:$0xff] %vm550_vm2, %v4200_v52  ;;  %v571_v54 = vld [vmem:[#allocation2 + $0x20] sm:$0xff]  ;;  %v519_v55 = vpop.f32.mrb[9].mxu0  ;;  %v739_v58 = vpop.f32.mrb[9].mxu1 }
  0xf9   : > { %v774_v57 = vadd.f32 %v723_v44, %v571_v54  ;;  %559 = vst.msk [vmem:[#allocation2 + $0x40] sm:$0xff] %vm550_vm2, %v519_v55  ;;  %v574_v59 = vld [vmem:[#allocation2 + $0x38] sm:$0xff]  ;;  %v4201_v60 = vpop.f32.mrb[10].mxu0  ;;  %v4219_v0 = vpop.f32.mrb[10].mxu1  ;;  %v804_v20 = vld [vmem:[#allocation2 + $0x10] sm:$0xff] }
  0xfa   : > { %792 = vst.msk [vmem:[#allocation2 + $0x30] sm:$0xff] %vm550_vm2, %v776_v53  ;;  %v777_v61 = vadd.f32 %v4215_v48, %v574_v59  ;;  %562 = vst.msk [vmem:[#allocation2 + $0x58] sm:$0xff] %vm550_vm2, %v4201_v60  ;;  %v572_v62 = vld [vmem:[#allocation2 + $0x28] sm:$0xff]  ;;  %v522_v63 = vpop.f32.mrb[11].mxu0  ;;  %v742_v2 = vpop.f32.mrb[11].mxu1  ;;  %v802_v25 = vld [vmem:[#allocation2] sm:$0xff] }
  0xfb   : > { %790 = vst.msk [vmem:[#allocation2 + $0x20] sm:$0xff] %vm550_vm2, %v774_v57  ;;  %v775_v1 = vadd.f32 %v726_v50, %v572_v62  ;;  %560 = vst.msk [vmem:[#allocation2 + $0x48] sm:$0xff] %vm550_vm2, %v522_v63  ;;  %v805_v31 = vld [vmem:[#allocation2 + $0x18] sm:$0xff] }
  0xfc   : > { %793 = vst.msk [vmem:[#allocation2 + $0x38] sm:$0xff] %vm550_vm2, %v777_v61  ;;  %v803_v37 = vld [vmem:[#allocation2 + $0x8] sm:$0xff] }
  0xfd   : > { %791 = vst.msk [vmem:[#allocation2 + $0x28] sm:$0xff] %vm550_vm2, %v775_v1 }
  0xff   : > { %v577_v3 = vld [vmem:[#allocation2 + $0x50] sm:$0xff]  ;;  %v4204_v4 = vpop.f32.mrb[12].mxu0  ;;  %v4222_v8 = vpop.f32.mrb[12].mxu1 }
 0x100   : > { %v780_v5 = vadd.f32 %v4218_v56, %v577_v3  ;;  %565 = vst.msk [vmem:[#allocation2 + $0x70] sm:$0xff] %vm550_vm2, %v4204_v4  ;;  %v575_v6 = vld [vmem:[#allocation2 + $0x40] sm:$0xff]  ;;  %v535_v7 = vpop.f32.mrb[13].mxu0  ;;  %v755_v12 = vpop.f32.mrb[13].mxu1 }
 0x101   : > { %v778_v9 = vadd.f32 %v739_v58, %v575_v6  ;;  %563 = vst.msk [vmem:[#allocation2 + $0x60] sm:$0xff] %vm550_vm2, %v535_v7  ;;  %v578_v10 = vld [vmem:[#allocation2 + $0x58] sm:$0xff]  ;;  %v4205_v11 = vpop.f32.mrb[14].mxu0  ;;  %v4223_v16 = vpop.f32.mrb[14].mxu1  ;;  %v808_v43 = vld [vmem:[#allocation2 + $0x30] sm:$0xff] }
 0x102   : > { %796 = vst.msk [vmem:[#allocation2 + $0x50] sm:$0xff] %vm550_vm2, %v780_v5  ;;  %v781_v13 = vadd.f32 %v4219_v0, %v578_v10  ;;  %566 = vst.msk [vmem:[#allocation2 + $0x78] sm:$0xff] %vm550_vm2, %v4205_v11  ;;  %v576_v14 = vld [vmem:[#allocation2 + $0x48] sm:$0xff]  ;;  %v538_v15 = vpop.f32.mrb[15].mxu0  ;;  %v758_v18 = vpop.f32.mrb[15].mxu1  ;;  %v806_v46 = vld [vmem:[#allocation2 + $0x20] sm:$0xff] }
 0x103   : > { %794 = vst.msk [vmem:[#allocation2 + $0x40] sm:$0xff] %vm550_vm2, %v778_v9  ;;  %v779_v17 = vadd.f32 %v742_v2, %v576_v14  ;;  %564 = vst.msk [vmem:[#allocation2 + $0x68] sm:$0xff] %vm550_vm2, %v538_v15  ;;  %v809_v51 = vld [vmem:[#allocation2 + $0x38] sm:$0xff] }
 0x104   : > { %797 = vst.msk [vmem:[#allocation2 + $0x58] sm:$0xff] %vm550_vm2, %v781_v13  ;;  %v807_v57 = vld [vmem:[#allocation2 + $0x28] sm:$0xff] }
 0x105   : > { %795 = vst.msk [vmem:[#allocation2 + $0x48] sm:$0xff] %vm550_vm2, %v779_v17 }
 0x107   : > { %v581_v19 = vld [vmem:[#allocation2 + $0x70] sm:$0xff]  ;;  %v4228_v21 = vpop.f32.mrb[16].mxu0  ;;  %v4246_v27 = vpop.f32.mrb[16].mxu1 }
 0x108   : > { %v784_v22 = vadd.f32 %v4222_v8, %v581_v19  ;;  %v579_v23 = vld [vmem:[#allocation2 + $0x60] sm:$0xff]  ;;  %v1079_v24 = vadd.f32 %v4228_v21, %v804_v20  ;;  %v1014_v26 = vpop.f32.mrb[17].mxu0  ;;  %v1249_v33 = vpop.f32.mrb[17].mxu1 }
 0x109   : > { %v782_v28 = vadd.f32 %v755_v12, %v579_v23  ;;  %v582_v29 = vld [vmem:[#allocation2 + $0x78] sm:$0xff]  ;;  %v1077_v30 = vadd.f32 %v1014_v26, %v802_v25  ;;  %v4229_v32 = vpop.f32.mrb[18].mxu0  ;;  %v4247_v39 = vpop.f32.mrb[18].mxu1  ;;  %v812_v3 = vld [vmem:[#allocation2 + $0x50] sm:$0xff] }
 0x10a   : > { %800 = vst.msk [vmem:[#allocation2 + $0x70] sm:$0xff] %vm550_vm2, %v784_v22  ;;  %1095 = vst.msk [vmem:[#allocation2 + $0x10] sm:$0xff] %vm550_vm2, %v1079_v24  ;;  %v785_v34 = vadd.f32 %v4223_v16, %v582_v29  ;;  %v580_v35 = vld [vmem:[#allocation2 + $0x68] sm:$0xff]  ;;  %v1080_v36 = vadd.f32 %v4229_v32, %v805_v31  ;;  %v1017_v38 = vpop.f32.mrb[19].mxu0  ;;  %v1252_v42 = vpop.f32.mrb[19].mxu1  ;;  %v810_v6 = vld [vmem:[#allocation2 + $0x40] sm:$0xff] }
 0x10b   : > { %798 = vst.msk [vmem:[#allocation2 + $0x60] sm:$0xff] %vm550_vm2, %v782_v28  ;;  %1093 = vst.msk [vmem:[#allocation2] sm:$0xff] %vm550_vm2, %v1077_v30  ;;  %v783_v40 = vadd.f32 %v758_v18, %v580_v35  ;;  %v1078_v41 = vadd.f32 %v1017_v38, %v803_v37  ;;  %v813_v11 = vld [vmem:[#allocation2 + $0x58] sm:$0xff] }
 0x10c   : > { %801 = vst.msk [vmem:[#allocation2 + $0x78] sm:$0xff] %vm550_vm2, %v785_v34  ;;  %1096 = vst.msk [vmem:[#allocation2 + $0x18] sm:$0xff] %vm550_vm2, %v1080_v36  ;;  %v811_v17 = vld [vmem:[#allocation2 + $0x48] sm:$0xff] }
 0x10d   : > { %799 = vst.msk [vmem:[#allocation2 + $0x68] sm:$0xff] %vm550_vm2, %v783_v40  ;;  %1094 = vst.msk [vmem:[#allocation2 + $0x8] sm:$0xff] %vm550_vm2, %v1078_v41 }
 0x10f   : > { %v4232_v44 = vpop.f32.mrb[20].mxu0  ;;  %v4250_v48 = vpop.f32.mrb[20].mxu1 }
 0x110   : > { %v1083_v45 = vadd.f32 %v4232_v44, %v808_v43  ;;  %v1030_v47 = vpop.f32.mrb[21].mxu0  ;;  %v1265_v53 = vpop.f32.mrb[21].mxu1 }
 0x111   : > { %v1111_v49 = vld [vmem:[#allocation2 + $0x10] sm:$0xff]  ;;  %v1081_v50 = vadd.f32 %v1030_v47, %v806_v46  ;;  %v4233_v52 = vpop.f32.mrb[22].mxu0  ;;  %v4251_v60 = vpop.f32.mrb[22].mxu1 }
 0x112   : > { %v1314_v54 = vadd.f32 %v4246_v27, %v1111_v49  ;;  %1099 = vst.msk [vmem:[#allocation2 + $0x30] sm:$0xff] %vm550_vm2, %v1083_v45  ;;  %v1109_v55 = vld [vmem:[#allocation2] sm:$0xff]  ;;  %v1084_v56 = vadd.f32 %v4233_v52, %v809_v51  ;;  %v1033_v59 = vpop.f32.mrb[23].mxu0  ;;  %v1268_v63 = vpop.f32.mrb[23].mxu1  ;;  %v816_v27 = vld [vmem:[#allocation2 + $0x70] sm:$0xff] }
 0x113   : > { %v1312_v58 = vadd.f32 %v1249_v33, %v1109_v55  ;;  %1097 = vst.msk [vmem:[#allocation2 + $0x20] sm:$0xff] %vm550_vm2, %v1081_v50  ;;  %v1112_v61 = vld [vmem:[#allocation2 + $0x18] sm:$0xff]  ;;  %v1082_v62 = vadd.f32 %v1033_v59, %v807_v57  ;;  %v814_v30 = vld [vmem:[#allocation2 + $0x60] sm:$0xff] }
 0x114   : > { %1330 = vst.msk [vmem:[#allocation2 + $0x10] sm:$0xff] %vm550_vm2, %v1314_v54  ;;  %v1315_v0 = vadd.f32 %v4247_v39, %v1112_v61  ;;  %1100 = vst.msk [vmem:[#allocation2 + $0x38] sm:$0xff] %vm550_vm2, %v1084_v56  ;;  %v1110_v1 = vld [vmem:[#allocation2 + $0x8] sm:$0xff]  ;;  %v817_v35 = vld [vmem:[#allocation2 + $0x78] sm:$0xff] }
 0x115   : > { %1328 = vst.msk [vmem:[#allocation2] sm:$0xff] %vm550_vm2, %v1312_v58  ;;  %v1313_v2 = vadd.f32 %v1252_v42, %v1110_v1  ;;  %1098 = vst.msk [vmem:[#allocation2 + $0x28] sm:$0xff] %vm550_vm2, %v1082_v62  ;;  %v815_v41 = vld [vmem:[#allocation2 + $0x68] sm:$0xff] }
 0x116   : > { %1331 = vst.msk [vmem:[#allocation2 + $0x18] sm:$0xff] %vm550_vm2, %v1315_v0 }
 0x117   : > { %1329 = vst.msk [vmem:[#allocation2 + $0x8] sm:$0xff] %vm550_vm2, %v1313_v2  ;;  %v4236_v4 = vpop.f32.mrb[24].mxu0  ;;  %v4254_v8 = vpop.f32.mrb[24].mxu1 }
 0x118   : > { %v1087_v5 = vadd.f32 %v4236_v4, %v812_v3  ;;  %v1046_v7 = vpop.f32.mrb[25].mxu0  ;;  %v1281_v13 = vpop.f32.mrb[25].mxu1 }
 0x119   : > { %v1115_v9 = vld [vmem:[#allocation2 + $0x30] sm:$0xff]  ;;  %v1085_v10 = vadd.f32 %v1046_v7, %v810_v6  ;;  %v4237_v12 = vpop.f32.mrb[26].mxu0  ;;  %v4255_v19 = vpop.f32.mrb[26].mxu1 }
 0x11a   : > { %v1318_v14 = vadd.f32 %v4250_v48, %v1115_v9  ;;  %1103 = vst.msk [vmem:[#allocation2 + $0x50] sm:$0xff] %vm550_vm2, %v1087_v5  ;;  %v1113_v15 = vld [vmem:[#allocation2 + $0x20] sm:$0xff]  ;;  %v1088_v16 = vadd.f32 %v4237_v12, %v813_v11  ;;  %v1049_v18 = vpop.f32.mrb[27].mxu0  ;;  %v1284_v23 = vpop.f32.mrb[27].mxu1 }
 0x11b   : > { %v1316_v20 = vadd.f32 %v1265_v53, %v1113_v15  ;;  %1101 = vst.msk [vmem:[#allocation2 + $0x40] sm:$0xff] %vm550_vm2, %v1085_v10  ;;  %v1116_v21 = vld [vmem:[#allocation2 + $0x38] sm:$0xff]  ;;  %v1086_v22 = vadd.f32 %v1049_v18, %v811_v17  ;;  %v1346_v51 = vld [vmem:[#allocation2 + $0x10] sm:$0xff] }
 0x11c   : > { %1334 = vst.msk [vmem:[#allocation2 + $0x30] sm:$0xff] %vm550_vm2, %v1318_v14  ;;  %v1319_v24 = vadd.f32 %v4251_v60, %v1116_v21  ;;  %1104 = vst.msk [vmem:[#allocation2 + $0x58] sm:$0xff] %vm550_vm2, %v1088_v16  ;;  %v1114_v25 = vld [vmem:[#allocation2 + $0x28] sm:$0xff]  ;;  %v1344_v54 = vld [vmem:[#allocation2] sm:$0xff] }
 0x11d   : > { %1332 = vst.msk [vmem:[#allocation2 + $0x20] sm:$0xff] %vm550_vm2, %v1316_v20  ;;  %v1317_v26 = vadd.f32 %v1268_v63, %v1114_v25  ;;  %1102 = vst.msk [vmem:[#allocation2 + $0x48] sm:$0xff] %vm550_vm2, %v1086_v22  ;;  %v1347_v60 = vld [vmem:[#allocation2 + $0x18] sm:$0xff] }
 0x11e   : > { %1335 = vst.msk [vmem:[#allocation2 + $0x38] sm:$0xff] %vm550_vm2, %v1319_v24  ;;  %v1345_v1 = vld [vmem:[#allocation2 + $0x8] sm:$0xff] }
 0x11f   : > { %1333 = vst.msk [vmem:[#allocation2 + $0x28] sm:$0xff] %vm550_vm2, %v1317_v26  ;;  %v4240_v28 = vpop.f32.mrb[28].mxu0  ;;  %v4258_v32 = vpop.f32.mrb[28].mxu1 }
 0x120   : > { %v1091_v29 = vadd.f32 %v4240_v28, %v816_v27  ;;  %v1062_v31 = vpop.f32.mrb[29].mxu0  ;;  %v1297_v37 = vpop.f32.mrb[29].mxu1 }
 0x121   : > { %v1119_v33 = vld [vmem:[#allocation2 + $0x50] sm:$0xff]  ;;  %v1089_v34 = vadd.f32 %v1062_v31, %v814_v30  ;;  %v4241_v36 = vpop.f32.mrb[30].mxu0  ;;  %v4259_v43 = vpop.f32.mrb[30].mxu1 }
 0x122   : > { %v1322_v38 = vadd.f32 %v4254_v8, %v1119_v33  ;;  %1107 = vst.msk [vmem:[#allocation2 + $0x70] sm:$0xff] %vm550_vm2, %v1091_v29  ;;  %v1117_v39 = vld [vmem:[#allocation2 + $0x40] sm:$0xff]  ;;  %v1092_v40 = vadd.f32 %v4241_v36, %v817_v35  ;;  %v1065_v42 = vpop.f32.mrb[31].mxu0  ;;  %v1300_v47 = vpop.f32.mrb[31].mxu1 }
 0x123   : > { %v1320_v44 = vadd.f32 %v1281_v13, %v1117_v39  ;;  %1105 = vst.msk [vmem:[#allocation2 + $0x60] sm:$0xff] %vm550_vm2, %v1089_v34  ;;  %v1120_v45 = vld [vmem:[#allocation2 + $0x58] sm:$0xff]  ;;  %v1090_v46 = vadd.f32 %v1065_v42, %v815_v41  ;;  %v1350_v11 = vld [vmem:[#allocation2 + $0x30] sm:$0xff] }
 0x124   : > { %1338 = vst.msk [vmem:[#allocation2 + $0x50] sm:$0xff] %vm550_vm2, %v1322_v38  ;;  %v1323_v48 = vadd.f32 %v4255_v19, %v1120_v45  ;;  %1108 = vst.msk [vmem:[#allocation2 + $0x78] sm:$0xff] %vm550_vm2, %v1092_v40  ;;  %v1118_v49 = vld [vmem:[#allocation2 + $0x48] sm:$0xff]  ;;  %v1348_v14 = vld [vmem:[#allocation2 + $0x20] sm:$0xff] }
 0x125   : > { %1336 = vst.msk [vmem:[#allocation2 + $0x40] sm:$0xff] %vm550_vm2, %v1320_v44  ;;  %v1321_v50 = vadd.f32 %v1284_v23, %v1118_v49  ;;  %1106 = vst.msk [vmem:[#allocation2 + $0x68] sm:$0xff] %vm550_vm2, %v1090_v46  ;;  %v1351_v19 = vld [vmem:[#allocation2 + $0x38] sm:$0xff] }
 0x126   : > { %1339 = vst.msk [vmem:[#allocation2 + $0x58] sm:$0xff] %vm550_vm2, %v1323_v48  ;;  %v1349_v25 = vld [vmem:[#allocation2 + $0x28] sm:$0xff] }
 0x127   : > { %1337 = vst.msk [vmem:[#allocation2 + $0x48] sm:$0xff] %vm550_vm2, %v1321_v50  ;;  %v4264_v52 = vpop.f32.mrb[32].mxu0  ;;  %v4282_v56 = vpop.f32.mrb[32].mxu1 }
 0x128   : > { %v1549_v53 = vadd.f32 %v4264_v52, %v1346_v51  ;;  %v1484_v55 = vpop.f32.mrb[33].mxu0  ;;  %v1790_v61 = vpop.f32.mrb[33].mxu1 }
 0x129   : > { %v1123_v57 = vld [vmem:[#allocation2 + $0x70] sm:$0xff]  ;;  %v1547_v59 = vadd.f32 %v1484_v55, %v1344_v54  ;;  %v4265_v58 = vpop.f32.mrb[34].mxu0  ;;  %v4283_v3 = vpop.f32.mrb[34].mxu1 }
 0x12a   : > { %v1326_v62 = vadd.f32 %v4258_v32, %v1123_v57  ;;  %v1121_v63 = vld [vmem:[#allocation2 + $0x60] sm:$0xff]  ;;  %1565 = vst.msk [vmem:[#allocation2 + $0x10] sm:$0xff] %vm550_vm2, %v1549_v53  ;;  %v1550_v0 = vadd.f32 %v4265_v58, %v1347_v60  ;;  %v1487_v2 = vpop.f32.mrb[35].mxu0  ;;  %v1793_v7 = vpop.f32.mrb[35].mxu1 }
 0x12b   : > { %v1324_v4 = vadd.f32 %v1297_v37, %v1121_v63  ;;  %v1124_v5 = vld [vmem:[#allocation2 + $0x78] sm:$0xff]  ;;  %1563 = vst.msk [vmem:[#allocation2] sm:$0xff] %vm550_vm2, %v1547_v59  ;;  %v1548_v6 = vadd.f32 %v1487_v2, %v1345_v1  ;;  %v1354_v35 = vld [vmem:[#allocation2 + $0x50] sm:$0xff] }
 0x12c   : > { %1342 = vst.msk [vmem:[#allocation2 + $0x70] sm:$0xff] %vm550_vm2, %v1326_v62  ;;  %v1327_v8 = vadd.f32 %v4259_v43, %v1124_v5  ;;  %v1122_v9 = vld [vmem:[#allocation2 + $0x68] sm:$0xff]  ;;  %1566 = vst.msk [vmem:[#allocation2 + $0x18] sm:$0xff] %vm550_vm2, %v1550_v0  ;;  %v1352_v38 = vld [vmem:[#allocation2 + $0x40] sm:$0xff] }
 0x12d   : > { %1340 = vst.msk [vmem:[#allocation2 + $0x60] sm:$0xff] %vm550_vm2, %v1324_v4  ;;  %v1325_v10 = vadd.f32 %v1300_v47, %v1122_v9  ;;  %1564 = vst.msk [vmem:[#allocation2 + $0x8] sm:$0xff] %vm550_vm2, %v1548_v6  ;;  %v1355_v43 = vld [vmem:[#allocation2 + $0x58] sm:$0xff] }
 0x12e   : > { %1343 = vst.msk [vmem:[#allocation2 + $0x78] sm:$0xff] %vm550_vm2, %v1327_v8  ;;  %v1353_v49 = vld [vmem:[#allocation2 + $0x48] sm:$0xff] }
 0x12f   : > { %1341 = vst.msk [vmem:[#allocation2 + $0x68] sm:$0xff] %vm550_vm2, %v1325_v10  ;;  %v4268_v12 = vpop.f32.mrb[36].mxu0  ;;  %v4286_v16 = vpop.f32.mrb[36].mxu1 }
 0x130   : > { %v1553_v13 = vadd.f32 %v4268_v12, %v1350_v11  ;;  %v1500_v15 = vpop.f32.mrb[37].mxu0  ;;  %v1806_v21 = vpop.f32.mrb[37].mxu1 }
 0x131   : > { %v1581_v17 = vld [vmem:[#allocation2 + $0x10] sm:$0xff]  ;;  %v1551_v18 = vadd.f32 %v1500_v15, %v1348_v14  ;;  %v4269_v20 = vpop.f32.mrb[38].mxu0  ;;  %v4287_v27 = vpop.f32.mrb[38].mxu1 }
 0x132   : > { %v1855_v22 = vadd.f32 %v4282_v56, %v1581_v17  ;;  %1569 = vst.msk [vmem:[#allocation2 + $0x30] sm:$0xff] %vm550_vm2, %v1553_v13  ;;  %v1579_v23 = vld [vmem:[#allocation2] sm:$0xff]  ;;  %v1554_v24 = vadd.f32 %v4269_v20, %v1351_v19  ;;  %v1503_v26 = vpop.f32.mrb[39].mxu0  ;;  %v1809_v31 = vpop.f32.mrb[39].mxu1 }
 0x133   : > { %v1853_v28 = vadd.f32 %v1790_v61, %v1579_v23  ;;  %1567 = vst.msk [vmem:[#allocation2 + $0x20] sm:$0xff] %vm550_vm2, %v1551_v18  ;;  %v1582_v29 = vld [vmem:[#allocation2 + $0x18] sm:$0xff]  ;;  %v1552_v30 = vadd.f32 %v1503_v26, %v1349_v25  ;;  %v1358_v60 = vld [vmem:[#allocation2 + $0x70] sm:$0xff] }
 0x134   : > { %1871 = vst.msk [vmem:[#allocation2 + $0x10] sm:$0xff] %vm550_vm2, %v1855_v22  ;;  %v1856_v32 = vadd.f32 %v4283_v3, %v1582_v29  ;;  %1570 = vst.msk [vmem:[#allocation2 + $0x38] sm:$0xff] %vm550_vm2, %v1554_v24  ;;  %v1580_v33 = vld [vmem:[#allocation2 + $0x8] sm:$0xff]  ;;  %v1356_v62 = vld [vmem:[#allocation2 + $0x60] sm:$0xff] }
 0x135   : > { %1869 = vst.msk [vmem:[#allocation2] sm:$0xff] %vm550_vm2, %v1853_v28  ;;  %v1854_v34 = vadd.f32 %v1793_v7, %v1580_v33  ;;  %1568 = vst.msk [vmem:[#allocation2 + $0x28] sm:$0xff] %vm550_vm2, %v1552_v30  ;;  %v1359_v3 = vld [vmem:[#allocation2 + $0x78] sm:$0xff] }
 0x136   : > { %1872 = vst.msk [vmem:[#allocation2 + $0x18] sm:$0xff] %vm550_vm2, %v1856_v32  ;;  %v1357_v9 = vld [vmem:[#allocation2 + $0x68] sm:$0xff] }
 0x137   : > { %1870 = vst.msk [vmem:[#allocation2 + $0x8] sm:$0xff] %vm550_vm2, %v1854_v34  ;;  %v4272_v36 = vpop.f32.mrb[40].mxu0  ;;  %v4290_v40 = vpop.f32.mrb[40].mxu1 }
 0x138   : > { %v1557_v37 = vadd.f32 %v4272_v36, %v1354_v35  ;;  %v1516_v39 = vpop.f32.mrb[41].mxu0  ;;  %v1822_v45 = vpop.f32.mrb[41].mxu1 }
 0x139   : > { %v1585_v41 = vld [vmem:[#allocation2 + $0x30] sm:$0xff]  ;;  %v1555_v42 = vadd.f32 %v1516_v39, %v1352_v38  ;;  %v4273_v44 = vpop.f32.mrb[42].mxu0  ;;  %v4291_v51 = vpop.f32.mrb[42].mxu1 }
 0x13a   : > { %v1859_v46 = vadd.f32 %v4286_v16, %v1585_v41  ;;  %1573 = vst.msk [vmem:[#allocation2 + $0x50] sm:$0xff] %vm550_vm2, %v1557_v37  ;;  %v1583_v47 = vld [vmem:[#allocation2 + $0x20] sm:$0xff]  ;;  %v1558_v48 = vadd.f32 %v4273_v44, %v1355_v43  ;;  %v1519_v50 = vpop.f32.mrb[43].mxu0  ;;  %v1825_v55 = vpop.f32.mrb[43].mxu1 }
 0x13b   : > { %v1857_v52 = vadd.f32 %v1806_v21, %v1583_v47  ;;  %1571 = vst.msk [vmem:[#allocation2 + $0x40] sm:$0xff] %vm550_vm2, %v1555_v42  ;;  %v1586_v53 = vld [vmem:[#allocation2 + $0x38] sm:$0xff]  ;;  %v1556_v54 = vadd.f32 %v1519_v50, %v1353_v49  ;;  %v1887_v19 = vld [vmem:[#allocation2 + $0x10] sm:$0xff] }
 0x13c   : > { %1875 = vst.msk [vmem:[#allocation2 + $0x30] sm:$0xff] %vm550_vm2, %v1859_v46  ;;  %v1860_v56 = vadd.f32 %v4287_v27, %v1586_v53  ;;  %1574 = vst.msk [vmem:[#allocation2 + $0x58] sm:$0xff] %vm550_vm2, %v1558_v48  ;;  %v1584_v57 = vld [vmem:[#allocation2 + $0x28] sm:$0xff]  ;;  %v1885_v22 = vld [vmem:[#allocation2] sm:$0xff] }
 0x13d   : > { %1873 = vst.msk [vmem:[#allocation2 + $0x20] sm:$0xff] %vm550_vm2, %v1857_v52  ;;  %v1858_v59 = vadd.f32 %v1809_v31, %v1584_v57  ;;  %1572 = vst.msk [vmem:[#allocation2 + $0x48] sm:$0xff] %vm550_vm2, %v1556_v54  ;;  %v1888_v27 = vld [vmem:[#allocation2 + $0x18] sm:$0xff] }
 0x13e   : > { %1876 = vst.msk [vmem:[#allocation2 + $0x38] sm:$0xff] %vm550_vm2, %v1860_v56  ;;  %v1886_v33 = vld [vmem:[#allocation2 + $0x8] sm:$0xff] }
 0x13f   : > { %1874 = vst.msk [vmem:[#allocation2 + $0x28] sm:$0xff] %vm550_vm2, %v1858_v59  ;;  %v4276_v58 = vpop.f32.mrb[44].mxu0  ;;  %v4294_v0 = vpop.f32.mrb[44].mxu1 }
 0x140   : > { %v1561_v61 = vadd.f32 %v4276_v58, %v1358_v60  ;;  %v1532_v63 = vpop.f32.mrb[45].mxu0  ;;  %v1838_v5 = vpop.f32.mrb[45].mxu1 }
 0x141   : > { %v1589_v1 = vld [vmem:[#allocation2 + $0x50] sm:$0xff]  ;;  %v1559_v2 = vadd.f32 %v1532_v63, %v1356_v62  ;;  %v4277_v4 = vpop.f32.mrb[46].mxu0  ;;  %v4295_v11 = vpop.f32.mrb[46].mxu1 }
 0x142   : > { %v1863_v6 = vadd.f32 %v4290_v40, %v1589_v1  ;;  %1577 = vst.msk [vmem:[#allocation2 + $0x70] sm:$0xff] %vm550_vm2, %v1561_v61  ;;  %v1587_v7 = vld [vmem:[#allocation2 + $0x40] sm:$0xff]  ;;  %v1562_v8 = vadd.f32 %v4277_v4, %v1359_v3  ;;  %v1535_v10 = vpop.f32.mrb[47].mxu0  ;;  %v1841_v15 = vpop.f32.mrb[47].mxu1 }
 0x143   : > { %v1861_v12 = vadd.f32 %v1822_v45, %v1587_v7  ;;  %1575 = vst.msk [vmem:[#allocation2 + $0x60] sm:$0xff] %vm550_vm2, %v1559_v2  ;;  %v1590_v13 = vld [vmem:[#allocation2 + $0x58] sm:$0xff]  ;;  %v1560_v14 = vadd.f32 %v1535_v10, %v1357_v9  ;;  %v1891_v43 = vld [vmem:[#allocation2 + $0x30] sm:$0xff] }
 0x144   : > { %1879 = vst.msk [vmem:[#allocation2 + $0x50] sm:$0xff] %vm550_vm2, %v1863_v6  ;;  %v1864_v16 = vadd.f32 %v4291_v51, %v1590_v13  ;;  %1578 = vst.msk [vmem:[#allocation2 + $0x78] sm:$0xff] %vm550_vm2, %v1562_v8  ;;  %v1588_v17 = vld [vmem:[#allocation2 + $0x48] sm:$0xff]  ;;  %v1889_v46 = vld [vmem:[#allocation2 + $0x20] sm:$0xff] }
 0x145   : > { %1877 = vst.msk [vmem:[#allocation2 + $0x40] sm:$0xff] %vm550_vm2, %v1861_v12  ;;  %v1862_v18 = vadd.f32 %v1825_v55, %v1588_v17  ;;  %1576 = vst.msk [vmem:[#allocation2 + $0x68] sm:$0xff] %vm550_vm2, %v1560_v14  ;;  %v1892_v51 = vld [vmem:[#allocation2 + $0x38] sm:$0xff] }
 0x146   : > { %1880 = vst.msk [vmem:[#allocation2 + $0x58] sm:$0xff] %vm550_vm2, %v1864_v16  ;;  %v1890_v57 = vld [vmem:[#allocation2 + $0x28] sm:$0xff] }
 0x147   : > { %1878 = vst.msk [vmem:[#allocation2 + $0x48] sm:$0xff] %vm550_vm2, %v1862_v18  ;;  %v4300_v20 = vpop.f32.mrb[48].mxu0  ;;  %v4318_v24 = vpop.f32.mrb[48].mxu1 }
 0x148   : > { %v2089_v21 = vadd.f32 %v4300_v20, %v1887_v19  ;;  %v2024_v23 = vpop.f32.mrb[49].mxu0  ;;  %v2258_v29 = vpop.f32.mrb[49].mxu1 }
 0x149   : > { %v1593_v25 = vld [vmem:[#allocation2 + $0x70] sm:$0xff]  ;;  %v2087_v26 = vadd.f32 %v2024_v23, %v1885_v22  ;;  %v4301_v28 = vpop.f32.mrb[50].mxu0  ;;  %v4319_v35 = vpop.f32.mrb[50].mxu1 }
 0x14a   : > { %v1867_v30 = vadd.f32 %v4294_v0, %v1593_v25  ;;  %v1591_v31 = vld [vmem:[#allocation2 + $0x60] sm:$0xff]  ;;  %2105 = vst.msk [vmem:[#allocation2 + $0x10] sm:$0xff] %vm550_vm2, %v2089_v21  ;;  %v2090_v32 = vadd.f32 %v4301_v28, %v1888_v27  ;;  %v2027_v34 = vpop.f32.mrb[51].mxu0  ;;  %v2261_v39 = vpop.f32.mrb[51].mxu1 }
 0x14b   : > { %v1865_v36 = vadd.f32 %v1838_v5, %v1591_v31  ;;  %v1594_v37 = vld [vmem:[#allocation2 + $0x78] sm:$0xff]  ;;  %2103 = vst.msk [vmem:[#allocation2] sm:$0xff] %vm550_vm2, %v2087_v26  ;;  %v2088_v38 = vadd.f32 %v2027_v34, %v1886_v33  ;;  %v1895_v3 = vld [vmem:[#allocation2 + $0x50] sm:$0xff] }
 0x14c   : > { %1883 = vst.msk [vmem:[#allocation2 + $0x70] sm:$0xff] %vm550_vm2, %v1867_v30  ;;  %v1868_v40 = vadd.f32 %v4295_v11, %v1594_v37  ;;  %v1592_v41 = vld [vmem:[#allocation2 + $0x68] sm:$0xff]  ;;  %2106 = vst.msk [vmem:[#allocation2 + $0x18] sm:$0xff] %vm550_vm2, %v2090_v32  ;;  %v1893_v6 = vld [vmem:[#allocation2 + $0x40] sm:$0xff] }
 0x14d   : > { %1881 = vst.msk [vmem:[#allocation2 + $0x60] sm:$0xff] %vm550_vm2, %v1865_v36  ;;  %v1866_v42 = vadd.f32 %v1841_v15, %v1592_v41  ;;  %2104 = vst.msk [vmem:[#allocation2 + $0x8] sm:$0xff] %vm550_vm2, %v2088_v38  ;;  %v1896_v11 = vld [vmem:[#allocation2 + $0x58] sm:$0xff] }
 0x14e   : > { %1884 = vst.msk [vmem:[#allocation2 + $0x78] sm:$0xff] %vm550_vm2, %v1868_v40  ;;  %v1894_v17 = vld [vmem:[#allocation2 + $0x48] sm:$0xff] }
 0x14f   : > { %1882 = vst.msk [vmem:[#allocation2 + $0x68] sm:$0xff] %vm550_vm2, %v1866_v42  ;;  %v4304_v44 = vpop.f32.mrb[52].mxu0  ;;  %v4322_v48 = vpop.f32.mrb[52].mxu1 }
 0x150   : > { %v2093_v45 = vadd.f32 %v4304_v44, %v1891_v43  ;;  %v2040_v47 = vpop.f32.mrb[53].mxu0  ;;  %v2274_v53 = vpop.f32.mrb[53].mxu1 }
 0x151   : > { %v2121_v49 = vld [vmem:[#allocation2 + $0x10] sm:$0xff]  ;;  %v2091_v50 = vadd.f32 %v2040_v47, %v1889_v46  ;;  %v4305_v52 = vpop.f32.mrb[54].mxu0  ;;  %v4323_v60 = vpop.f32.mrb[54].mxu1 }
 0x152   : > { %v2323_v54 = vadd.f32 %v4318_v24, %v2121_v49  ;;  %2109 = vst.msk [vmem:[#allocation2 + $0x30] sm:$0xff] %vm550_vm2, %v2093_v45  ;;  %v2119_v55 = vld [vmem:[#allocation2] sm:$0xff]  ;;  %v2094_v56 = vadd.f32 %v4305_v52, %v1892_v51  ;;  %v2043_v59 = vpop.f32.mrb[55].mxu0  ;;  %v2277_v63 = vpop.f32.mrb[55].mxu1 }
 0x153   : > { %v2321_v58 = vadd.f32 %v2258_v29, %v2119_v55  ;;  %2107 = vst.msk [vmem:[#allocation2 + $0x20] sm:$0xff] %vm550_vm2, %v2091_v50  ;;  %v2122_v61 = vld [vmem:[#allocation2 + $0x18] sm:$0xff]  ;;  %v2092_v62 = vadd.f32 %v2043_v59, %v1890_v57  ;;  %v1899_v27 = vld [vmem:[#allocation2 + $0x70] sm:$0xff] }
 0x154   : > { %2339 = vst.msk [vmem:[#allocation2 + $0x10] sm:$0xff] %vm550_vm2, %v2323_v54  ;;  %v2324_v0 = vadd.f32 %v4319_v35, %v2122_v61  ;;  %2110 = vst.msk [vmem:[#allocation2 + $0x38] sm:$0xff] %vm550_vm2, %v2094_v56  ;;  %v2120_v1 = vld [vmem:[#allocation2 + $0x8] sm:$0xff]  ;;  %v1897_v30 = vld [vmem:[#allocation2 + $0x60] sm:$0xff] }
 0x155   : > { %2337 = vst.msk [vmem:[#allocation2] sm:$0xff] %vm550_vm2, %v2321_v58  ;;  %v2322_v2 = vadd.f32 %v2261_v39, %v2120_v1  ;;  %2108 = vst.msk [vmem:[#allocation2 + $0x28] sm:$0xff] %vm550_vm2, %v2092_v62  ;;  %v1900_v35 = vld [vmem:[#allocation2 + $0x78] sm:$0xff] }
 0x156   : > { %2340 = vst.msk [vmem:[#allocation2 + $0x18] sm:$0xff] %vm550_vm2, %v2324_v0  ;;  %v1898_v41 = vld [vmem:[#allocation2 + $0x68] sm:$0xff] }
 0x157   : > { %2338 = vst.msk [vmem:[#allocation2 + $0x8] sm:$0xff] %vm550_vm2, %v2322_v2  ;;  %v4308_v4 = vpop.f32.mrb[56].mxu0  ;;  %v4326_v8 = vpop.f32.mrb[56].mxu1 }
 0x158   : > { %v2097_v5 = vadd.f32 %v4308_v4, %v1895_v3  ;;  %v2056_v7 = vpop.f32.mrb[57].mxu0  ;;  %v2290_v13 = vpop.f32.mrb[57].mxu1 }
 0x159   : > { %v2125_v9 = vld [vmem:[#allocation2 + $0x30] sm:$0xff]  ;;  %v2095_v10 = vadd.f32 %v2056_v7, %v1893_v6  ;;  %v4309_v12 = vpop.f32.mrb[58].mxu0  ;;  %v4327_v19 = vpop.f32.mrb[58].mxu1 }
 0x15a   : > { %v2327_v14 = vadd.f32 %v4322_v48, %v2125_v9  ;;  %2113 = vst.msk [vmem:[#allocation2 + $0x50] sm:$0xff] %vm550_vm2, %v2097_v5  ;;  %v2123_v15 = vld [vmem:[#allocation2 + $0x20] sm:$0xff]  ;;  %v2098_v16 = vadd.f32 %v4309_v12, %v1896_v11  ;;  %v2059_v18 = vpop.f32.mrb[59].mxu0  ;;  %v2293_v23 = vpop.f32.mrb[59].mxu1 }
 0x15b   : > { %v2325_v20 = vadd.f32 %v2274_v53, %v2123_v15  ;;  %2111 = vst.msk [vmem:[#allocation2 + $0x40] sm:$0xff] %vm550_vm2, %v2095_v10  ;;  %v2126_v21 = vld [vmem:[#allocation2 + $0x38] sm:$0xff]  ;;  %v2096_v22 = vadd.f32 %v2059_v18, %v1894_v17  ;;  %v2355_v51 = vld [vmem:[#allocation2 + $0x10] sm:$0xff] }
 0x15c   : > { %2343 = vst.msk [vmem:[#allocation2 + $0x30] sm:$0xff] %vm550_vm2, %v2327_v14  ;;  %v2328_v24 = vadd.f32 %v4323_v60, %v2126_v21  ;;  %2114 = vst.msk [vmem:[#allocation2 + $0x58] sm:$0xff] %vm550_vm2, %v2098_v16  ;;  %v2124_v25 = vld [vmem:[#allocation2 + $0x28] sm:$0xff]  ;;  %v2353_v54 = vld [vmem:[#allocation2] sm:$0xff] }
 0x15d   : > { %2341 = vst.msk [vmem:[#allocation2 + $0x20] sm:$0xff] %vm550_vm2, %v2325_v20  ;;  %v2326_v26 = vadd.f32 %v2277_v63, %v2124_v25  ;;  %2112 = vst.msk [vmem:[#allocation2 + $0x48] sm:$0xff] %vm550_vm2, %v2096_v22  ;;  %v2356_v60 = vld [vmem:[#allocation2 + $0x18] sm:$0xff] }
 0x15e   : > { %2344 = vst.msk [vmem:[#allocation2 + $0x38] sm:$0xff] %vm550_vm2, %v2328_v24  ;;  %v2354_v4 = vld [vmem:[#allocation2 + $0x8] sm:$0xff] }
 0x15f   : > { %2342 = vst.msk [vmem:[#allocation2 + $0x28] sm:$0xff] %vm550_vm2, %v2326_v26  ;;  %v4312_v28 = vpop.f32.mrb[60].mxu0  ;;  %v4330_v32 = vpop.f32.mrb[60].mxu1 }
 0x160   : > { %v2101_v29 = vadd.f32 %v4312_v28, %v1899_v27  ;;  %v2072_v31 = vpop.f32.mrb[61].mxu0  ;;  %v2306_v37 = vpop.f32.mrb[61].mxu1 }
 0x161   : > { %v2129_v33 = vld [vmem:[#allocation2 + $0x50] sm:$0xff]  ;;  %v2099_v34 = vadd.f32 %v2072_v31, %v1897_v30  ;;  %v4313_v36 = vpop.f32.mrb[62].mxu0  ;;  %v4331_v43 = vpop.f32.mrb[62].mxu1 }
 0x162   : > { %v2331_v38 = vadd.f32 %v4326_v8, %v2129_v33  ;;  %2117 = vst.msk [vmem:[#allocation2 + $0x70] sm:$0xff] %vm550_vm2, %v2101_v29  ;;  %v2127_v39 = vld [vmem:[#allocation2 + $0x40] sm:$0xff]  ;;  %v2102_v40 = vadd.f32 %v4313_v36, %v1900_v35  ;;  %v2075_v42 = vpop.f32.mrb[63].mxu0  ;;  %v2309_v47 = vpop.f32.mrb[63].mxu1 }
 0x163   : > { %v2329_v44 = vadd.f32 %v2290_v13, %v2127_v39  ;;  %2115 = vst.msk [vmem:[#allocation2 + $0x60] sm:$0xff] %vm550_vm2, %v2099_v34  ;;  %v2130_v45 = vld [vmem:[#allocation2 + $0x58] sm:$0xff]  ;;  %v2100_v46 = vadd.f32 %v2075_v42, %v1898_v41  ;;  %v2359_v22 = vld [vmem:[#allocation2 + $0x30] sm:$0xff] }
 0x164   : > { %2347 = vst.msk [vmem:[#allocation2 + $0x50] sm:$0xff] %vm550_vm2, %v2331_v38  ;;  %v2332_v48 = vadd.f32 %v4327_v19, %v2130_v45  ;;  %2118 = vst.msk [vmem:[#allocation2 + $0x78] sm:$0xff] %vm550_vm2, %v2102_v40  ;;  %v2128_v49 = vld [vmem:[#allocation2 + $0x48] sm:$0xff]  ;;  %v2357_v26 = vld [vmem:[#allocation2 + $0x20] sm:$0xff] }
 0x165   : > { %2345 = vst.msk [vmem:[#allocation2 + $0x40] sm:$0xff] %vm550_vm2, %v2329_v44  ;;  %v2330_v50 = vadd.f32 %v2293_v23, %v2128_v49  ;;  %2116 = vst.msk [vmem:[#allocation2 + $0x68] sm:$0xff] %vm550_vm2, %v2100_v46  ;;  %v2360_v31 = vld [vmem:[#allocation2 + $0x38] sm:$0xff] }
 0x166   : > { %2348 = vst.msk [vmem:[#allocation2 + $0x58] sm:$0xff] %vm550_vm2, %v2332_v48  ;;  %v2358_v39 = vld [vmem:[#allocation2 + $0x28] sm:$0xff] }
 0x167   : > { %2346 = vst.msk [vmem:[#allocation2 + $0x48] sm:$0xff] %vm550_vm2, %v2330_v50  ;;  %v4336_v52 = vpop.f32.mrb[64].mxu0  ;;  %v4354_v56 = vpop.f32.mrb[64].mxu1 }
 0x168   : > { %v2629_v53 = vadd.f32 %v4336_v52, %v2355_v51  ;;  %v2564_v55 = vpop.f32.mrb[65].mxu0  ;;  %v4084_v61 = vpack.c.bf16 %v4354_v56, %v4354_v56  ;;  %v3406_v62 = vsel %vm550_vm2, %v4354_v56, 0.0  ;;  %v3443_v63 = vmul.f32 %v4354_v56, %v4354_v56  ;;  %v3244_v0 = vpop.f32.mrb[65].mxu1 }
 0x169   : > { %v2133_v57 = vld [vmem:[#allocation2 + $0x70] sm:$0xff]  ;;  %v2627_v59 = vadd.f32 %v2564_v55, %v2353_v54  ;;  %v4337_v58 = vpop.f32.mrb[66].mxu0  ;;  %v4082_v6 = vpack.c.bf16 %v3244_v0, %v3244_v0  ;;  %v3403_v7 = vsel %vm550_vm2, %v3244_v0, 0.0  ;;  %v4355_v8 = vpop.f32.mrb[66].mxu1  ;;  %v3441_v17 = vmul.f32 %v3244_v0, %v3244_v0 }
 0x16a   : > { %v2335_v1 = vadd.f32 %v4330_v32, %v2133_v57  ;;  %v2131_v2 = vld [vmem:[#allocation2 + $0x60] sm:$0xff]  ;;  %2645 = vst.msk [vmem:[#allocation2 + $0x10] sm:$0xff] %vm550_vm2, %v2629_v53  ;;  %v2630_v3 = vadd.f32 %v4337_v58, %v2356_v60  ;;  %v2567_v5 = vpop.f32.mrb[67].mxu0  ;;  %v3460_v12 = vsel %vm550_vm2, %v3443_v63, 0.0  ;;  %v4938_v13 = vadd.f32 %v3406_v62, %v3403_v7  ;;  %v3247_v14 = vpop.f32.mrb[67].mxu1 }
 0x16b   : > { %v2333_v9 = vadd.f32 %v2306_v37, %v2131_v2  ;;  %v2134_v10 = vld [vmem:[#allocation2 + $0x78] sm:$0xff]  ;;  %2643 = vst.msk [vmem:[#allocation2] sm:$0xff] %vm550_vm2, %v2627_v59  ;;  %v2628_v11 = vadd.f32 %v2567_v5, %v2354_v4  ;;  %v4085_v18 = vpack.c.bf16 %v4355_v8, %v4355_v8  ;;  %v4083_v19 = vpack.c.bf16 %v3247_v14, %v3247_v14  ;;  %v2363_v62 = vld [vmem:[#allocation2 + $0x50] sm:$0xff] }
 0x16c   : > { %3373 = vst.msk [vmem:[%s4929_s8 + $0x8] sm:$0xf] %vm2739_vm3, %v4084_v61  ;;  %v2336_v15 = vadd.f32 %v4331_v43, %v2134_v10  ;;  %v2132_v16 = vld [vmem:[#allocation2 + $0x68] sm:$0xff]  ;;  %3371 = vst.msk [vmem:[%s4929_s8] sm:$0xf] %vm2739_vm3, %v4082_v6  ;;  %v3457_v21 = vsel %vm550_vm2, %v3441_v17, 0.0 }
 0x16d   : > { %2351 = vst.msk [vmem:[#allocation2 + $0x70] sm:$0xff] %vm550_vm2, %v2335_v1  ;;  %2646 = vst.msk [vmem:[#allocation2 + $0x18] sm:$0xff] %vm550_vm2, %v2630_v3  ;;  %v2334_v20 = vadd.f32 %v2309_v47, %v2132_v16  ;;  %v3461_v24 = vadd.f32 %v3460_v12, %v3457_v21 }
 0x16e   : > { %2349 = vst.msk [vmem:[#allocation2 + $0x60] sm:$0xff] %vm550_vm2, %v2333_v9  ;;  %2644 = vst.msk [vmem:[#allocation2 + $0x8] sm:$0xff] %vm550_vm2, %v2628_v11  ;;  %v2361_v11 = vld [vmem:[#allocation2 + $0x40] sm:$0xff] }
 0x16f   : > { %2352 = vst.msk [vmem:[#allocation2 + $0x78] sm:$0xff] %vm550_vm2, %v2336_v15  ;;  %2350 = vst.msk [vmem:[#allocation2 + $0x68] sm:$0xff] %vm550_vm2, %v2334_v20  ;;  %v4340_v23 = vpop.f32.mrb[68].mxu0  ;;  %v4358_v28 = vpop.f32.mrb[68].mxu1 }
 0x170   : > { %3374 = vst.msk [vmem:[%s4929_s8 + $0xc] sm:$0xf] %vm2739_vm3, %v4085_v18  ;;  %3372 = vst.msk [vmem:[%s4929_s8 + $0x4] sm:$0xf] %vm2739_vm3, %v4083_v19  ;;  %v2633_v25 = vadd.f32 %v4340_v23, %v2359_v22  ;;  %v2580_v27 = vpop.f32.mrb[69].mxu0  ;;  %v4088_v33 = vpack.c.bf16 %v4358_v28, %v4358_v28  ;;  %v3260_v34 = vpop.f32.mrb[69].mxu1  ;;  %v3447_v52 = vmul.f32 %v4358_v28, %v4358_v28 }
 0x171   : > { %v2661_v29 = vld [vmem:[#allocation2 + $0x10] sm:$0xff]  ;;  %v2631_v30 = vadd.f32 %v2580_v27, %v2357_v26  ;;  %v4341_v32 = vpop.f32.mrb[70].mxu0  ;;  %v4359_v41 = vpop.f32.mrb[70].mxu1  ;;  %v3414_v46 = vsel %vm550_vm2, %v4358_v28, 0.0  ;;  %v4086_v55 = vpack.c.bf16 %v3260_v34, %v3260_v34  ;;  %v3410_v56 = vsel %vm550_vm2, %v3260_v34, 0.0 }
 0x172   : > { %v4068_v35 = vpack.c.bf16 %v2661_v29, %v2661_v29  ;;  %v3070_v36 = vmul.f32 %v2661_v29, %v2661_v29  ;;  %v2659_v37 = vld [vmem:[#allocation2] sm:$0xff]  ;;  %2649 = vst.msk [vmem:[#allocation2 + $0x30] sm:$0xff] %vm550_vm2, %v2633_v25  ;;  %v2634_v38 = vadd.f32 %v4341_v32, %v2360_v31  ;;  %v2583_v40 = vpop.f32.mrb[71].mxu0  ;;  %v3263_v47 = vpop.f32.mrb[71].mxu1  ;;  %v3032_v48 = vsel %vm550_vm2, %v2661_v29, 0.0 }
 0x173   : > { %v4066_v42 = vpack.c.bf16 %v2659_v37, %v2659_v37  ;;  %v3068_v43 = vmul.f32 %v2659_v37, %v2659_v37  ;;  %2647 = vst.msk [vmem:[#allocation2 + $0x20] sm:$0xff] %vm550_vm2, %v2631_v30  ;;  %v2632_v45 = vadd.f32 %v2583_v40, %v2358_v39  ;;  %v3029_v49 = vsel %vm550_vm2, %v2659_v37, 0.0 }
 0x174   : > { %v2662_v44 = vld [vmem:[#allocation2 + $0x18] sm:$0xff]  ;;  %3377 = vst.msk [vmem:[%s4929_s8 + $0x18] sm:$0xf] %vm2739_vm3, %v4088_v33  ;;  %2742 = vst.msk [vmem:[%s4957_s12 + $0x18] sm:$0xf] %vm2739_vm3, %v4068_v35  ;;  %v3087_v53 = vsel %vm550_vm2, %v3070_v36, 0.0  ;;  %v3411_v59 = vadd.f32 %v3410_v56, %v4938_v13  ;;  %v3445_v60 = vmul.f32 %v3260_v34, %v3260_v34  ;;  %v4089_v58 = vpack.c.bf16 %v4359_v41, %v4359_v41 }
 0x175   : > { %v4069_v50 = vpack.c.bf16 %v2662_v44, %v2662_v44  ;;  %v2660_v51 = vld [vmem:[#allocation2 + $0x8] sm:$0xff]  ;;  %2650 = vst.msk [vmem:[#allocation2 + $0x38] sm:$0xff] %vm550_vm2, %v2634_v38  ;;  %2648 = vst.msk [vmem:[#allocation2 + $0x28] sm:$0xff] %vm550_vm2, %v2632_v45  ;;  %v3084_v57 = vsel %vm550_vm2, %v3068_v43, 0.0  ;;  %v4087_v61 = vpack.c.bf16 %v3263_v47, %v3263_v47  ;;  %v3033_v0 = vadd.f32 %v3032_v48, %v3029_v49  ;;  %v2364_v36 = vld [vmem:[#allocation2 + $0x58] sm:$0xff] }
 0x176   : > { %2740 = vst.msk [vmem:[%s4957_s12 + $0x10] sm:$0xf] %vm2739_vm3, %v4066_v42  ;;  %v4067_v54 = vpack.c.bf16 %v2660_v51, %v2660_v51  ;;  %3375 = vst.msk [vmem:[%s4929_s8 + $0x10] sm:$0xf] %vm2739_vm3, %v4086_v55  ;;  %v3464_v1 = vsel %vm550_vm2, %v3445_v60, 0.0  ;;  %v3415_v5 = vadd.f32 %v3414_v46, %v3411_v59  ;;  %v3088_v6 = vadd.f32 %v3087_v53, %v3084_v57  ;;  %v2362_v41 = vld [vmem:[#allocation2 + $0x48] sm:$0xff] }
 0x177   : > { %2743 = vst.msk [vmem:[%s4957_s12 + $0x1c] sm:$0xf] %vm2739_vm3, %v4069_v50  ;;  %v4344_v63 = vpop.f32.mrb[72].mxu0  ;;  %3378 = vst.msk [vmem:[%s4929_s8 + $0x1c] sm:$0xf] %vm2739_vm3, %v4089_v58  ;;  %v4362_v3 = vpop.f32.mrb[72].mxu1  ;;  %v3465_v9 = vadd.f32 %v3464_v1, %v3461_v24 }
 0x178   : > { %2741 = vst.msk [vmem:[%s4957_s12 + $0x14] sm:$0xf] %vm2739_vm3, %v4067_v54  ;;  %v2637_v2 = vadd.f32 %v4344_v63, %v2363_v62  ;;  %v2596_v4 = vpop.f32.mrb[73].mxu0  ;;  %v3468_v8 = vsel %vm550_vm2, %v3447_v52, 0.0  ;;  %3376 = vst.msk [vmem:[%s4929_s8 + $0x14] sm:$0xf] %vm2739_vm3, %v4087_v61  ;;  %v4092_v10 = vpack.c.bf16 %v4362_v3, %v4362_v3  ;;  %v3451_v17 = vmul.f32 %v4362_v3, %v4362_v3 }
 0x179   : > { %v2665_v7 = vld [vmem:[#allocation2 + $0x30] sm:$0xff]  ;;  %v3276_v12 = vpop.f32.mrb[73].mxu1  ;;  %v4345_v13 = vpop.f32.mrb[74].mxu0  ;;  %v4990_v16 = vsel %vm550_vm2, %v4362_v3, 0.0  ;;  %v2635_v18 = vadd.f32 %v2596_v4, %v2361_v11  ;;  %v3469_v39 = vadd.f32 %v3468_v8, %v3465_v9  ;;  %v2365_v53 = vld [vmem:[#allocation2 + $0x60] sm:$0xff] }
 0x17a   : > { %v4072_v14 = vpack.c.bf16 %v2665_v7, %v2665_v7  ;;  %v2663_v15 = vld [vmem:[#allocation2 + $0x20] sm:$0xff]  ;;  %2653 = vst.msk [vmem:[#allocation2 + $0x50] sm:$0xff] %vm550_vm2, %v2637_v2  ;;  %v2599_v19 = vpop.f32.mrb[75].mxu0  ;;  %v4363_v20 = vpop.f32.mrb[74].mxu1  ;;  %v3040_v21 = vsel %vm550_vm2, %v2665_v7, 0.0  ;;  %v3074_v27 = vmul.f32 %v2665_v7, %v2665_v7  ;;  %v4090_v31 = vpack.c.bf16 %v3276_v12, %v3276_v12  ;;  %v2367_v46 = vld [vmem:[#allocation2 + $0x70] sm:$0xff] }
 0x17b   : > { %v4070_v22 = vpack.c.bf16 %v2663_v15, %v2663_v15  ;;  %v3036_v23 = vsel %vm550_vm2, %v2663_v15, 0.0  ;;  %v3072_v24 = vmul.f32 %v2663_v15, %v2663_v15  ;;  %3381 = vst.msk [vmem:[%s4929_s8 + $0x28] sm:$0xf] %vm2739_vm3, %v4092_v10  ;;  %v3279_v26 = vpop.f32.mrb[75].mxu1  ;;  %v3418_v34 = vsel %vm550_vm2, %v3276_v12, 0.0 }
 0x17c   : > { %v2666_v25 = vld [vmem:[#allocation2 + $0x38] sm:$0xff]  ;;  %2746 = vst.msk [vmem:[%s4957_s12 + $0x28] sm:$0xf] %vm2739_vm3, %v4072_v14  ;;  %v3037_v28 = vadd.f32 %v3036_v23, %v3033_v0  ;;  %v2664_v30 = vld [vmem:[#allocation2 + $0x28] sm:$0xff]  ;;  %v3449_v35 = vmul.f32 %v3276_v12, %v3276_v12  ;;  %3379 = vst.msk [vmem:[%s4929_s8 + $0x20] sm:$0xf] %vm2739_vm3, %v4090_v31  ;;  %v3419_v38 = vadd.f32 %v3418_v34, %v3415_v5 }
 0x17d   : > { %v4073_v29 = vpack.c.bf16 %v2666_v25, %v2666_v25  ;;  %2651 = vst.msk [vmem:[#allocation2 + $0x40] sm:$0xff] %vm550_vm2, %v2635_v18  ;;  %v3091_v32 = vsel %vm550_vm2, %v3072_v24, 0.0  ;;  %v4071_v33 = vpack.c.bf16 %v2664_v30, %v2664_v30  ;;  %v2638_v40 = vadd.f32 %v4345_v13, %v2364_v36  ;;  %v2368_v18 = vld [vmem:[#allocation2 + $0x78] sm:$0xff] }
 0x17e   : > { %2744 = vst.msk [vmem:[%s4957_s12 + $0x20] sm:$0xf] %vm2739_vm3, %v4070_v22  ;;  %v3092_v37 = vadd.f32 %v3091_v32, %v3088_v6  ;;  %v3472_v42 = vsel %vm550_vm2, %v3449_v35, 0.0  ;;  %v2636_v43 = vadd.f32 %v2599_v19, %v2362_v41  ;;  %v4093_v44 = vpack.c.bf16 %v4363_v20, %v4363_v20  ;;  %v2366_v19 = vld [vmem:[#allocation2 + $0x68] sm:$0xff] }
 0x17f   : > { %2747 = vst.msk [vmem:[%s4957_s12 + $0x2c] sm:$0xf] %vm2739_vm3, %v4073_v29  ;;  %2745 = vst.msk [vmem:[%s4957_s12 + $0x24] sm:$0xf] %vm2739_vm3, %v4071_v33  ;;  %v4091_v45 = vpack.c.bf16 %v3279_v26, %v3279_v26  ;;  %v4348_v47 = vpop.f32.mrb[76].mxu0  ;;  %v3095_v48 = vsel %vm550_vm2, %v3074_v27, 0.0  ;;  %v3473_v50 = vadd.f32 %v3472_v42, %v3469_v39  ;;  %v3041_v60 = vadd.f32 %v3040_v21, %v3037_v28 }
 0x180   : > { %v3476_v49 = vsel %vm550_vm2, %v3451_v17, 0.0  ;;  %2654 = vst.msk [vmem:[#allocation2 + $0x58] sm:$0xff] %vm550_vm2, %v2638_v40  ;;  %v2641_v51 = vadd.f32 %v4348_v47, %v2367_v46  ;;  %v4366_v52 = vpop.f32.mrb[76].mxu1  ;;  %v2612_v54 = vpop.f32.mrb[77].mxu0  ;;  %2652 = vst.msk [vmem:[#allocation2 + $0x48] sm:$0xff] %vm550_vm2, %v2636_v43  ;;  %v3096_v0 = vadd.f32 %v3095_v48, %v3092_v37  ;;  %v3423_v6 = vadd.f32 %v4990_v16, %v3419_v38 }
 0x181   : > { %v2669_v55 = vld [vmem:[#allocation2 + $0x50] sm:$0xff]  ;;  %3382 = vst.msk [vmem:[%s4929_s8 + $0x2c] sm:$0xf] %vm2739_vm3, %v4093_v44  ;;  %3380 = vst.msk [vmem:[%s4929_s8 + $0x24] sm:$0xf] %vm2739_vm3, %v4091_v45  ;;  %v4096_v56 = vpack.c.bf16 %v4366_v52, %v4366_v52  ;;  %v3455_v57 = vmul.f32 %v4366_v52, %v4366_v52  ;;  %v2639_v59 = vadd.f32 %v2612_v54, %v2365_v53  ;;  %v3292_v58 = vpop.f32.mrb[77].mxu1 }
 0x182   : > { %v4349_v61 = vpop.f32.mrb[78].mxu0  ;;  %v4076_v62 = vpack.c.bf16 %v2669_v55, %v2669_v55  ;;  %2657 = vst.msk [vmem:[#allocation2 + $0x70] sm:$0xff] %vm550_vm2, %v2641_v51  ;;  %v3430_v63 = vsel %vm550_vm2, %v4366_v52, 0.0  ;;  %v4094_v1 = vpack.c.bf16 %v3292_v58, %v3292_v58  ;;  %v4367_v3 = vpop.f32.mrb[78].mxu1  ;;  %v3078_v4 = vmul.f32 %v2669_v55, %v2669_v55 }
 0x183   : > { %v2615_v2 = vpop.f32.mrb[79].mxu0  ;;  %3385 = vst.msk [vmem:[%s4929_s8 + $0x38] sm:$0xf] %vm2739_vm3, %v4096_v56  ;;  %v3426_v7 = vsel %vm550_vm2, %v3292_v58, 0.0  ;;  %v3453_v8 = vmul.f32 %v3292_v58, %v3292_v58  ;;  %v3295_v9 = vpop.f32.mrb[79].mxu1  ;;  %v3484_v13 = vsel %vm550_vm2, %v3455_v57, 0.0  ;;  %v3477_v17 = vadd.f32 %v3476_v49, %v3473_v50 }
 0x184   : > { %v2667_v5 = vld [vmem:[#allocation2 + $0x40] sm:$0xff]  ;;  %2655 = vst.msk [vmem:[#allocation2 + $0x60] sm:$0xff] %vm550_vm2, %v2639_v59  ;;  %v3427_v15 = vadd.f32 %v3426_v7, %v3423_v6  ;;  %v2642_v21 = vadd.f32 %v4349_v61, %v2368_v18  ;;  %v2640_v22 = vadd.f32 %v2615_v2, %v2366_v19  ;;  %v4097_v23 = vpack.c.bf16 %v4367_v3, %v4367_v3 }
 0x185   : > { %2750 = vst.msk [vmem:[%s4957_s12 + $0x38] sm:$0xf] %vm2739_vm3, %v4076_v62  ;;  %v4074_v10 = vpack.c.bf16 %v2667_v5, %v2667_v5  ;;  %v3044_v11 = vsel %vm550_vm2, %v2667_v5, 0.0  ;;  %v3076_v12 = vmul.f32 %v2667_v5, %v2667_v5  ;;  %3383 = vst.msk [vmem:[%s4929_s8 + $0x30] sm:$0xf] %vm2739_vm3, %v4094_v1  ;;  %v3480_v16 = vsel %vm550_vm2, %v3453_v8, 0.0 }
 0x186   : > { %v3045_v14 = vadd.f32 %v3044_v11, %v3041_v60  ;;  %v3431_v25 = vadd.f32 %v3430_v63, %v3427_v15  ;;  %v3481_v26 = vadd.f32 %v3480_v16, %v3477_v17  ;;  %2658 = vst.msk [vmem:[#allocation2 + $0x78] sm:$0xff] %vm550_vm2, %v2642_v21  ;;  %2656 = vst.msk [vmem:[#allocation2 + $0x68] sm:$0xff] %vm550_vm2, %v2640_v22  ;;  %v3048_v33 = vsel %vm550_vm2, %v2669_v55, 0.0 }
 0x187   : > { %2748 = vst.msk [vmem:[%s4957_s12 + $0x30] sm:$0xf] %vm2739_vm3, %v4074_v10  ;;  %v3099_v20 = vsel %vm550_vm2, %v3076_v12, 0.0  ;;  %v2670_v24 = vld [vmem:[#allocation2 + $0x58] sm:$0xff]  ;;  %v2668_v28 = vld [vmem:[#allocation2 + $0x48] sm:$0xff]  ;;  %v4095_v30 = vpack.c.bf16 %v3295_v9, %v3295_v9  ;;  %v3103_v40 = vsel %vm550_vm2, %v3078_v4, 0.0 }
 0x188   : > { %v4077_v27 = vpack.c.bf16 %v2670_v24, %v2670_v24  ;;  %v3100_v29 = vadd.f32 %v3099_v20, %v3096_v0  ;;  %3386 = vst.msk [vmem:[%s4929_s8 + $0x3c] sm:$0xf] %vm2739_vm3, %v4097_v23  ;;  %v4075_v31 = vpack.c.bf16 %v2668_v28, %v2668_v28  ;;  %v3434_v34 = vrot.slane %v3431_v25, 4 }
 0x189   : > { %v2673_v32 = vld [vmem:[#allocation2 + $0x70] sm:$0xff]  ;;  %v3485_v35 = vadd.f32 %v3484_v13, %v3481_v26  ;;  %v3049_v38 = vadd.f32 %v3048_v33, %v3045_v14  ;;  %3384 = vst.msk [vmem:[%s4929_s8 + $0x34] sm:$0xf] %vm2739_vm3, %v4095_v30 }
 0x18a   : > { %2751 = vst.msk [vmem:[%s4957_s12 + $0x3c] sm:$0xf] %vm2739_vm3, %v4077_v27  ;;  %v4080_v37 = vpack.c.bf16 %v2673_v32, %v2673_v32  ;;  %v3082_v39 = vmul.f32 %v2673_v32, %v2673_v32  ;;  %2749 = vst.msk [vmem:[%s4957_s12 + $0x34] sm:$0xf] %vm2739_vm3, %v4075_v31  ;;  %v3435_v44 = vadd.f32 %v3434_v34, %v3431_v25  ;;  %v3056_v48 = vsel %vm550_vm2, %v2673_v32, 0.0 }
 0x18b   : > { %v2671_v36 = vld [vmem:[#allocation2 + $0x60] sm:$0xff]  ;;  %v3104_v46 = vadd.f32 %v3103_v40, %v3100_v29  ;;  %v3488_v47 = vrot.slane %v3485_v35, 4 }
 0x18c   : > { %v4078_v41 = vpack.c.bf16 %v2671_v36, %v2671_v36  ;;  %v3052_v42 = vsel %vm550_vm2, %v2671_v36, 0.0  ;;  %v3080_v43 = vmul.f32 %v2671_v36, %v2671_v36  ;;  %2754 = vst.msk [vmem:[%s4957_s12 + $0x48] sm:$0xf] %vm2739_vm3, %v4080_v37  ;;  %v3436_v50 = vrot.slane %v3435_v44, 2 }
 0x18d   : > { %v3053_v45 = vadd.f32 %v3052_v42, %v3049_v38  ;;  %v3489_v53 = vadd.f32 %v3488_v47, %v3485_v35  ;;  %v3111_v54 = vsel %vm550_vm2, %v3082_v39, 0.0  ;;  %v2674_v56 = vld [vmem:[#allocation2 + $0x78] sm:$0xff]  ;;  %v2672_v57 = vld [vmem:[#allocation2 + $0x68] sm:$0xff] }
 0x18e   : > { %2752 = vst.msk [vmem:[%s4957_s12 + $0x40] sm:$0xf] %vm2739_vm3, %v4078_v41  ;;  %v3107_v49 = vsel %vm550_vm2, %v3080_v43, 0.0  ;;  %v3437_v55 = vadd.f32 %v3436_v50, %v3435_v44  ;;  %v4081_v61 = vpack.c.bf16 %v2674_v56, %v2674_v56  ;;  %v4079_v63 = vpack.c.bf16 %v2672_v57, %v2672_v57 }
 0x18f   : > { %v3057_v51 = vadd.f32 %v3056_v48, %v3053_v45  ;;  %v3108_v52 = vadd.f32 %v3107_v49, %v3104_v46  ;;  %v3490_v58 = vrot.slane %v3489_v53, 2 }
 0x190   : > { %v3438_v62 = vrot.slane %v3437_v55, 1  ;;  %2755 = vst.msk [vmem:[%s4957_s12 + $0x4c] sm:$0xf] %vm2739_vm3, %v4081_v61  ;;  %2753 = vst.msk [vmem:[%s4957_s12 + $0x44] sm:$0xf] %vm2739_vm3, %v4079_v63 }
 0x191   : > { %v3060_v59 = vrot.slane %v3057_v51, 4  ;;  %v3112_v60 = vadd.f32 %v3111_v54, %v3108_v52  ;;  %v3491_v2 = vadd.f32 %v3490_v58, %v3489_v53 }
 0x192   : > { %v3439_v3 = vadd.f32 %v3438_v62, %v3437_v55 }
 0x193   : > { %v3061_v0 = vadd.f32 %v3060_v59, %v3057_v51  ;;  %v3115_v1 = vrot.slane %v3112_v60, 4  ;;  %v3492_v6 = vrot.slane %v3491_v2, 1 }
 0x194   : > { %3440 = vst.msk [vmem:[%s362_s16] sm:$0x1] %vm3066_vm4, %v3439_v3 }
 0x195   : > { %v3062_v4 = vrot.slane %v3061_v0, 2  ;;  %v3116_v5 = vadd.f32 %v3115_v1, %v3112_v60  ;;  %v3493_v9 = vadd.f32 %v3492_v6, %v3491_v2 }
 0x197   : > { %v3063_v7 = vadd.f32 %v3062_v4, %v3061_v0  ;;  %v3117_v8 = vrot.slane %v3116_v5, 2  ;;  %3494 = vst.msk [vmem:[%s362_s16 + $0x1] sm:$0x1] %vm3066_vm4, %v3493_v9 }
 0x199   : > { %v3064_v10 = vrot.slane %v3063_v7, 1  ;;  %v3118_v11 = vadd.f32 %v3117_v8, %v3116_v5 }
 0x19b   : > { %v3065_v12 = vadd.f32 %v3064_v10, %v3063_v7  ;;  %v3119_v13 = vrot.slane %v3118_v11, 1 }
 0x19d   : > { %3067 = vst.msk [vmem:[%s347_s19] sm:$0x1] %vm3066_vm4, %v3065_v12  ;;  %v3120_v14 = vadd.f32 %v3119_v13, %v3118_v11 }
 0x19f   : > { %3121 = vst.msk [vmem:[%s347_s19 + $0x1] sm:$0x1] %vm3066_vm4, %v3120_v14 }
 0x1a0 PF: > { %s17_s23 = sadd.s32 1, %s4509_s23   ;;  %s5090_s21 = smov %s4505_s22 }
 0x1a1   : > { %p14_p5 = scmp.ge.s32.totalorder %s17_s23, 4   ;;  %s5091_s22 = smov %s5093_s24 }
 0x1a3   :  { %16 = sbr.rel (!%p14_p5) target bundleno = 2 (0x2), region = 115 }

// kernel: resnext_block_forward.4
= control target key start
LH: loop header
LB: loop body
LE: loop exit
PB: predicated region body
PF: predicated region fallthrough
CT: control target
= control target key end

     0   :  { %s4992_s15 = smov 0   ;;  %s4994_s16 = smov 0   ;;  %s5467_s0 = inlined_call_operand.vmem [shape: bf16[2,184,32], index: 0, kind: input, shape index: {}]   ;;  %s5468_s1 = inlined_call_operand.vmem [shape: f32[2,32], index: 1, kind: input, shape index: {}]   ;;  %s5469_s2 = inlined_call_operand.vmem [shape: bf16[1,9,32,32], index: 2, kind: input, shape index: {}]   ;;  %s5470_s3 = inlined_call_operand.vmem [shape: bf16[2,128,32], index: 3, kind: output, shape index: {0}]   ;;  %s5471_s4 = inlined_call_operand.vmem [shape: f32[2,2,32], index: 4, kind: output, shape index: {1}]  }
   0x1   :  { %s4996_s17 = smov 0  }
   0x2 LB: > { %s27_s18 = sadd.s32 1, %s4960_s16  ;;  %p4243_p0 = scmp.ge.s32.totalorder %s4964_s17, 1  ;;  %s4964_s17 = sphi %s4996_s17, %s15_s17   ;;  %s4960_s16 = sphi %s4994_s16, %s5473_s16   ;;  %s4956_s15 = sphi %s4992_s15, %s5472_s15  }
   0x3   : > { %p29_p1 = scmp.ge.s32.totalorder %s27_s18, 2  ;;  %p205_p2 = scmp.lt.s32.totalorder %s4964_s17, 3 }
   0x5   : > { %s5475_s18 = smov (%p29_p1, %s27_s18), 0  ;;  %p206_p3 = pnand %p4243_p0, %p205_p2 }
   0x6   : > { %v4846_v0 = vld [vmem:[%s5469_s2] sm:$0xff] (!%p206_p3)   ;;  %p253_p4 = scmp.lt.s32.totalorder (!%p206_p3), %s4956_s15, 1  ;;  %v4847_v1 = vld [vmem:[%s5469_s2 + $0x8] sm:$0xff] (!%p206_p3)   ;;  %vm1009_vm0 = vcmask (!%p206_p3), 257024   ;;  %v4966_v2 = vmov (!%p206_p3), 0.0|0.0   ;;  %v5030_v5 = vld [vmem:[%s5469_s2 + $0x10] sm:$0xff] (!%p206_p3)  }
   0x7   : > { %209 = sbr.rel (%p206_p3) target bundleno = 434 (0x1b2), region = 32  ;;  %4816 = vmatprep.subr.bf16.mxu1 (!%p206_p3), %v4846_v0  ;;  %4636 = vmatprep.subr.bf16.mxu0 (!%p206_p3), %v4846_v0  ;;  %v4272_v3 = vcombine.low (!%p206_p3), %v4966_v2, %v4966_v2  ;;  %v4273_v4 = vcombine.high (!%p206_p3), %v4966_v2, %v4966_v2  ;;  %1019 = vst.msk [vmem:[#allocation2 + $0x24] sm:$0xf] (!%p206_p3), %vm1009_vm0, %v4966_v2  ;;  %1021 = vst.msk [vmem:[#allocation2 + $0x2c] sm:$0xf] (!%p206_p3), %vm1009_vm0, %v4966_v2  ;;  %v5047_v7 = vld [vmem:[%s5469_s2 + $0x20] sm:$0xff] (!%p206_p3)  }
   0x8   : > { %4818 = vmatpush3.bf16.msra.mxu1 (!%p206_p3), %v4846_v0  ;;  %1015 = vst.msk [vmem:[#allocation2 + $0x14] sm:$0xf] (!%p206_p3), %vm1009_vm0, %v4966_v2  ;;  %1017 = vst.msk [vmem:[#allocation2 + $0x1c] sm:$0xf] (!%p206_p3), %vm1009_vm0, %v4966_v2  ;;  %4637 = vmatpush3.bf16.msra.mxu0 (!%p206_p3), %v4846_v0  ;;  %v4248_v6 = vld [vmem:[%s5468_s1] ss:$0 sm:$0xff] (!%p206_p3) }
   0x9   : > { %1023 = vst.msk [vmem:[#allocation2 + $0x34] sm:$0xf] (!%p206_p3), %vm1009_vm0, %v4966_v2  ;;  %1025 = vst.msk [vmem:[#allocation2 + $0x3c] sm:$0xf] (!%p206_p3), %vm1009_vm0, %v4966_v2  ;;  %4817 = vmatprep.subr.bf16.mxu1 (!%p206_p3), %v4847_v1  ;;  %4638 = vmatprep.subr.bf16.mxu0 (!%p206_p3), %v4847_v1  ;;  %v4249_v16 = vld [vmem:[%s5468_s1 + $0x1] ss:$0 sm:$0xff] (!%p206_p3) }
   0xa   : > { %1027 = vst.msk [vmem:[#allocation2 + $0x44] sm:$0xf] (!%p206_p3), %vm1009_vm0, %v4966_v2  ;;  %1029 = vst.msk [vmem:[#allocation2 + $0x4c] sm:$0xf] (!%p206_p3), %vm1009_vm0, %v4966_v2  ;;  %vm1097_vm1 = vsmask.f32 (!%p206_p3), 4352 }
   0xb   : > { %1011 = vst.msk [vmem:[#allocation2 + $0x4] sm:$0xf] (!%p206_p3), %vm1009_vm0, %v4273_v4  ;;  %1012 = vst.msk [vmem:[#allocation2 + $0x8] sm:$0xf] (!%p206_p3), %vm1009_vm0, %v4272_v3  ;;  %vm1190_vm2 = vcmask (!%p206_p3), 261120   ;;  %vm4026_vm4 = vcmask (!%p206_p3), 253952  }
   0xc   : > { %1013 = vst.msk [vmem:[#allocation2 + $0xc] sm:$0xf] (!%p206_p3), %vm1009_vm0, %v4273_v4  ;;  %1030 = vst.msk [vmem:[#allocation2 + $0x50] sm:$0xf] (!%p206_p3), %vm1009_vm0, %v4272_v3  ;;  %4819 = vmatpush3.bf16.msra.mxu1 (!%p206_p3), %v4847_v1  ;;  %4639 = vmatpush3.bf16.msra.mxu0 (!%p206_p3), %v4847_v1  ;;  %vm1651_vm3 = vsmask.f32 (!%p206_p3), 7424 }
   0xd   : > { %1031 = vst.msk [vmem:[#allocation2 + $0x54] sm:$0xf] (!%p206_p3), %vm1009_vm0, %v4273_v4  ;;  %1032 = vst.msk [vmem:[#allocation2 + $0x58] sm:$0xf] (!%p206_p3), %vm1009_vm0, %v4272_v3  ;;  %4656 = vmatprep.subr.bf16.mxu1 (!%p206_p3), %v5030_v5  ;;  %4676 = vmatprep.subr.bf16.mxu0 (!%p206_p3), %v5047_v7 }
   0xe   : > { %s5477_s15 = smov (!%p253_p4, %s4956_s15), 1 }
   0xf   : > { %s4820_s23 = smul.u32 92, %s5477_s15  ;;  %s4513_s19 = sshll.u32 %s5477_s15, 6 }
  0x10   : > { %s5385_s22 = scalar_lea.vmem %s5470_s3, %s4513_s19 }
  0x11   : > { %s260_s30 = scalar_lea.vmem %s5467_s0, %s4820_s23  ;;  %v4857_v34 = vld [vmem:[#allocation2 + $0x44] ss:$0 sps:$4 sm:$0xff]   ;;  %s4247_s23 = sshll.u32 %s5477_s15, 1 }
  0x12   : > { %v298_v8 = vld [vmem:[%s260_s30 + $0x28] ss:$8 sps:$4 sm:$0xff]   ;;  %v294_v10 = vld [vmem:[%s260_s30 + $0x18] ss:$40 sps:$4 sm:$0xff]   ;;  %v1170_v52 = vshrl.u32 %v4857_v34, 16  ;;  %v1173_v56 = vshll.u32 %v4857_v34, 16  ;;  %s284_s26 = scalar_lea.vmem %s5471_s4, %s4247_s23 }
  0x13   : > { %v302_v9 = vld [vmem:[%s260_s30 + $0x10] ss:$40 sps:$4 sm:$0xff]   ;;  %v321_v11 = vunpack.c.l.bf16 %v298_v8  ;;  %v323_v12 = vunpack.c.h.bf16 %v298_v8  ;;  %v296_v15 = vld [vmem:[%s260_s30 + $0x20] ss:$40 sps:$4 sm:$0xff]   ;;  %v317_v17 = vunpack.c.l.bf16 %v294_v10  ;;  %v327_v18 = vunpack.c.h.bf16 %v294_v10 }
  0x14   : > { %v325_v13 = vunpack.c.h.bf16 %v302_v9  ;;  %v315_v14 = vunpack.c.l.bf16 %v302_v9  ;;  %v319_v19 = vunpack.c.l.bf16 %v296_v15  ;;  %v4852_v31 = vld [vmem:[#allocation2 + $0x4] sm:$0xf8]   ;;  %v329_v36 = vunpack.c.h.bf16 %v296_v15 }
  0x15   : > { %v348_v20 = vmul.f32 %v4248_v6, %v321_v11  ;;  %v350_v21 = vmul.f32 %v4248_v6, %v323_v12  ;;  %v344_v24 = vmul.f32 %v4248_v6, %v317_v17  ;;  %v354_v25 = vmul.f32 %v4248_v6, %v327_v18  ;;  %v5060_v57 = vld [vmem:[#allocation2 + $0x8] sm:$0xff]  }
  0x16   : > { %v352_v22 = vmul.f32 %v4248_v6, %v325_v13  ;;  %v342_v23 = vmul.f32 %v4248_v6, %v315_v14  ;;  %v346_v26 = vmul.f32 %v4248_v6, %v319_v19  ;;  %v1099_v41 = vshrl.u32 %v4852_v31, 16 }
  0x17   : > { %v375_v27 = vadd.f32 %v4249_v16, %v348_v20  ;;  %v377_v28 = vadd.f32 %v4249_v16, %v350_v21  ;;  %v371_v32 = vadd.f32 %v4249_v16, %v344_v24  ;;  %v381_v33 = vadd.f32 %v4249_v16, %v354_v25 }
  0x18   : > { %v379_v29 = vadd.f32 %v4249_v16, %v352_v22  ;;  %v369_v30 = vadd.f32 %v4249_v16, %v342_v23  ;;  %v373_v35 = vadd.f32 %v4249_v16, %v346_v26  ;;  %v356_v50 = vmul.f32 %v4248_v6, %v329_v36 }
  0x19   : > { %v398_v37 = vmax.f32 %v375_v27, 0.0  ;;  %v400_v38 = vmax.f32 %v377_v28, 0.0  ;;  %v394_v42 = vmax.f32 %v371_v32, 0.0  ;;  %v404_v43 = vmax.f32 %v381_v33, 0.0 }
  0x1a   : > { %v402_v39 = vmax.f32 %v379_v29, 0.0  ;;  %v392_v40 = vmax.f32 %v369_v30, 0.0  ;;  %v1102_v51 = vshll.u32 %v4852_v31, 16  ;;  %v396_v53 = vmax.f32 %v373_v35, 0.0 }
  0x1b   : > { %v4520_v44 = vpack.c.bf16 %v398_v37, %v398_v37  ;;  %v4522_v45 = vpack.c.bf16 %v400_v38, %v400_v38  ;;  %v4516_v48 = vpack.c.bf16 %v394_v42, %v394_v42  ;;  %v4526_v49 = vpack.c.bf16 %v404_v43, %v404_v43  ;;  %v4856_v42 = vld [vmem:[%s5469_s2 + $0x18] sm:$0xff]  }
  0x1c   : > { %v4524_v46 = vpack.c.bf16 %v402_v39, %v402_v39  ;;  %v4514_v47 = vpack.c.bf16 %v392_v40, %v392_v40  ;;  %v1101_v54 = vrot.slane %v1099_v41, 3  ;;  %v4518_v55 = vpack.c.bf16 %v396_v53, %v396_v53 }
  0x1d   : > { %1020 = vst.msk [vmem:[#allocation2 + $0x28] sm:$0xf] %vm1009_vm0, %v4520_v44  ;;  %1022 = vst.msk [vmem:[#allocation2 + $0x30] sm:$0xf] %vm1009_vm0, %v4522_v45  ;;  %v383_v58 = vadd.f32 %v4249_v16, %v356_v50  ;;  %v1104_v59 = vrot.slane %v1102_v51, 4  ;;  %v5063_v60 = vrot.slane %v1170_v52, 3 }
  0x1e   : > { %1024 = vst.msk [vmem:[#allocation2 + $0x38] sm:$0xf] %vm1009_vm0, %v4524_v46  ;;  %1014 = vst.msk [vmem:[#allocation2 + $0x10] sm:$0xf] %vm1009_vm0, %v4514_v47  ;;  %v5065_v1 = vrot.slane %v1173_v56, 4  ;;  %v1655_v2 = vshll.u32 %v5060_v57, 16 }
  0x1f   : > { %1016 = vst.msk [vmem:[#allocation2 + $0x18] sm:$0xf] %vm1009_vm0, %v4516_v48  ;;  %1026 = vst.msk [vmem:[#allocation2 + $0x40] sm:$0xf] %vm1009_vm0, %v4526_v49  ;;  %v406_v62 = vmax.f32 %v383_v58, 0.0  ;;  %v1105_v8 = vor.u32 %v1104_v59, %v1101_v54  ;;  %v1653_v49 = vshrl.u32 %v5060_v57, 16 }
  0x20   : > { %1018 = vst.msk [vmem:[#allocation2 + $0x20] sm:$0xf] %vm1009_vm0, %v4518_v55  ;;  %v1176_v48 = vor.u32 %v5065_v1, %v5063_v60  ;;  %v4863_v52 = vld [vmem:[%s5469_s2 + $0x28] sm:$0xff]   ;;  %v1657_v53 = vrot.slane %v1655_v2, 1  ;;  %v4861_v56 = vld [vmem:[%s5469_s2 + $0x30] sm:$0xff]  }
  0x21   : > { %v4528_v10 = vpack.c.bf16 %v406_v62, %v406_v62  ;;  %v4860_v59 = vld [vmem:[#allocation2 + $0x8] sm:$0xff]  }
  0x22   : > { %v1658_v62 = vor.u32 %v1657_v53, %v1653_v49 }
  0x23   : > { %1028 = vst.msk [vmem:[#allocation2 + $0x48] sm:$0xf] %vm1009_vm0, %v4528_v10 }
  0x24   : > { %v4848_v61 = vld [vmem:[#allocation2 + $0x24] sm:$0xff]   ;;  %v4849_v63 = vld [vmem:[#allocation2 + $0x2c] sm:$0xff]  }
  0x25   : > { %v4851_v0 = vld [vmem:[#allocation2 + $0x34] sm:$0xff]   ;;  %v1134_v3 = vshrl.u32 %v4848_v61, 16  ;;  %v1137_v4 = vshll.u32 %v4848_v61, 16  ;;  %v4853_v6 = vld [vmem:[#allocation2 + $0xc] sm:$0xff]   ;;  %v1143_v11 = vshrl.u32 %v4849_v63, 16  ;;  %v1146_v12 = vshll.u32 %v4849_v63, 16 }
  0x26   : > { %v4854_v9 = vld [vmem:[#allocation2 + $0x14] sm:$0xff]   ;;  %v1152_v13 = vshrl.u32 %v4851_v0, 16  ;;  %v1155_v14 = vshll.u32 %v4851_v0, 16  ;;  %v1107_v17 = vshrl.u32 %v4853_v6, 16  ;;  %v1110_v18 = vshll.u32 %v4853_v6, 16  ;;  %v4855_v23 = vld [vmem:[#allocation2 + $0x3c] sm:$0xff]  }
  0x27   : > { %v1136_v15 = vrot.slane %v1134_v3, 3  ;;  %v1139_v16 = vrot.slane %v1137_v4, 4  ;;  %v1145_v19 = vrot.slane %v1143_v11, 3  ;;  %v1148_v20 = vrot.slane %v1146_v12, 4  ;;  %v4859_v24 = vld [vmem:[#allocation2 + $0x1c] sm:$0xff]   ;;  %v4865_v37 = vld [vmem:[#allocation2 + $0x10] sm:$0xff]  }
  0x28   : > { %v1154_v21 = vrot.slane %v1152_v13, 3  ;;  %v1157_v22 = vrot.slane %v1155_v14, 4  ;;  %v1109_v26 = vrot.slane %v1107_v17, 3  ;;  %v1112_v27 = vrot.slane %v1110_v18, 4  ;;  %v4867_v58 = vld [vmem:[#allocation2 + $0x18] sm:$0xff]   ;;  %v4869_v0 = vld [vmem:[%s5469_s2 + $0x40] sm:$0xff]  }
  0x29   : > { %v1140_v25 = vor.u32 %v1139_v16, %v1136_v15  ;;  %v1116_v28 = vshrl.u32 %v4854_v9, 16  ;;  %v1149_v29 = vor.u32 %v1148_v20, %v1145_v19  ;;  %v1119_v31 = vshll.u32 %v4854_v9, 16  ;;  %v4870_v1 = vld [vmem:[#allocation2 + $0x20] sm:$0xff]   ;;  %v4872_v9 = vld [vmem:[#allocation2 + $0x28] sm:$0xff]   ;;  %v4862_v10 = vld [vmem:[#allocation2 + $0x10] sm:$0xff]  }
  0x2a   : > { %v1158_v30 = vor.u32 %v1157_v22, %v1154_v21  ;;  %v1161_v32 = vshrl.u32 %v4855_v23, 16  ;;  %v1113_v33 = vor.u32 %v1112_v27, %v1109_v26  ;;  %v1164_v35 = vshll.u32 %v4855_v23, 16  ;;  %v4875_v13 = vld [vmem:[#allocation2 + $0x30] sm:$0xff]   ;;  %v4866_v14 = vld [vmem:[#allocation2 + $0x18] sm:$0xff]  }
  0x2b   : > { %v1118_v34 = vrot.slane %v1116_v28, 3  ;;  %v1125_v36 = vshrl.u32 %v4859_v24, 16  ;;  %v1150_v38 = vsel %vm1097_vm1, %v1140_v25, %v1149_v29  ;;  %v1121_v40 = vrot.slane %v1119_v31, 4  ;;  %v4873_v18 = vld [vmem:[%s5469_s2 + $0x38] sm:$0xff]   ;;  %v5118_v28 = vld [vmem:[%s5469_s2 + $0x50] sm:$0xff]  }
  0x2c   : > { %v1159_v39 = vsel %vm1097_vm1, %v1149_v29, %v1158_v30  ;;  %v1163_v41 = vrot.slane %v1161_v32, 3  ;;  %4648 = vmatprep.mubr.msk.bf16.mxu1 %vm1190_vm2, %v1150_v38  ;;  %v1114_v43 = vsel %vm1097_vm1, %v1105_v8, %v1113_v33  ;;  %v1166_v44 = vrot.slane %v1164_v35, 4  ;;  %v4877_v27 = vld [vmem:[#allocation2 + $0x38] sm:$0xff]   ;;  %v4871_v29 = vld [vmem:[#allocation2 + $0x28] sm:$0xff]  }
  0x2d   : > { %v1127_v45 = vrot.slane %v1125_v36, 3  ;;  %v1128_v46 = vshll.u32 %v4859_v24, 16  ;;  %4649 = vmatmul.mubr.msk.bf16.vlgmr.msra.gmra.mrb[0].mxu1 %vm1190_vm2, %v1159_v39  ;;  %4640 = vmatprep.mubr.msk.bf16.mxu0 %vm1190_vm2, %v1114_v43  ;;  %v1122_v47 = vor.u32 %v1121_v40, %v1118_v34  ;;  %v1660_v54 = vshll.u32 %v4865_v37, 16  ;;  %v4879_v24 = vld [vmem:[%s5469_s2 + $0x48] sm:$0xff]   ;;  %v4883_v34 = vld [vmem:[#allocation2 + $0x14] sm:$0xff]   ;;  %v5125_v36 = vld [vmem:[%s5469_s2 + $0x60] sm:$0xff]  }
  0x2e   : > { %4657 = vmatpush3.bf16.msra.mxu1 %v5030_v5  ;;  %v1167_v50 = vor.u32 %v1166_v44, %v1163_v41  ;;  %v1668_v2 = vshll.u32 %v4867_v58, 16  ;;  %v1664_v3 = vshrl.u32 %v4865_v37, 16  ;;  %v1672_v6 = vshrl.u32 %v4867_v58, 16  ;;  %v4882_v35 = vld [vmem:[#allocation2 + $0xc] sm:$0xf8]   ;;  %v4876_v53 = vld [vmem:[#allocation2 + $0x38] sm:$0xff]  }
  0x2f   : > { %v1130_v51 = vrot.slane %v1128_v46, 4  ;;  %v1123_v55 = vsel %vm1097_vm1, %v1113_v33, %v1122_v47  ;;  %4658 = vmatprep.subr.bf16.mxu1 %v4856_v42  ;;  %v1662_v63 = vrot.slane %v1660_v54, 1  ;;  %v1676_v8 = vshll.u32 %v4870_v1, 16  ;;  %v4881_v49 = vld [vmem:[#allocation2 + $0x48] ss:$0 sps:$4 sm:$0x11]  }
  0x30   : > { %4641 = vmatmul.mubr.msk.bf16.vlgmr.msra.gmra.mrb[0].mxu0 %vm1190_vm2, %v1123_v55  ;;  %v1168_v57 = vsel %vm1097_vm1, %v1158_v30, %v1167_v50  ;;  %v1177_v60 = vsel %vm1097_vm1, %v1167_v50, %v1176_v48  ;;  %v1670_v11 = vrot.slane %v1668_v2, 1  ;;  %v1684_v17 = vshll.u32 %v4872_v9, 16  ;;  %v4880_v30 = vld [vmem:[#allocation2 + $0x40] sm:$0xff]  }
  0x31   : > { %v1131_v5 = vor.u32 %v1130_v51, %v1127_v45  ;;  %4652 = vmatprep.mubr.msk.bf16.mxu1 %vm1190_vm2, %v1168_v57  ;;  %4677 = vmatpush3.bf16.msra.mxu0 %v5047_v7  ;;  %v1663_v4 = vsel %vm1651_vm3, %v1658_v62, %v1662_v63  ;;  %v1666_v12 = vor.u32 %v1664_v3, %v1662_v63  ;;  %v1678_v16 = vrot.slane %v1676_v8, 1  ;;  %v4887_v58 = vld [vmem:[#allocation2 + $0x24] sm:$0xff]  }
  0x32   : > { %4659 = vmatpush3.bf16.msra.mxu1 %v4856_v42  ;;  %4678 = vmatprep.subr.bf16.mxu0 %v4863_v52  ;;  %v1674_v15 = vor.u32 %v1672_v6, %v1670_v11  ;;  %v1680_v20 = vshrl.u32 %v4870_v1, 16  ;;  %v1688_v21 = vshrl.u32 %v4872_v9, 16  ;;  %v1692_v22 = vshll.u32 %v4875_v13, 16  ;;  %v4878_v1 = vld [vmem:[#allocation2 + $0x40] sm:$0xff]  }
  0x33   : > { %v1132_v61 = vsel %vm1097_vm1, %v1122_v47, %v1131_v5  ;;  %4696 = vmatprep.subr.bf16.mxu1 %v4861_v56  ;;  %v1141_v7 = vsel %vm1097_vm1, %v1131_v5, %v1140_v25  ;;  %v1671_v19 = vsel %vm1651_vm3, %v1666_v12, %v1670_v11  ;;  %v4868_v25 = vld [vmem:[#allocation2 + $0x20] sm:$0xff]   ;;  %v1686_v26 = vrot.slane %v1684_v17, 1  ;;  %v4874_v47 = vld [vmem:[#allocation2 + $0x30] sm:$0xff]  }
  0x34   : > { %4644 = vmatprep.mubr.msk.bf16.mxu0 %vm1190_vm2, %v1132_v61  ;;  %v1679_v23 = vsel %vm1651_vm3, %v1674_v15, %v1678_v16  ;;  %v1682_v31 = vor.u32 %v1680_v20, %v1678_v16  ;;  %v1694_v33 = vrot.slane %v1692_v22, 1  ;;  %v1696_v37 = vshrl.u32 %v4875_v13, 16  ;;  %v4889_v11 = vld [vmem:[#allocation2 + $0x2c] sm:$0xff]   ;;  %v4892_v15 = vld [vmem:[#allocation2 + $0x34] sm:$0xff]  }
  0x35   : > { %4653 = vmatmul.mubr.msk.bf16.gmra.mrb[4].mxu1 %vm1190_vm2, %v1177_v60  ;;  %4679 = vmatpush3.bf16.msra.mxu0 %v4863_v52  ;;  %v1690_v32 = vor.u32 %v1688_v21, %v1686_v26  ;;  %v1700_v38 = vshll.u32 %v4877_v27, 16  ;;  %v1704_v41 = vshrl.u32 %v4877_v27, 16  ;;  %v1708_v42 = vshll.u32 %v4880_v30, 16  ;;  %v4885_v52 = vld [vmem:[#allocation2 + $0x1c] sm:$0xff]   ;;  %v4886_v17 = vld [vmem:[#allocation2 + $0x10] sm:$0xff]  }
  0x36   : > { %4660 = vmatprep.mubr.msk.bf16.mxu1 %vm1190_vm2, %v4860_v59  ;;  %4716 = vmatprep.subr.bf16.mxu0 %v4869_v0  ;;  %v1687_v39 = vsel %vm1651_vm3, %v1682_v31, %v1686_v26  ;;  %v1967_v43 = vshrl.u32 %v4882_v35, 16  ;;  %v1970_v44 = vshll.u32 %v4882_v35, 16  ;;  %v1975_v45 = vshrl.u32 %v4883_v34, 16  ;;  %v4891_v35 = vld [vmem:[#allocation2 + $0x20] sm:$0xff]  }
  0x37   : > { %v1695_v40 = vsel %vm1651_vm3, %v1690_v32, %v1694_v33  ;;  %v1978_v46 = vshll.u32 %v4883_v34, 16  ;;  %v1702_v48 = vrot.slane %v1700_v38, 1  ;;  %v1698_v50 = vor.u32 %v1696_v37, %v1694_v33  ;;  %v4894_v33 = vld [vmem:[%s5469_s2 + $0x58] sm:$0xff]  }
  0x38   : > { %4645 = vmatmul.mubr.msk.bf16.gmra.mrb[4].mxu0 %vm1190_vm2, %v1141_v7  ;;  %v1710_v51 = vrot.slane %v1708_v42, 1  ;;  %v1969_v55 = vrot.slane %v1967_v43, 3  ;;  %v1972_v5 = vrot.slane %v1970_v44, 4  ;;  %v1712_v59 = vshrl.u32 %v4880_v30, 16  ;;  %v4888_v34 = vld [vmem:[#allocation2 + $0x18] sm:$0xff]   ;;  %v4900_v42 = vld [vmem:[%s5469_s2 + $0x68] sm:$0xff]  }
  0x39   : > { %4680 = vmatprep.mubr.msk.bf16.mxu0 %vm1190_vm2, %v1663_v4  ;;  %v1706_v54 = vor.u32 %v1704_v41, %v1702_v48  ;;  %v1980_v57 = vrot.slane %v1978_v46, 4  ;;  %v1703_v60 = vsel %vm1651_vm3, %v1698_v50, %v1702_v48  ;;  %v1716_v61 = vshll.u32 %v4881_v49, 16  ;;  %v5161_v44 = vld [vmem:[%s5469_s2 + $0x70] sm:$0xff]   ;;  %v4893_v48 = vld [vmem:[#allocation2 + $0x28] sm:$0xff]  }
  0x3a   : > { %v1984_v62 = vshrl.u32 %v4885_v52, 16  ;;  %v1987_v63 = vshll.u32 %v4885_v52, 16  ;;  %v1973_v2 = vor.u32 %v1972_v5, %v1969_v55  ;;  %v1993_v3 = vshrl.u32 %v4887_v58, 16  ;;  %v5170_v52 = vld [vmem:[%s5469_s2 + $0x80] sm:$0xff]  }
  0x3b   : > { %v1996_v4 = vshll.u32 %v4887_v58, 16  ;;  %v1714_v6 = vor.u32 %v1712_v59, %v1710_v51  ;;  %v1718_v8 = vrot.slane %v1716_v61, 1  ;;  %v2005_v20 = vshll.u32 %v4889_v11, 16  ;;  %v4908_v58 = vld [vmem:[#allocation2 + $0x1c] sm:$0xff]  }
  0x3c   : > { %v1986_v9 = vrot.slane %v1984_v62, 3  ;;  %v1995_v13 = vrot.slane %v1993_v3, 3  ;;  %v2011_v22 = vshrl.u32 %v4892_v15, 16 }
  0x3d   : > { %4661 = vmatmul.mubr.msk.bf16.vlgmr.msra.gmra.mrb[8].mxu1 %vm1190_vm2, %v4862_v10  ;;  %v1989_v10 = vrot.slane %v1987_v63, 4  ;;  %v1719_v16 = vsel %vm1651_vm3, %v1714_v6, %v1718_v8  ;;  %v2860_v6 = vshll.u32 %v4908_v58, 16 }
  0x3e   : > { %4697 = vmatpush3.bf16.msra.mxu1 %v4861_v56  ;;  %4664 = vmatprep.mubr.msk.bf16.mxu1 %vm1190_vm2, %v4866_v14  ;;  %v1977_v56 = vrot.slane %v1975_v45, 3  ;;  %v1998_v14 = vrot.slane %v1996_v4, 4  ;;  %v2013_v31 = vrot.slane %v2011_v22, 3  ;;  %v4899_v45 = vld [vmem:[#allocation2 + $0x4c] ss:$0 sps:$4 sm:$0xff]   ;;  %v2857_v4 = vshrl.u32 %v4908_v58, 16 }
  0x3f   : > { %4698 = vmatprep.subr.bf16.mxu1 %v4873_v18 }
  0x40   : > { %4681 = vmatmul.mubr.msk.bf16.vlgmr.msra.gmra.mrb[8].mxu0 %vm1190_vm2, %v1671_v19  ;;  %v1981_v7 = vor.u32 %v1980_v57, %v1977_v56  ;;  %v2002_v19 = vshrl.u32 %v4889_v11, 16  ;;  %v1999_v21 = vor.u32 %v1998_v14, %v1995_v13  ;;  %v4896_v56 = vld [vmem:[#allocation2 + $0x30] sm:$0xff]   ;;  %v4909_v11 = vld [vmem:[#allocation2 + $0x28] sm:$0xff]   ;;  %v4901_v14 = vld [vmem:[#allocation2 + $0x40] sm:$0xff]  }
  0x41   : > { %4717 = vmatpush3.bf16.msra.mxu0 %v4869_v0  ;;  %4684 = vmatprep.mubr.msk.bf16.mxu0 %vm1190_vm2, %v1679_v23  ;;  %v1711_v0 = vsel %vm1651_vm3, %v1706_v54, %v1710_v51  ;;  %v2014_v23 = vshll.u32 %v4892_v15, 16  ;;  %v4903_v51 = vld [vmem:[#allocation2 + $0x10] sm:$0xff]   ;;  %v2041_v54 = vshll.u32 %v4899_v45, 16 }
  0x42   : > { %4699 = vmatpush3.bf16.msra.mxu1 %v4873_v18  ;;  %4718 = vmatprep.subr.bf16.mxu0 %v4879_v24  ;;  %v1982_v12 = vsel %vm1097_vm1, %v1973_v2, %v1981_v7  ;;  %v1990_v18 = vor.u32 %v1989_v10, %v1986_v9  ;;  %v2004_v27 = vrot.slane %v2002_v19, 3  ;;  %v4907_v57 = vld [vmem:[#allocation2 + $0x14] sm:$0xf8]   ;;  %v2537_v5 = vshll.u32 %v4903_v51, 16  ;;  %v4906_v10 = vld [vmem:[#allocation2 + $0x20] sm:$0xff]   ;;  %v4913_v19 = vld [vmem:[#allocation2 + $0x2c] sm:$0xff]  }
  0x43   : > { %4736 = vmatprep.subr.bf16.mxu1 %v5118_v28  ;;  %v2016_v32 = vrot.slane %v2014_v23, 4  ;;  %v2043_v62 = vrot.slane %v2041_v54, 4  ;;  %v4898_v2 = vld [vmem:[#allocation2 + $0x38] sm:$0xff]   ;;  %v2852_v3 = vshll.u32 %v4907_v57, 16  ;;  %v2550_v22 = vshll.u32 %v4906_v10, 16 }
  0x44   : > { %v1991_v26 = vsel %vm1097_vm1, %v1981_v7, %v1990_v18  ;;  %v2000_v30 = vsel %vm1097_vm1, %v1990_v18, %v1999_v21  ;;  %v2539_v7 = vrot.slane %v2537_v5, 1  ;;  %v2862_v18 = vrot.slane %v2860_v6, 4 }
  0x45   : > { %4665 = vmatmul.mubr.msk.bf16.gmra.mrb[12].mxu1 %vm1190_vm2, %v4868_v25  ;;  %4719 = vmatpush3.bf16.msra.mxu0 %v4879_v24  ;;  %v4895_v24 = vld [vmem:[#allocation2 + $0x3c] sm:$0xff]   ;;  %v4897_v25 = vld [vmem:[#allocation2 + $0x44] sm:$0xff]   ;;  %v2017_v43 = vor.u32 %v2016_v32, %v2013_v31  ;;  %v2558_v23 = vshll.u32 %v4909_v11, 16 }
  0x46   : > { %4668 = vmatprep.mubr.msk.bf16.mxu1 %vm1190_vm2, %v4871_v29  ;;  %4756 = vmatprep.subr.bf16.mxu0 %v5125_v36  ;;  %v2007_v29 = vrot.slane %v2005_v20, 4  ;;  %v2020_v37 = vshrl.u32 %v4895_v24, 16  ;;  %v2023_v38 = vshll.u32 %v4895_v24, 16  ;;  %v2032_v41 = vshll.u32 %v4897_v25, 16 }
  0x48   : > { %4685 = vmatmul.mubr.msk.bf16.gmra.mrb[12].mxu0 %vm1190_vm2, %v1687_v39  ;;  %v2029_v39 = vshrl.u32 %v4897_v25, 16  ;;  %v2025_v46 = vrot.slane %v2023_v38, 4  ;;  %v2034_v50 = vrot.slane %v2032_v41, 4  ;;  %v4911_v38 = vld [vmem:[#allocation2 + $0x30] sm:$0xff]  }
  0x49   : > { %4688 = vmatprep.mubr.msk.bf16.mxu0 %vm1190_vm2, %v1695_v40  ;;  %v2008_v40 = vor.u32 %v2007_v29, %v2004_v27  ;;  %v2554_v27 = vshrl.u32 %v4906_v10, 16  ;;  %v4923_v10 = vld [vmem:[#allocation2 + $0x4c] sm:$0xff]  }
  0x4a   : > { %v2031_v49 = vrot.slane %v2029_v39, 3  ;;  %v2560_v39 = vrot.slane %v2558_v23, 1 }
  0x4c   : > { %v2035_v59 = vor.u32 %v2034_v50, %v2031_v49  ;;  %v2562_v50 = vshrl.u32 %v4909_v11, 16 }
  0x4d   : > { %4669 = vmatmul.mubr.msk.bf16.gmra.mrb[16].mxu1 %vm1190_vm2, %v4874_v47  ;;  %v2009_v47 = vsel %vm1097_vm1, %v1999_v21, %v2008_v40 }
  0x4e   : > { %4672 = vmatprep.mubr.msk.bf16.mxu1 %vm1190_vm2, %v4876_v53  ;;  %v2018_v53 = vsel %vm1097_vm1, %v2008_v40, %v2017_v43 }
  0x50   : > { %4689 = vmatmul.mubr.msk.bf16.gmra.mrb[16].mxu0 %vm1190_vm2, %v1703_v60  ;;  %v4904_v60 = vld [vmem:[#allocation2 + $0x18] sm:$0xff]  }
  0x51   : > { %4692 = vmatprep.mubr.msk.bf16.mxu0 %vm1190_vm2, %v1711_v0  ;;  %v2535_v0 = vshrl.u32 %v4903_v51, 16  ;;  %v2542_v9 = vshll.u32 %v4904_v60, 16  ;;  %v2566_v51 = vshll.u32 %v4911_v38, 16 }
  0x53   : > { %v2540_v20 = vor.u32 %v2539_v7, %v2535_v0  ;;  %v2544_v21 = vrot.slane %v2542_v9, 1  ;;  %v4917_v7 = vld [vmem:[#allocation2 + $0x40] sm:$0xff]   ;;  %v4922_v9 = vld [vmem:[%s5469_s2 + $0x88] sm:$0xff]  }
  0x54   : > { %v2586_v23 = vshrl.u32 %v4917_v7, 16 }
  0x55   : > { %4673 = vmatmul.mubr.msk.bf16.gmra.mrb[20].mxu1 %vm1190_vm2, %v4878_v1  ;;  %v2849_v1 = vshrl.u32 %v4907_v57, 16 }
  0x56   : > { %4700 = vmatprep.mubr.msk.bf16.mxu1 %vm1190_vm2, %v1982_v12  ;;  %v4910_v12 = vld [vmem:[#allocation2 + $0x24] sm:$0xff]  }
  0x57   : > { %v2851_v15 = vrot.slane %v2849_v1, 3  ;;  %v2866_v24 = vshrl.u32 %v4910_v12, 16  ;;  %v2869_v29 = vshll.u32 %v4910_v12, 16 }
  0x58   : > { %4693 = vmatmul.mubr.msk.bf16.gmra.mrb[20].mxu0 %vm1190_vm2, %v1719_v16  ;;  %v2854_v16 = vrot.slane %v2852_v3, 4  ;;  %v4920_v3 = vld [vmem:[#allocation2 + $0x44] sm:$0xff]  }
  0x59   : > { %4720 = vmatprep.mubr.msk.bf16.mxu0 %vm1190_vm2, %v4886_v17  ;;  %v2859_v17 = vrot.slane %v2857_v4, 3  ;;  %v2868_v40 = vrot.slane %v2866_v24, 3  ;;  %v2871_v41 = vrot.slane %v2869_v29, 4 }
  0x5a   : > { %v2855_v31 = vor.u32 %v2854_v16, %v2851_v15  ;;  %v2582_v15 = vshll.u32 %v4917_v7, 16  ;;  %v2902_v16 = vshrl.u32 %v4920_v3, 16 }
  0x5b   : > { %v2863_v32 = vor.u32 %v2862_v18, %v2859_v17  ;;  %v2905_v17 = vshll.u32 %v4920_v3, 16 }
  0x5d   : > { %4701 = vmatmul.mubr.msk.bf16.vlgmr.msra.gmra.mrb[24].mxu1 %vm1190_vm2, %v1991_v26  ;;  %v2546_v26 = vshrl.u32 %v4904_v60, 16  ;;  %v2907_v29 = vrot.slane %v2905_v17, 4 }
  0x5e   : > { %4737 = vmatpush3.bf16.msra.mxu1 %v5118_v28  ;;  %4704 = vmatprep.mubr.msk.bf16.mxu1 %vm1190_vm2, %v2000_v30  ;;  %v2022_v28 = vrot.slane %v2020_v37, 3  ;;  %v4902_v30 = vld [vmem:[#allocation2 + $0x48] sm:$0xff]   ;;  %v2552_v37 = vrot.slane %v2550_v22, 1 }
  0x5f   : > { %4738 = vmatprep.subr.bf16.mxu1 %v4894_v33 }
  0x60   : > { %4721 = vmatmul.mubr.msk.bf16.vlgmr.msra.gmra.mrb[24].mxu0 %vm1190_vm2, %v4888_v34  ;;  %v2026_v55 = vor.u32 %v2025_v46, %v2022_v28  ;;  %v2878_v34 = vshll.u32 %v4913_v19, 16  ;;  %v2556_v49 = vor.u32 %v2554_v27, %v2552_v37  ;;  %v2904_v27 = vrot.slane %v2902_v16, 3 }
  0x61   : > { %4757 = vmatpush3.bf16.msra.mxu0 %v5125_v36  ;;  %4724 = vmatprep.mubr.msk.bf16.mxu0 %vm1190_vm2, %v4891_v35  ;;  %v2038_v36 = vshrl.u32 %v4899_v45, 16  ;;  %v2545_v35 = vsel %vm1651_vm3, %v2540_v20, %v2544_v21  ;;  %v2864_v45 = vsel %vm1097_vm1, %v2855_v31, %v2863_v32  ;;  %v2911_v20 = vshrl.u32 %v4923_v10, 16 }
  0x62   : > { %4739 = vmatpush3.bf16.msra.mxu1 %v4894_v33  ;;  %4758 = vmatprep.subr.bf16.mxu0 %v4900_v42  ;;  %v2027_v63 = vsel %vm1097_vm1, %v2017_v43, %v2026_v55  ;;  %v2036_v8 = vsel %vm1097_vm1, %v2026_v55, %v2035_v59  ;;  %v2875_v33 = vshrl.u32 %v4913_v19, 16  ;;  %v2548_v43 = vor.u32 %v2546_v26, %v2544_v21 }
  0x63   : > { %4776 = vmatprep.subr.bf16.mxu1 %v5161_v44  ;;  %v2040_v61 = vrot.slane %v2038_v36, 3  ;;  %v2880_v46 = vrot.slane %v2878_v34, 4  ;;  %v2872_v36 = vor.u32 %v2871_v41, %v2868_v40  ;;  %v2914_v21 = vshll.u32 %v4923_v10, 16 }
  0x64   : > { %v2877_v28 = vrot.slane %v2875_v33, 3  ;;  %v2584_v26 = vrot.slane %v2582_v15, 1  ;;  %v2913_v33 = vrot.slane %v2911_v20, 3  ;;  %v2908_v40 = vor.u32 %v2907_v29, %v2904_v27 }
  0x65   : > { %4705 = vmatmul.mubr.msk.bf16.gmra.mrb[28].mxu1 %vm1190_vm2, %v2009_v47  ;;  %4759 = vmatpush3.bf16.msra.mxu0 %v4900_v42  ;;  %v2044_v13 = vor.u32 %v2043_v62, %v2040_v61  ;;  %v4915_v42 = vld [vmem:[#allocation2 + $0x34] sm:$0xff]   ;;  %v2564_v62 = vor.u32 %v2562_v50, %v2560_v39  ;;  %v2873_v0 = vsel %vm1097_vm1, %v2863_v32, %v2872_v36  ;;  %v2916_v34 = vrot.slane %v2914_v21, 4  ;;  %v4938_v21 = vld [vmem:[#allocation2 + $0x48] sm:$0xff]  }
  0x66   : > { %4708 = vmatprep.mubr.msk.bf16.mxu1 %vm1190_vm2, %v2018_v53  ;;  %4796 = vmatprep.subr.bf16.mxu0 %v5170_v52  ;;  %v5190_v47 = vld [vmem:[#allocation2 + $0x38] sm:$0xff]   ;;  %v2570_v53 = vshrl.u32 %v4911_v38, 16  ;;  %v2884_v54 = vshrl.u32 %v4915_v42, 16  ;;  %v2887_v55 = vshll.u32 %v4915_v42, 16  ;;  %v2881_v57 = vor.u32 %v2880_v46, %v2877_v28  ;;  %v4928_v46 = vld [vmem:[#allocation2 + $0x20] sm:$0xff]  }
  0x67   : > { %v2045_v25 = vsel %vm1097_vm1, %v2035_v59, %v2044_v13  ;;  %v2561_v59 = vsel %vm1651_vm3, %v2556_v49, %v2560_v39  ;;  %v2574_v60 = vshll.u32 %v5190_v47, 16  ;;  %v4916_v61 = vld [vmem:[%s5469_s2 + $0x78] sm:$0xff]   ;;  %v4919_v13 = vld [vmem:[#allocation2 + $0x48] sm:$0xff]   ;;  %v2578_v18 = vshrl.u32 %v5190_v47, 16 }
  0x68   : > { %4725 = vmatmul.mubr.msk.bf16.gmra.mrb[28].mxu0 %vm1190_vm2, %v4893_v48  ;;  %v4918_v48 = vld [vmem:[#allocation2 + $0x3c] sm:$0xff]   ;;  %v2886_v1 = vrot.slane %v2884_v54, 3  ;;  %v2882_v4 = vsel %vm1097_vm1, %v2872_v36, %v2881_v57  ;;  %v2590_v24 = vshll.u32 %v4919_v13, 16  ;;  %v2594_v39 = vshrl.u32 %v4919_v13, 16 }
  0x69   : > { %4728 = vmatprep.mubr.msk.bf16.mxu0 %vm1190_vm2, %v4896_v56  ;;  %v2553_v56 = vsel %vm1651_vm3, %v2548_v43, %v2552_v37  ;;  %v2893_v5 = vshrl.u32 %v4918_v48, 16  ;;  %v2896_v58 = vshll.u32 %v4918_v48, 16  ;;  %v2576_v12 = vrot.slane %v2574_v60, 1  ;;  %v4925_v60 = vld [vmem:[#allocation2 + $0x18] sm:$0xff]  }
  0x6a   : > { %v2588_v37 = vor.u32 %v2586_v23, %v2584_v26  ;;  %v2592_v38 = vrot.slane %v2590_v24, 1  ;;  %v2917_v28 = vor.u32 %v2916_v34, %v2913_v33  ;;  %v4933_v24 = vld [vmem:[#allocation2 + $0x38] sm:$0xff]   ;;  %v3464_v27 = vshll.u32 %v4938_v21, 16 }
  0x6b   : > { %v2895_v6 = vrot.slane %v2893_v5, 3  ;;  %v2580_v31 = vor.u32 %v2578_v18, %v2576_v12  ;;  %v4930_v5 = vld [vmem:[#allocation2 + $0x28] sm:$0xff]  }
  0x6c   : > { %v2593_v48 = vsel %vm1651_vm3, %v2588_v37, %v2592_v38  ;;  %v2596_v49 = vor.u32 %v2594_v39, %v2592_v38  ;;  %v2918_v54 = vsel %vm1097_vm1, %v2908_v40, %v2917_v28  ;;  %v3436_v3 = vshrl.u32 %v4930_v5, 16  ;;  %v4941_v38 = vld [vmem:[#allocation2 + $0x58] ss:$0 sps:$4 sm:$0x11]   ;;  %v4937_v39 = vld [vmem:[#allocation2 + $0x48] sm:$0xff]  }
  0x6d   : > { %4709 = vmatmul.mubr.msk.bf16.gmra.mrb[32].mxu1 %vm1190_vm2, %v2027_v63  ;;  %v2568_v63 = vrot.slane %v2566_v51, 1  ;;  %v3466_v34 = vrot.slane %v3464_v27, 1 }
  0x6e   : > { %4712 = vmatprep.mubr.msk.bf16.mxu1 %vm1190_vm2, %v2036_v8  ;;  %v2898_v8 = vrot.slane %v2896_v58, 4 }
  0x6f   : > { %v2572_v11 = vor.u32 %v2570_v53, %v2568_v63 }
  0x70   : > { %4729 = vmatmul.mubr.msk.bf16.gmra.mrb[32].mxu0 %vm1190_vm2, %v4898_v2  ;;  %v2889_v2 = vrot.slane %v2887_v55, 4  ;;  %v2899_v19 = vor.u32 %v2898_v8, %v2895_v6  ;;  %v4934_v8 = vld [vmem:[#allocation2 + $0x38] sm:$0xff]  }
  0x71   : > { %4732 = vmatprep.mubr.msk.bf16.mxu0 %vm1190_vm2, %v4901_v14  ;;  %v2569_v14 = vsel %vm1651_vm3, %v2564_v62, %v2568_v63  ;;  %v2577_v22 = vsel %vm1651_vm3, %v2572_v11, %v2576_v12  ;;  %v4932_v63 = vld [vmem:[#allocation2 + $0x30] sm:$0xff]   ;;  %v4929_v11 = vld [vmem:[#allocation2 + $0x28] sm:$0xff]   ;;  %v3452_v18 = vshrl.u32 %v4934_v8, 16 }
  0x72   : > { %v2909_v50 = vsel %vm1097_vm1, %v2899_v19, %v2908_v40  ;;  %v3444_v16 = vshrl.u32 %v4932_v63, 16 }
  0x75   : > { %4713 = vmatmul.mubr.msk.bf16.gmra.mrb[36].mxu1 %vm1190_vm2, %v2045_v25  ;;  %v4921_v25 = vld [vmem:[#allocation2 + $0x50] ss:$0 sps:$4 sm:$0x11]  }
  0x76   : > { %4740 = vmatprep.mubr.msk.bf16.mxu1 %vm1190_vm2, %v2545_v35  ;;  %v4927_v35 = vld [vmem:[#allocation2 + $0x18] sm:$0xff]   ;;  %v2598_v41 = vshll.u32 %v4921_v25, 16 }
  0x77   : > { %v3419_v47 = vshll.u32 %v4927_v35, 16  ;;  %v3417_v55 = vshrl.u32 %v4927_v35, 16  ;;  %v4935_v35 = vld [vmem:[#allocation2 + $0x40] sm:$0xff]  }
  0x78   : > { %4733 = vmatmul.mubr.msk.bf16.gmra.mrb[36].mxu0 %vm1190_vm2, %v4902_v30  ;;  %v4924_v30 = vld [vmem:[#allocation2 + $0x54] ss:$0 sps:$4 sm:$0xff]   ;;  %v2600_v51 = vrot.slane %v2598_v41, 1 }
  0x79   : > { %4760 = vmatprep.mubr.msk.bf16.mxu0 %vm1190_vm2, %v2864_v45  ;;  %v2920_v42 = vshrl.u32 %v4924_v30, 16  ;;  %v2923_v43 = vshll.u32 %v4924_v30, 16  ;;  %v2585_v45 = vsel %vm1651_vm3, %v2580_v31, %v2584_v26  ;;  %v4940_v26 = vld [vmem:[#allocation2 + $0x50] sm:$0xff]  }
  0x7a   : > { %v3472_v33 = vshll.u32 %v4940_v26, 16 }
  0x7b   : > { %v2922_v53 = vrot.slane %v2920_v42, 3  ;;  %v2925_v36 = vrot.slane %v2923_v43, 4  ;;  %v3476_v43 = vshrl.u32 %v4940_v26, 16 }
  0x7c   : > { %v3474_v41 = vrot.slane %v3472_v33, 1 }
  0x7d   : > { %4741 = vmatmul.mubr.msk.bf16.vlgmr.msra.gmra.mrb[40].mxu1 %vm1190_vm2, %v2553_v56  ;;  %v3421_v56 = vrot.slane %v3419_v47, 1  ;;  %v2926_v58 = vor.u32 %v2925_v36, %v2922_v53 }
  0x7e   : > { %4777 = vmatpush3.bf16.msra.mxu1 %v5161_v44  ;;  %4744 = vmatprep.mubr.msk.bf16.mxu1 %vm1190_vm2, %v2561_v59  ;;  %v2890_v44 = vor.u32 %v2889_v2, %v2886_v1  ;;  %v2601_v59 = vsel %vm1651_vm3, %v2596_v49, %v2600_v51  ;;  %v3428_v2 = vshrl.u32 %v4928_v46, 16  ;;  %v3478_v47 = vor.u32 %v3476_v43, %v3474_v41 }
  0x7f   : > { %4778 = vmatprep.subr.bf16.mxu1 %v4916_v61  ;;  %v2927_v1 = vsel %vm1097_vm1, %v2917_v28, %v2926_v58 }
  0x80   : > { %4761 = vmatmul.mubr.msk.bf16.vlgmr.msra.gmra.mrb[40].mxu0 %vm1190_vm2, %v2873_v0  ;;  %v2900_v32 = vsel %vm1097_vm1, %v2890_v44, %v2899_v19  ;;  %v3432_v0 = vshll.u32 %v4930_v5, 16 }
  0x81   : > { %4797 = vmatpush3.bf16.msra.mxu0 %v5170_v52  ;;  %4764 = vmatprep.mubr.msk.bf16.mxu0 %vm1190_vm2, %v2882_v4  ;;  %v2891_v52 = vsel %vm1097_vm1, %v2881_v57, %v2890_v44  ;;  %v3424_v57 = vshll.u32 %v4928_v46, 16  ;;  %v3440_v4 = vshll.u32 %v4932_v63, 16  ;;  %v3448_v44 = vshll.u32 %v4934_v8, 16  ;;  %v4939_v46 = vld [vmem:[#allocation2 + $0x50] sm:$0xff]  }
  0x82   : > { %4779 = vmatpush3.bf16.msra.mxu1 %v4916_v61  ;;  %4798 = vmatprep.subr.bf16.mxu0 %v4922_v9  ;;  %v3422_v61 = vor.u32 %v3421_v56, %v3417_v55  ;;  %v3434_v6 = vrot.slane %v3432_v0, 1 }
  0x83   : > { %v3426_v62 = vrot.slane %v3424_v57, 1  ;;  %v3442_v13 = vrot.slane %v3440_v4, 1  ;;  %v3450_v20 = vrot.slane %v3448_v44, 1 }
  0x84   : > { %v3438_v12 = vor.u32 %v3436_v3, %v3434_v6 }
  0x85   : > { %4745 = vmatmul.mubr.msk.bf16.gmra.mrb[44].mxu1 %vm1190_vm2, %v2569_v14  ;;  %4799 = vmatpush3.bf16.msra.mxu0 %v4922_v9  ;;  %v3427_v7 = vsel %vm1651_vm3, %v3422_v61, %v3426_v62  ;;  %v4926_v9 = vld [vmem:[#allocation2 + $0x20] sm:$0xff]   ;;  %v3430_v10 = vor.u32 %v3428_v2, %v3426_v62  ;;  %v3446_v23 = vor.u32 %v3444_v16, %v3442_v13 }
  0x86   : > { %4748 = vmatprep.mubr.msk.bf16.mxu1 %vm1190_vm2, %v2577_v22  ;;  %v4936_v14 = vld [vmem:[#allocation2 + $0x40] sm:$0xff]   ;;  %v3443_v17 = vsel %vm1651_vm3, %v3438_v12, %v3442_v13  ;;  %v4931_v22 = vld [vmem:[#allocation2 + $0x30] sm:$0xff]   ;;  %v3454_v25 = vor.u32 %v3452_v18, %v3450_v20 }
  0x87   : > { %v3435_v15 = vsel %vm1651_vm3, %v3430_v10, %v3434_v6  ;;  %v3456_v19 = vshll.u32 %v4936_v14, 16  ;;  %v3451_v29 = vsel %vm1651_vm3, %v3446_v23, %v3450_v20  ;;  %v3460_v30 = vshrl.u32 %v4936_v14, 16 }
  0x88   : > { %4765 = vmatmul.mubr.msk.bf16.gmra.mrb[44].mxu0 %vm1190_vm2, %v2891_v52 }
  0x89   : > { %4768 = vmatprep.mubr.msk.bf16.mxu0 %vm1190_vm2, %v2900_v32  ;;  %v3458_v52 = vrot.slane %v3456_v19, 1  ;;  %v3468_v32 = vshrl.u32 %v4938_v21, 16 }
  0x8b   : > { %v3459_v31 = vsel %vm1651_vm3, %v3454_v25, %v3458_v52  ;;  %v3462_v37 = vor.u32 %v3460_v30, %v3458_v52  ;;  %v3470_v40 = vor.u32 %v3468_v32, %v3466_v34 }
  0x8d   : > { %4749 = vmatmul.mubr.msk.bf16.gmra.mrb[48].mxu1 %vm1190_vm2, %v2585_v45  ;;  %v3467_v42 = vsel %vm1651_vm3, %v3462_v37, %v3466_v34  ;;  %v3480_v45 = vshll.u32 %v4941_v38, 16  ;;  %v3475_v28 = vsel %vm1651_vm3, %v3470_v40, %v3474_v41 }
  0x8e   : > { %4752 = vmatprep.mubr.msk.bf16.mxu1 %vm1190_vm2, %v2593_v48 }
  0x8f   : > { %v3482_v48 = vrot.slane %v3480_v45, 1 }
  0x90   : > { %4769 = vmatmul.mubr.msk.bf16.gmra.mrb[48].mxu0 %vm1190_vm2, %v2909_v50 }
  0x91   : > { %4772 = vmatprep.mubr.msk.bf16.mxu0 %vm1190_vm2, %v2918_v54  ;;  %v3483_v49 = vsel %vm1651_vm3, %v3478_v47, %v3482_v48 }
  0x95   : > { %4753 = vmatmul.mubr.msk.bf16.gmra.mrb[52].mxu1 %vm1190_vm2, %v2601_v59 }
  0x96   : > { %4780 = vmatprep.mubr.msk.bf16.mxu1 %vm1190_vm2, %v4925_v60 }
  0x98   : > { %4773 = vmatmul.mubr.msk.bf16.gmra.mrb[52].mxu0 %vm1190_vm2, %v2927_v1 }
  0x99   : > { %4800 = vmatprep.mubr.msk.bf16.mxu0 %vm1190_vm2, %v3427_v7 }
  0x9d   : > { %4781 = vmatmul.mubr.msk.bf16.vlgmr.msra.gmra.mrb[56].mxu1 %vm1190_vm2, %v4926_v9 }
  0x9e   : > { %4784 = vmatprep.mubr.msk.bf16.mxu1 %vm1190_vm2, %v4929_v11 }
  0xa0   : > { %4801 = vmatmul.mubr.msk.bf16.vlgmr.msra.gmra.mrb[56].mxu0 %vm1190_vm2, %v3435_v15 }
  0xa1   : > { %4804 = vmatprep.mubr.msk.bf16.mxu0 %vm1190_vm2, %v3443_v17 }
  0xa5   : > { %4785 = vmatmul.mubr.msk.bf16.gmra.mrb[60].mxu1 %vm1190_vm2, %v4931_v22 }
  0xa6   : > { %4788 = vmatprep.mubr.msk.bf16.mxu1 %vm1190_vm2, %v4933_v24 }
  0xa8   : > { %4805 = vmatmul.mubr.msk.bf16.gmra.mrb[60].mxu0 %vm1190_vm2, %v3451_v29 }
  0xa9   : > { %4808 = vmatprep.mubr.msk.bf16.mxu0 %vm1190_vm2, %v3459_v31 }
  0xad   : > { %4789 = vmatmul.mubr.msk.bf16.gmra.mrb[64].mxu1 %vm1190_vm2, %v4935_v35 }
  0xae   : > { %4792 = vmatprep.mubr.msk.bf16.mxu1 %vm1190_vm2, %v4937_v39 }
  0xb0   : > { %4809 = vmatmul.mubr.msk.bf16.gmra.mrb[64].mxu0 %vm1190_vm2, %v3467_v42 }
  0xb1   : > { %4812 = vmatprep.mubr.msk.bf16.mxu0 %vm1190_vm2, %v3475_v28 }
  0xb5   : > { %4793 = vmatmul.mubr.msk.bf16.gmra.mrb[68].mxu1 %vm1190_vm2, %v4939_v46 }
  0xb8   : > { %4813 = vmatmul.mubr.msk.bf16.gmra.mrb[68].mxu0 %vm1190_vm2, %v3483_v49 }
 0x100   : > { %v4650_v50 = vpop.f32.mrb[0].mxu1 }
 0x101   : > { %1322 = vst.msk [vmem:[#allocation3 + $0x50] sm:$0xff] %vm1190_vm2, %v4650_v50  ;;  %v1281_v51 = vpop.f32.mrb[1].mxu1 }
 0x102   : > { %1320 = vst.msk [vmem:[#allocation3 + $0x40] sm:$0xff] %vm1190_vm2, %v1281_v51  ;;  %v4651_v53 = vpop.f32.mrb[2].mxu1 }
 0x103   : > { %1323 = vst.msk [vmem:[#allocation3 + $0x58] sm:$0xff] %vm1190_vm2, %v4651_v53  ;;  %v1284_v36 = vpop.f32.mrb[3].mxu1  ;;  %v4642_v54 = vpop.f32.mrb[0].mxu0 }
 0x104   : > { %1321 = vst.msk [vmem:[#allocation3 + $0x48] sm:$0xff] %vm1190_vm2, %v1284_v36  ;;  %1314 = vst.msk [vmem:[#allocation3 + $0x10] sm:$0xff] %vm1190_vm2, %v4642_v54  ;;  %v1249_v55 = vpop.f32.mrb[1].mxu0 }
 0x105   : > { %1312 = vst.msk [vmem:[#allocation3] sm:$0xff] %vm1190_vm2, %v1249_v55  ;;  %v4643_v56 = vpop.f32.mrb[2].mxu0 }
 0x106   : > { %1315 = vst.msk [vmem:[#allocation3 + $0x18] sm:$0xff] %vm1190_vm2, %v4643_v56  ;;  %v1252_v57 = vpop.f32.mrb[3].mxu0 }
 0x107   : > { %1313 = vst.msk [vmem:[#allocation3 + $0x8] sm:$0xff] %vm1190_vm2, %v1252_v57 }
 0x108   : > { %v4654_v5 = vpop.f32.mrb[4].mxu1  ;;  %v1338_v42 = vld [vmem:[#allocation3 + $0x50] sm:$0xff] }
 0x109   : > { %1326 = vst.msk [vmem:[#allocation3 + $0x70] sm:$0xff] %vm1190_vm2, %v4654_v5  ;;  %v1297_v58 = vpop.f32.mrb[5].mxu1  ;;  %v1336_v28 = vld [vmem:[#allocation3 + $0x40] sm:$0xff] }
 0x10a   : > { %1324 = vst.msk [vmem:[#allocation3 + $0x60] sm:$0xff] %vm1190_vm2, %v1297_v58  ;;  %v4655_v59 = vpop.f32.mrb[6].mxu1  ;;  %v1339_v49 = vld [vmem:[#allocation3 + $0x58] sm:$0xff] }
 0x10b   : > { %1327 = vst.msk [vmem:[#allocation3 + $0x78] sm:$0xff] %vm1190_vm2, %v4655_v59  ;;  %v1300_v60 = vpop.f32.mrb[7].mxu1  ;;  %v4646_v61 = vpop.f32.mrb[4].mxu0  ;;  %v1330_v0 = vld [vmem:[#allocation3 + $0x10] sm:$0xff]  ;;  %v1337_v54 = vld [vmem:[#allocation3 + $0x48] sm:$0xff] }
 0x10c   : > { %1325 = vst.msk [vmem:[#allocation3 + $0x68] sm:$0xff] %vm1190_vm2, %v1300_v60  ;;  %1318 = vst.msk [vmem:[#allocation3 + $0x30] sm:$0xff] %vm1190_vm2, %v4646_v61  ;;  %v1265_v62 = vpop.f32.mrb[5].mxu0  ;;  %v1328_v2 = vld [vmem:[#allocation3] sm:$0xff] }
 0x10d   : > { %1316 = vst.msk [vmem:[#allocation3 + $0x20] sm:$0xff] %vm1190_vm2, %v1265_v62  ;;  %v4647_v63 = vpop.f32.mrb[6].mxu0  ;;  %v1331_v3 = vld [vmem:[#allocation3 + $0x18] sm:$0xff] }
 0x10e   : > { %1319 = vst.msk [vmem:[#allocation3 + $0x38] sm:$0xff] %vm1190_vm2, %v4647_v63  ;;  %v1268_v1 = vpop.f32.mrb[7].mxu0  ;;  %v1329_v8 = vld [vmem:[#allocation3 + $0x8] sm:$0xff] }
 0x10f   : > { %1317 = vst.msk [vmem:[#allocation3 + $0x28] sm:$0xff] %vm1190_vm2, %v1268_v1 }
 0x110   : > { %v4662_v7 = vpop.f32.mrb[8].mxu1  ;;  %v1342_v1 = vld [vmem:[#allocation3 + $0x70] sm:$0xff] }
 0x111   : > { %v1540_v4 = vadd.f32 %v4662_v7, %v1330_v0  ;;  %v1475_v6 = vpop.f32.mrb[9].mxu1 }
 0x112   : > { %v1538_v9 = vadd.f32 %v1475_v6, %v1328_v2  ;;  %v4663_v10 = vpop.f32.mrb[10].mxu1 }
 0x113   : > { %1556 = vst.msk [vmem:[#allocation3 + $0x10] sm:$0xff] %vm1190_vm2, %v1540_v4  ;;  %v1541_v11 = vadd.f32 %v4663_v10, %v1331_v3  ;;  %v1478_v12 = vpop.f32.mrb[11].mxu1  ;;  %v4682_v13 = vpop.f32.mrb[8].mxu0  ;;  %v1334_v16 = vld [vmem:[#allocation3 + $0x30] sm:$0xff]  ;;  %v1340_v3 = vld [vmem:[#allocation3 + $0x60] sm:$0xff] }
 0x114   : > { %1554 = vst.msk [vmem:[#allocation3] sm:$0xff] %vm1190_vm2, %v1538_v9  ;;  %v1539_v14 = vadd.f32 %v1478_v12, %v1329_v8  ;;  %v1790_v44 = vpop.f32.mrb[9].mxu0  ;;  %v1332_v18 = vld [vmem:[#allocation3 + $0x20] sm:$0xff]  ;;  %v1343_v9 = vld [vmem:[#allocation3 + $0x78] sm:$0xff] }
 0x115   : > { %1557 = vst.msk [vmem:[#allocation3 + $0x18] sm:$0xff] %vm1190_vm2, %v1541_v11  ;;  %v4683_v15 = vpop.f32.mrb[10].mxu0  ;;  %v1335_v20 = vld [vmem:[#allocation3 + $0x38] sm:$0xff] }
 0x116   : > { %1555 = vst.msk [vmem:[#allocation3 + $0x8] sm:$0xff] %vm1190_vm2, %v1539_v14  ;;  %v1793_v17 = vpop.f32.mrb[11].mxu0  ;;  %v1333_v23 = vld [vmem:[#allocation3 + $0x28] sm:$0xff] }
 0x117   : > { %v1341_v14 = vld [vmem:[#allocation3 + $0x68] sm:$0xff] }
 0x118   : > { %v4666_v19 = vpop.f32.mrb[12].mxu1 }
 0x119   : > { %v1544_v21 = vadd.f32 %v4666_v19, %v1334_v16  ;;  %v1491_v22 = vpop.f32.mrb[13].mxu1 }
 0x11a   : > { %v1572_v24 = vld [vmem:[#allocation3 + $0x10] sm:$0xff]  ;;  %v1542_v25 = vadd.f32 %v1491_v22, %v1332_v18  ;;  %v4667_v52 = vpop.f32.mrb[14].mxu1 }
 0x11b   : > { %v1855_v26 = vadd.f32 %v4682_v13, %v1572_v24  ;;  %1560 = vst.msk [vmem:[#allocation3 + $0x30] sm:$0xff] %vm1190_vm2, %v1544_v21  ;;  %v1570_v27 = vld [vmem:[#allocation3] sm:$0xff]  ;;  %v1545_v29 = vadd.f32 %v4667_v52, %v1335_v20  ;;  %v1494_v30 = vpop.f32.mrb[15].mxu1  ;;  %v4686_v31 = vpop.f32.mrb[12].mxu0 }
 0x11c   : > { %v1853_v32 = vadd.f32 %v1790_v44, %v1570_v27  ;;  %1558 = vst.msk [vmem:[#allocation3 + $0x20] sm:$0xff] %vm1190_vm2, %v1542_v25  ;;  %v1573_v33 = vld [vmem:[#allocation3 + $0x18] sm:$0xff]  ;;  %v1543_v34 = vadd.f32 %v1494_v30, %v1333_v23  ;;  %v1806_v35 = vpop.f32.mrb[13].mxu0 }
 0x11d   : > { %1871 = vst.msk [vmem:[#allocation3 + $0x10] sm:$0xff] %vm1190_vm2, %v1855_v26  ;;  %v1856_v37 = vadd.f32 %v4683_v15, %v1573_v33  ;;  %1561 = vst.msk [vmem:[#allocation3 + $0x38] sm:$0xff] %vm1190_vm2, %v1545_v29  ;;  %v1571_v38 = vld [vmem:[#allocation3 + $0x8] sm:$0xff]  ;;  %v4687_v39 = vpop.f32.mrb[14].mxu0 }
 0x11e   : > { %1869 = vst.msk [vmem:[#allocation3] sm:$0xff] %vm1190_vm2, %v1853_v32  ;;  %v1854_v40 = vadd.f32 %v1793_v17, %v1571_v38  ;;  %1559 = vst.msk [vmem:[#allocation3 + $0x28] sm:$0xff] %vm1190_vm2, %v1543_v34  ;;  %v1809_v41 = vpop.f32.mrb[15].mxu0 }
 0x11f   : > { %1872 = vst.msk [vmem:[#allocation3 + $0x18] sm:$0xff] %vm1190_vm2, %v1856_v37 }
 0x120   : > { %1870 = vst.msk [vmem:[#allocation3 + $0x8] sm:$0xff] %vm1190_vm2, %v1854_v40  ;;  %v4670_v43 = vpop.f32.mrb[16].mxu1 }
 0x121   : > { %v1548_v45 = vadd.f32 %v4670_v43, %v1338_v42  ;;  %v1507_v46 = vpop.f32.mrb[17].mxu1 }
 0x122   : > { %v1576_v47 = vld [vmem:[#allocation3 + $0x30] sm:$0xff]  ;;  %v1546_v48 = vadd.f32 %v1507_v46, %v1336_v28  ;;  %v4671_v50 = vpop.f32.mrb[18].mxu1 }
 0x123   : > { %v1859_v51 = vadd.f32 %v4686_v31, %v1576_v47  ;;  %1564 = vst.msk [vmem:[#allocation3 + $0x50] sm:$0xff] %vm1190_vm2, %v1548_v45  ;;  %v1574_v53 = vld [vmem:[#allocation3 + $0x20] sm:$0xff]  ;;  %v1549_v36 = vadd.f32 %v4671_v50, %v1339_v49  ;;  %v1510_v55 = vpop.f32.mrb[19].mxu1  ;;  %v4690_v56 = vpop.f32.mrb[16].mxu0 }
 0x124   : > { %v1857_v57 = vadd.f32 %v1806_v35, %v1574_v53  ;;  %1562 = vst.msk [vmem:[#allocation3 + $0x40] sm:$0xff] %vm1190_vm2, %v1546_v48  ;;  %v1577_v5 = vld [vmem:[#allocation3 + $0x38] sm:$0xff]  ;;  %v1547_v58 = vadd.f32 %v1510_v55, %v1337_v54  ;;  %v1822_v59 = vpop.f32.mrb[17].mxu0  ;;  %v1887_v25 = vld [vmem:[#allocation3 + $0x10] sm:$0xff] }
 0x125   : > { %1875 = vst.msk [vmem:[#allocation3 + $0x30] sm:$0xff] %vm1190_vm2, %v1859_v51  ;;  %v1860_v60 = vadd.f32 %v4687_v39, %v1577_v5  ;;  %1565 = vst.msk [vmem:[#allocation3 + $0x58] sm:$0xff] %vm1190_vm2, %v1549_v36  ;;  %v1575_v61 = vld [vmem:[#allocation3 + $0x28] sm:$0xff]  ;;  %v4691_v62 = vpop.f32.mrb[18].mxu0  ;;  %v1885_v27 = vld [vmem:[#allocation3] sm:$0xff] }
 0x126   : > { %1873 = vst.msk [vmem:[#allocation3 + $0x20] sm:$0xff] %vm1190_vm2, %v1857_v57  ;;  %v1858_v63 = vadd.f32 %v1809_v41, %v1575_v61  ;;  %1563 = vst.msk [vmem:[#allocation3 + $0x48] sm:$0xff] %vm1190_vm2, %v1547_v58  ;;  %v1825_v0 = vpop.f32.mrb[19].mxu0  ;;  %v1888_v32 = vld [vmem:[#allocation3 + $0x18] sm:$0xff] }
 0x127   : > { %1876 = vst.msk [vmem:[#allocation3 + $0x38] sm:$0xff] %vm1190_vm2, %v1860_v60  ;;  %v1886_v38 = vld [vmem:[#allocation3 + $0x8] sm:$0xff] }
 0x128   : > { %1874 = vst.msk [vmem:[#allocation3 + $0x28] sm:$0xff] %vm1190_vm2, %v1858_v63  ;;  %v4674_v2 = vpop.f32.mrb[20].mxu1 }
 0x129   : > { %v1552_v7 = vadd.f32 %v4674_v2, %v1342_v1  ;;  %v1523_v4 = vpop.f32.mrb[21].mxu1 }
 0x12a   : > { %v1580_v6 = vld [vmem:[#allocation3 + $0x50] sm:$0xff]  ;;  %v1550_v8 = vadd.f32 %v1523_v4, %v1340_v3  ;;  %v4675_v10 = vpop.f32.mrb[22].mxu1 }
 0x12b   : > { %v1863_v11 = vadd.f32 %v4690_v56, %v1580_v6  ;;  %1568 = vst.msk [vmem:[#allocation3 + $0x70] sm:$0xff] %vm1190_vm2, %v1552_v7  ;;  %v1578_v12 = vld [vmem:[#allocation3 + $0x40] sm:$0xff]  ;;  %v1553_v13 = vadd.f32 %v4675_v10, %v1343_v9  ;;  %v1526_v44 = vpop.f32.mrb[23].mxu1  ;;  %v4694_v15 = vpop.f32.mrb[20].mxu0 }
 0x12c   : > { %v1861_v16 = vadd.f32 %v1822_v59, %v1578_v12  ;;  %1566 = vst.msk [vmem:[#allocation3 + $0x60] sm:$0xff] %vm1190_vm2, %v1550_v8  ;;  %v1581_v17 = vld [vmem:[#allocation3 + $0x58] sm:$0xff]  ;;  %v1551_v18 = vadd.f32 %v1526_v44, %v1341_v14  ;;  %v1838_v19 = vpop.f32.mrb[21].mxu0  ;;  %v1891_v50 = vld [vmem:[#allocation3 + $0x30] sm:$0xff] }
 0x12d   : > { %1879 = vst.msk [vmem:[#allocation3 + $0x50] sm:$0xff] %vm1190_vm2, %v1863_v11  ;;  %v1864_v20 = vadd.f32 %v4691_v62, %v1581_v17  ;;  %1569 = vst.msk [vmem:[#allocation3 + $0x78] sm:$0xff] %vm1190_vm2, %v1553_v13  ;;  %v1579_v21 = vld [vmem:[#allocation3 + $0x48] sm:$0xff]  ;;  %v4695_v22 = vpop.f32.mrb[22].mxu0  ;;  %v1889_v36 = vld [vmem:[#allocation3 + $0x20] sm:$0xff] }
 0x12e   : > { %1877 = vst.msk [vmem:[#allocation3 + $0x40] sm:$0xff] %vm1190_vm2, %v1861_v16  ;;  %v1862_v23 = vadd.f32 %v1825_v0, %v1579_v21  ;;  %1567 = vst.msk [vmem:[#allocation3 + $0x68] sm:$0xff] %vm1190_vm2, %v1551_v18  ;;  %v1841_v24 = vpop.f32.mrb[23].mxu0  ;;  %v1892_v57 = vld [vmem:[#allocation3 + $0x38] sm:$0xff] }
 0x12f   : > { %1880 = vst.msk [vmem:[#allocation3 + $0x58] sm:$0xff] %vm1190_vm2, %v1864_v20  ;;  %v1890_v61 = vld [vmem:[#allocation3 + $0x28] sm:$0xff] }
 0x130   : > { %1878 = vst.msk [vmem:[#allocation3 + $0x48] sm:$0xff] %vm1190_vm2, %v1862_v23  ;;  %v4702_v52 = vpop.f32.mrb[24].mxu1 }
 0x131   : > { %v2181_v26 = vadd.f32 %v4702_v52, %v1887_v25  ;;  %v2116_v29 = vpop.f32.mrb[25].mxu1 }
 0x132   : > { %v1584_v30 = vld [vmem:[#allocation3 + $0x70] sm:$0xff]  ;;  %v2179_v31 = vadd.f32 %v2116_v29, %v1885_v27  ;;  %v4703_v33 = vpop.f32.mrb[26].mxu1 }
 0x133   : > { %v1867_v34 = vadd.f32 %v4694_v15, %v1584_v30  ;;  %v1582_v35 = vld [vmem:[#allocation3 + $0x60] sm:$0xff]  ;;  %2197 = vst.msk [vmem:[#allocation3 + $0x10] sm:$0xff] %vm1190_vm2, %v2181_v26  ;;  %v2182_v37 = vadd.f32 %v4703_v33, %v1888_v32  ;;  %v2119_v39 = vpop.f32.mrb[27].mxu1  ;;  %v4722_v40 = vpop.f32.mrb[24].mxu0 }
 0x134   : > { %v1865_v41 = vadd.f32 %v1838_v19, %v1582_v35  ;;  %v1585_v42 = vld [vmem:[#allocation3 + $0x78] sm:$0xff]  ;;  %2195 = vst.msk [vmem:[#allocation3] sm:$0xff] %vm1190_vm2, %v2179_v31  ;;  %v2180_v43 = vadd.f32 %v2119_v39, %v1886_v38  ;;  %v2358_v45 = vpop.f32.mrb[25].mxu0  ;;  %v1895_v10 = vld [vmem:[#allocation3 + $0x50] sm:$0xff] }
 0x135   : > { %1883 = vst.msk [vmem:[#allocation3 + $0x70] sm:$0xff] %vm1190_vm2, %v1867_v34  ;;  %v1868_v28 = vadd.f32 %v4695_v22, %v1585_v42  ;;  %v1583_v46 = vld [vmem:[#allocation3 + $0x68] sm:$0xff]  ;;  %2198 = vst.msk [vmem:[#allocation3 + $0x18] sm:$0xff] %vm1190_vm2, %v2182_v37  ;;  %v4723_v47 = vpop.f32.mrb[26].mxu0  ;;  %v1893_v13 = vld [vmem:[#allocation3 + $0x40] sm:$0xff] }
 0x136   : > { %1881 = vst.msk [vmem:[#allocation3 + $0x60] sm:$0xff] %vm1190_vm2, %v1865_v41  ;;  %v1866_v48 = vadd.f32 %v1841_v24, %v1583_v46  ;;  %2196 = vst.msk [vmem:[#allocation3 + $0x8] sm:$0xff] %vm1190_vm2, %v2180_v43  ;;  %v2361_v49 = vpop.f32.mrb[27].mxu0  ;;  %v1896_v16 = vld [vmem:[#allocation3 + $0x58] sm:$0xff] }
 0x137   : > { %1884 = vst.msk [vmem:[#allocation3 + $0x78] sm:$0xff] %vm1190_vm2, %v1868_v28  ;;  %v1894_v21 = vld [vmem:[#allocation3 + $0x48] sm:$0xff] }
 0x138   : > { %1882 = vst.msk [vmem:[#allocation3 + $0x68] sm:$0xff] %vm1190_vm2, %v1866_v48  ;;  %v4706_v51 = vpop.f32.mrb[28].mxu1 }
 0x139   : > { %v2185_v53 = vadd.f32 %v4706_v51, %v1891_v50  ;;  %v2132_v54 = vpop.f32.mrb[29].mxu1 }
 0x13a   : > { %v2213_v55 = vld [vmem:[#allocation3 + $0x10] sm:$0xff]  ;;  %v2183_v56 = vadd.f32 %v2132_v54, %v1889_v36  ;;  %v4707_v5 = vpop.f32.mrb[30].mxu1 }
 0x13b   : > { %v2423_v58 = vadd.f32 %v4722_v40, %v2213_v55  ;;  %2201 = vst.msk [vmem:[#allocation3 + $0x30] sm:$0xff] %vm1190_vm2, %v2185_v53  ;;  %v2211_v59 = vld [vmem:[#allocation3] sm:$0xff]  ;;  %v2186_v60 = vadd.f32 %v4707_v5, %v1892_v57  ;;  %v2135_v62 = vpop.f32.mrb[31].mxu1  ;;  %v4726_v63 = vpop.f32.mrb[28].mxu0 }
 0x13c   : > { %v2421_v0 = vadd.f32 %v2358_v45, %v2211_v59  ;;  %2199 = vst.msk [vmem:[#allocation3 + $0x20] sm:$0xff] %vm1190_vm2, %v2183_v56  ;;  %v2214_v1 = vld [vmem:[#allocation3 + $0x18] sm:$0xff]  ;;  %v2184_v2 = vadd.f32 %v2135_v62, %v1890_v61  ;;  %v2374_v7 = vpop.f32.mrb[29].mxu0  ;;  %v1899_v33 = vld [vmem:[#allocation3 + $0x70] sm:$0xff] }
 0x13d   : > { %2439 = vst.msk [vmem:[#allocation3 + $0x10] sm:$0xff] %vm1190_vm2, %v2423_v58  ;;  %v2424_v3 = vadd.f32 %v4723_v47, %v2214_v1  ;;  %2202 = vst.msk [vmem:[#allocation3 + $0x38] sm:$0xff] %vm1190_vm2, %v2186_v60  ;;  %v2212_v4 = vld [vmem:[#allocation3 + $0x8] sm:$0xff]  ;;  %v4727_v6 = vpop.f32.mrb[30].mxu0  ;;  %v1897_v37 = vld [vmem:[#allocation3 + $0x60] sm:$0xff] }
 0x13e   : > { %2437 = vst.msk [vmem:[#allocation3] sm:$0xff] %vm1190_vm2, %v2421_v0  ;;  %v2422_v8 = vadd.f32 %v2361_v49, %v2212_v4  ;;  %2200 = vst.msk [vmem:[#allocation3 + $0x28] sm:$0xff] %vm1190_vm2, %v2184_v2  ;;  %v2377_v9 = vpop.f32.mrb[31].mxu0  ;;  %v1900_v41 = vld [vmem:[#allocation3 + $0x78] sm:$0xff] }
 0x13f   : > { %2440 = vst.msk [vmem:[#allocation3 + $0x18] sm:$0xff] %vm1190_vm2, %v2424_v3  ;;  %v1898_v46 = vld [vmem:[#allocation3 + $0x68] sm:$0xff] }
 0x140   : > { %2438 = vst.msk [vmem:[#allocation3 + $0x8] sm:$0xff] %vm1190_vm2, %v2422_v8  ;;  %v4710_v11 = vpop.f32.mrb[32].mxu1 }
 0x141   : > { %v2189_v12 = vadd.f32 %v4710_v11, %v1895_v10  ;;  %v2148_v14 = vpop.f32.mrb[33].mxu1 }
 0x142   : > { %v2217_v44 = vld [vmem:[#allocation3 + $0x30] sm:$0xff]  ;;  %v2187_v15 = vadd.f32 %v2148_v14, %v1893_v13  ;;  %v4711_v17 = vpop.f32.mrb[34].mxu1 }
 0x143   : > { %v2427_v18 = vadd.f32 %v4726_v63, %v2217_v44  ;;  %2205 = vst.msk [vmem:[#allocation3 + $0x50] sm:$0xff] %vm1190_vm2, %v2189_v12  ;;  %v2215_v19 = vld [vmem:[#allocation3 + $0x20] sm:$0xff]  ;;  %v2190_v20 = vadd.f32 %v4711_v17, %v1896_v16  ;;  %v2151_v22 = vpop.f32.mrb[35].mxu1  ;;  %v4730_v23 = vpop.f32.mrb[32].mxu0 }
 0x144   : > { %v2425_v24 = vadd.f32 %v2374_v7, %v2215_v19  ;;  %2203 = vst.msk [vmem:[#allocation3 + $0x40] sm:$0xff] %vm1190_vm2, %v2187_v15  ;;  %v2218_v25 = vld [vmem:[#allocation3 + $0x38] sm:$0xff]  ;;  %v2188_v52 = vadd.f32 %v2151_v22, %v1894_v21  ;;  %v2390_v26 = vpop.f32.mrb[33].mxu0  ;;  %v2455_v5 = vld [vmem:[#allocation3 + $0x10] sm:$0xff] }
 0x145   : > { %2443 = vst.msk [vmem:[#allocation3 + $0x30] sm:$0xff] %vm1190_vm2, %v2427_v18  ;;  %v2428_v27 = vadd.f32 %v4727_v6, %v2218_v25  ;;  %2206 = vst.msk [vmem:[#allocation3 + $0x58] sm:$0xff] %vm1190_vm2, %v2190_v20  ;;  %v2216_v29 = vld [vmem:[#allocation3 + $0x28] sm:$0xff]  ;;  %v4731_v30 = vpop.f32.mrb[34].mxu0  ;;  %v2453_v60 = vld [vmem:[#allocation3] sm:$0xff] }
 0x146   : > { %2441 = vst.msk [vmem:[#allocation3 + $0x20] sm:$0xff] %vm1190_vm2, %v2425_v24  ;;  %v2426_v31 = vadd.f32 %v2377_v9, %v2216_v29  ;;  %2204 = vst.msk [vmem:[#allocation3 + $0x48] sm:$0xff] %vm1190_vm2, %v2188_v52  ;;  %v2393_v32 = vpop.f32.mrb[35].mxu0  ;;  %v2456_v0 = vld [vmem:[#allocation3 + $0x18] sm:$0xff] }
 0x147   : > { %2444 = vst.msk [vmem:[#allocation3 + $0x38] sm:$0xff] %vm1190_vm2, %v2428_v27  ;;  %v2454_v4 = vld [vmem:[#allocation3 + $0x8] sm:$0xff] }
 0x148   : > { %2442 = vst.msk [vmem:[#allocation3 + $0x28] sm:$0xff] %vm1190_vm2, %v2426_v31  ;;  %v4714_v34 = vpop.f32.mrb[36].mxu1 }
 0x149   : > { %v2193_v35 = vadd.f32 %v4714_v34, %v1899_v33  ;;  %v2164_v38 = vpop.f32.mrb[37].mxu1 }
 0x14a   : > { %v2221_v39 = vld [vmem:[#allocation3 + $0x50] sm:$0xff]  ;;  %v2191_v40 = vadd.f32 %v2164_v38, %v1897_v37  ;;  %v4715_v42 = vpop.f32.mrb[38].mxu1 }
 0x14b   : > { %v2431_v43 = vadd.f32 %v4730_v23, %v2221_v39  ;;  %2209 = vst.msk [vmem:[#allocation3 + $0x70] sm:$0xff] %vm1190_vm2, %v2193_v35  ;;  %v2219_v45 = vld [vmem:[#allocation3 + $0x40] sm:$0xff]  ;;  %v2194_v28 = vadd.f32 %v4715_v42, %v1900_v41  ;;  %v2167_v47 = vpop.f32.mrb[39].mxu1  ;;  %v4734_v48 = vpop.f32.mrb[36].mxu0 }
 0x14c   : > { %v2429_v49 = vadd.f32 %v2390_v26, %v2219_v45  ;;  %2207 = vst.msk [vmem:[#allocation3 + $0x60] sm:$0xff] %vm1190_vm2, %v2191_v40  ;;  %v2222_v50 = vld [vmem:[#allocation3 + $0x58] sm:$0xff]  ;;  %v2192_v51 = vadd.f32 %v2167_v47, %v1898_v46  ;;  %v2406_v53 = vpop.f32.mrb[37].mxu0  ;;  %v2459_v17 = vld [vmem:[#allocation3 + $0x30] sm:$0xff] }
 0x14d   : > { %2447 = vst.msk [vmem:[#allocation3 + $0x50] sm:$0xff] %vm1190_vm2, %v2431_v43  ;;  %v2432_v36 = vadd.f32 %v4731_v30, %v2222_v50  ;;  %2210 = vst.msk [vmem:[#allocation3 + $0x78] sm:$0xff] %vm1190_vm2, %v2194_v28  ;;  %v2220_v54 = vld [vmem:[#allocation3 + $0x48] sm:$0xff]  ;;  %v4735_v55 = vpop.f32.mrb[38].mxu0  ;;  %v2457_v20 = vld [vmem:[#allocation3 + $0x20] sm:$0xff] }
 0x14e   : > { %2445 = vst.msk [vmem:[#allocation3 + $0x40] sm:$0xff] %vm1190_vm2, %v2429_v49  ;;  %v2430_v56 = vadd.f32 %v2393_v32, %v2220_v54  ;;  %2208 = vst.msk [vmem:[#allocation3 + $0x68] sm:$0xff] %vm1190_vm2, %v2192_v51  ;;  %v2409_v57 = vpop.f32.mrb[39].mxu0  ;;  %v2460_v24 = vld [vmem:[#allocation3 + $0x38] sm:$0xff] }
 0x14f   : > { %2448 = vst.msk [vmem:[#allocation3 + $0x58] sm:$0xff] %vm1190_vm2, %v2432_v36  ;;  %v2458_v29 = vld [vmem:[#allocation3 + $0x28] sm:$0xff] }
 0x150   : > { %2446 = vst.msk [vmem:[#allocation3 + $0x48] sm:$0xff] %vm1190_vm2, %v2430_v56  ;;  %v4742_v58 = vpop.f32.mrb[40].mxu1 }
 0x151   : > { %v2737_v59 = vadd.f32 %v4742_v58, %v2455_v5  ;;  %v2672_v61 = vpop.f32.mrb[41].mxu1 }
 0x152   : > { %v2225_v62 = vld [vmem:[#allocation3 + $0x70] sm:$0xff]  ;;  %v2735_v63 = vadd.f32 %v2672_v61, %v2453_v60  ;;  %v4743_v1 = vpop.f32.mrb[42].mxu1 }
 0x153   : > { %v2435_v2 = vadd.f32 %v4734_v48, %v2225_v62  ;;  %v2223_v7 = vld [vmem:[#allocation3 + $0x60] sm:$0xff]  ;;  %2753 = vst.msk [vmem:[#allocation3 + $0x10] sm:$0xff] %vm1190_vm2, %v2737_v59  ;;  %v2738_v3 = vadd.f32 %v4743_v1, %v2456_v0  ;;  %v2675_v6 = vpop.f32.mrb[43].mxu1  ;;  %v4762_v8 = vpop.f32.mrb[40].mxu0 }
 0x154   : > { %v2433_v9 = vadd.f32 %v2406_v53, %v2223_v7  ;;  %v2226_v10 = vld [vmem:[#allocation3 + $0x78] sm:$0xff]  ;;  %2751 = vst.msk [vmem:[#allocation3] sm:$0xff] %vm1190_vm2, %v2735_v63  ;;  %v2736_v11 = vadd.f32 %v2675_v6, %v2454_v4  ;;  %v2998_v12 = vpop.f32.mrb[41].mxu0  ;;  %v2463_v42 = vld [vmem:[#allocation3 + $0x50] sm:$0xff] }
 0x155   : > { %2451 = vst.msk [vmem:[#allocation3 + $0x70] sm:$0xff] %vm1190_vm2, %v2435_v2  ;;  %v2436_v13 = vadd.f32 %v4735_v55, %v2226_v10  ;;  %v2224_v14 = vld [vmem:[#allocation3 + $0x68] sm:$0xff]  ;;  %2754 = vst.msk [vmem:[#allocation3 + $0x18] sm:$0xff] %vm1190_vm2, %v2738_v3  ;;  %v4763_v44 = vpop.f32.mrb[42].mxu0  ;;  %v2461_v28 = vld [vmem:[#allocation3 + $0x40] sm:$0xff] }
 0x156   : > { %2449 = vst.msk [vmem:[#allocation3 + $0x60] sm:$0xff] %vm1190_vm2, %v2433_v9  ;;  %v2434_v15 = vadd.f32 %v2409_v57, %v2224_v14  ;;  %2752 = vst.msk [vmem:[#allocation3 + $0x8] sm:$0xff] %vm1190_vm2, %v2736_v11  ;;  %v3001_v16 = vpop.f32.mrb[43].mxu0  ;;  %v2464_v49 = vld [vmem:[#allocation3 + $0x58] sm:$0xff] }
 0x157   : > { %2452 = vst.msk [vmem:[#allocation3 + $0x78] sm:$0xff] %vm1190_vm2, %v2436_v13  ;;  %v2462_v54 = vld [vmem:[#allocation3 + $0x48] sm:$0xff] }
 0x158   : > { %2450 = vst.msk [vmem:[#allocation3 + $0x68] sm:$0xff] %vm1190_vm2, %v2434_v15  ;;  %v4746_v18 = vpop.f32.mrb[44].mxu1 }
 0x159   : > { %v2741_v19 = vadd.f32 %v4746_v18, %v2459_v17  ;;  %v2688_v21 = vpop.f32.mrb[45].mxu1 }
 0x15a   : > { %v2769_v22 = vld [vmem:[#allocation3 + $0x10] sm:$0xff]  ;;  %v2739_v23 = vadd.f32 %v2688_v21, %v2457_v20  ;;  %v4747_v25 = vpop.f32.mrb[46].mxu1 }
 0x15b   : > { %v3063_v52 = vadd.f32 %v4762_v8, %v2769_v22  ;;  %2757 = vst.msk [vmem:[#allocation3 + $0x30] sm:$0xff] %vm1190_vm2, %v2741_v19  ;;  %v2767_v26 = vld [vmem:[#allocation3] sm:$0xff]  ;;  %v2742_v27 = vadd.f32 %v4747_v25, %v2460_v24  ;;  %v2691_v30 = vpop.f32.mrb[47].mxu1  ;;  %v4766_v31 = vpop.f32.mrb[44].mxu0 }
 0x15c   : > { %v3061_v32 = vadd.f32 %v2998_v12, %v2767_v26  ;;  %2755 = vst.msk [vmem:[#allocation3 + $0x20] sm:$0xff] %vm1190_vm2, %v2739_v23  ;;  %v2770_v33 = vld [vmem:[#allocation3 + $0x18] sm:$0xff]  ;;  %v2740_v34 = vadd.f32 %v2691_v30, %v2458_v29  ;;  %v3014_v35 = vpop.f32.mrb[45].mxu0  ;;  %v2467_v1 = vld [vmem:[#allocation3 + $0x70] sm:$0xff] }
 0x15d   : > { %3079 = vst.msk [vmem:[#allocation3 + $0x10] sm:$0xff] %vm1190_vm2, %v3063_v52  ;;  %v3064_v37 = vadd.f32 %v4763_v44, %v2770_v33  ;;  %2758 = vst.msk [vmem:[#allocation3 + $0x38] sm:$0xff] %vm1190_vm2, %v2742_v27  ;;  %v2768_v38 = vld [vmem:[#allocation3 + $0x8] sm:$0xff]  ;;  %v4767_v39 = vpop.f32.mrb[46].mxu0  ;;  %v2465_v3 = vld [vmem:[#allocation3 + $0x60] sm:$0xff] }
 0x15e   : > { %3077 = vst.msk [vmem:[#allocation3] sm:$0xff] %vm1190_vm2, %v3061_v32  ;;  %v3062_v40 = vadd.f32 %v3001_v16, %v2768_v38  ;;  %2756 = vst.msk [vmem:[#allocation3 + $0x28] sm:$0xff] %vm1190_vm2, %v2740_v34  ;;  %v3017_v41 = vpop.f32.mrb[47].mxu0  ;;  %v2468_v9 = vld [vmem:[#allocation3 + $0x78] sm:$0xff] }
 0x15f   : > { %3080 = vst.msk [vmem:[#allocation3 + $0x18] sm:$0xff] %vm1190_vm2, %v3064_v37  ;;  %v2466_v14 = vld [vmem:[#allocation3 + $0x68] sm:$0xff] }
 0x160   : > { %3078 = vst.msk [vmem:[#allocation3 + $0x8] sm:$0xff] %vm1190_vm2, %v3062_v40  ;;  %v4750_v43 = vpop.f32.mrb[48].mxu1 }
 0x161   : > { %v2745_v45 = vadd.f32 %v4750_v43, %v2463_v42  ;;  %v2704_v46 = vpop.f32.mrb[49].mxu1 }
 0x162   : > { %v2773_v47 = vld [vmem:[#allocation3 + $0x30] sm:$0xff]  ;;  %v2743_v48 = vadd.f32 %v2704_v46, %v2461_v28  ;;  %v4751_v50 = vpop.f32.mrb[50].mxu1 }
 0x163   : > { %v3067_v51 = vadd.f32 %v4766_v31, %v2773_v47  ;;  %2761 = vst.msk [vmem:[#allocation3 + $0x50] sm:$0xff] %vm1190_vm2, %v2745_v45  ;;  %v2771_v53 = vld [vmem:[#allocation3 + $0x20] sm:$0xff]  ;;  %v2746_v36 = vadd.f32 %v4751_v50, %v2464_v49  ;;  %v2707_v55 = vpop.f32.mrb[51].mxu1  ;;  %v4770_v56 = vpop.f32.mrb[48].mxu0 }
 0x164   : > { %v3065_v57 = vadd.f32 %v3014_v35, %v2771_v53  ;;  %2759 = vst.msk [vmem:[#allocation3 + $0x40] sm:$0xff] %vm1190_vm2, %v2743_v48  ;;  %v2774_v5 = vld [vmem:[#allocation3 + $0x38] sm:$0xff]  ;;  %v2744_v58 = vadd.f32 %v2707_v55, %v2462_v54  ;;  %v3030_v59 = vpop.f32.mrb[49].mxu0  ;;  %v3095_v25 = vld [vmem:[#allocation3 + $0x10] sm:$0xff] }
 0x165   : > { %3083 = vst.msk [vmem:[#allocation3 + $0x30] sm:$0xff] %vm1190_vm2, %v3067_v51  ;;  %v3068_v60 = vadd.f32 %v4767_v39, %v2774_v5  ;;  %2762 = vst.msk [vmem:[#allocation3 + $0x58] sm:$0xff] %vm1190_vm2, %v2746_v36  ;;  %v2772_v61 = vld [vmem:[#allocation3 + $0x28] sm:$0xff]  ;;  %v4771_v62 = vpop.f32.mrb[50].mxu0  ;;  %v3093_v27 = vld [vmem:[#allocation3] sm:$0xff] }
 0x166   : > { %3081 = vst.msk [vmem:[#allocation3 + $0x20] sm:$0xff] %vm1190_vm2, %v3065_v57  ;;  %v3066_v63 = vadd.f32 %v3017_v41, %v2772_v61  ;;  %2760 = vst.msk [vmem:[#allocation3 + $0x48] sm:$0xff] %vm1190_vm2, %v2744_v58  ;;  %v3033_v0 = vpop.f32.mrb[51].mxu0  ;;  %v3096_v32 = vld [vmem:[#allocation3 + $0x18] sm:$0xff] }
 0x167   : > { %3084 = vst.msk [vmem:[#allocation3 + $0x38] sm:$0xff] %vm1190_vm2, %v3068_v60  ;;  %v3094_v38 = vld [vmem:[#allocation3 + $0x8] sm:$0xff] }
 0x168   : > { %3082 = vst.msk [vmem:[#allocation3 + $0x28] sm:$0xff] %vm1190_vm2, %v3066_v63  ;;  %v4754_v2 = vpop.f32.mrb[52].mxu1 }
 0x169   : > { %v2749_v7 = vadd.f32 %v4754_v2, %v2467_v1  ;;  %v2720_v4 = vpop.f32.mrb[53].mxu1 }
 0x16a   : > { %v2777_v6 = vld [vmem:[#allocation3 + $0x50] sm:$0xff]  ;;  %v2747_v8 = vadd.f32 %v2720_v4, %v2465_v3  ;;  %v4755_v10 = vpop.f32.mrb[54].mxu1 }
 0x16b   : > { %v3071_v11 = vadd.f32 %v4770_v56, %v2777_v6  ;;  %2765 = vst.msk [vmem:[#allocation3 + $0x70] sm:$0xff] %vm1190_vm2, %v2749_v7  ;;  %v2775_v12 = vld [vmem:[#allocation3 + $0x40] sm:$0xff]  ;;  %v2750_v13 = vadd.f32 %v4755_v10, %v2468_v9  ;;  %v2723_v44 = vpop.f32.mrb[55].mxu1  ;;  %v4774_v15 = vpop.f32.mrb[52].mxu0 }
 0x16c   : > { %v3069_v16 = vadd.f32 %v3030_v59, %v2775_v12  ;;  %2763 = vst.msk [vmem:[#allocation3 + $0x60] sm:$0xff] %vm1190_vm2, %v2747_v8  ;;  %v2778_v17 = vld [vmem:[#allocation3 + $0x58] sm:$0xff]  ;;  %v2748_v18 = vadd.f32 %v2723_v44, %v2466_v14  ;;  %v3046_v19 = vpop.f32.mrb[53].mxu0  ;;  %v3099_v50 = vld [vmem:[#allocation3 + $0x30] sm:$0xff] }
 0x16d   : > { %3087 = vst.msk [vmem:[#allocation3 + $0x50] sm:$0xff] %vm1190_vm2, %v3071_v11  ;;  %v3072_v20 = vadd.f32 %v4771_v62, %v2778_v17  ;;  %2766 = vst.msk [vmem:[#allocation3 + $0x78] sm:$0xff] %vm1190_vm2, %v2750_v13  ;;  %v2776_v21 = vld [vmem:[#allocation3 + $0x48] sm:$0xff]  ;;  %v4775_v22 = vpop.f32.mrb[54].mxu0  ;;  %v3097_v36 = vld [vmem:[#allocation3 + $0x20] sm:$0xff] }
 0x16e   : > { %3085 = vst.msk [vmem:[#allocation3 + $0x40] sm:$0xff] %vm1190_vm2, %v3069_v16  ;;  %v3070_v23 = vadd.f32 %v3033_v0, %v2776_v21  ;;  %2764 = vst.msk [vmem:[#allocation3 + $0x68] sm:$0xff] %vm1190_vm2, %v2748_v18  ;;  %v3049_v24 = vpop.f32.mrb[55].mxu0  ;;  %v3100_v57 = vld [vmem:[#allocation3 + $0x38] sm:$0xff] }
 0x16f   : > { %3088 = vst.msk [vmem:[#allocation3 + $0x58] sm:$0xff] %vm1190_vm2, %v3072_v20  ;;  %v3098_v61 = vld [vmem:[#allocation3 + $0x28] sm:$0xff] }
 0x170   : > { %3086 = vst.msk [vmem:[#allocation3 + $0x48] sm:$0xff] %vm1190_vm2, %v3070_v23  ;;  %v4782_v52 = vpop.f32.mrb[56].mxu1 }
 0x171   : > { %v3305_v26 = vadd.f32 %v4782_v52, %v3095_v25  ;;  %v3240_v29 = vpop.f32.mrb[57].mxu1 }
 0x172   : > { %v2781_v30 = vld [vmem:[#allocation3 + $0x70] sm:$0xff]  ;;  %v3303_v31 = vadd.f32 %v3240_v29, %v3093_v27  ;;  %v4783_v33 = vpop.f32.mrb[58].mxu1 }
 0x173   : > { %v3075_v34 = vadd.f32 %v4774_v15, %v2781_v30  ;;  %v2779_v35 = vld [vmem:[#allocation3 + $0x60] sm:$0xff]  ;;  %3321 = vst.msk [vmem:[#allocation3 + $0x10] sm:$0xff] %vm1190_vm2, %v3305_v26  ;;  %v3306_v37 = vadd.f32 %v4783_v33, %v3096_v32  ;;  %v3243_v39 = vpop.f32.mrb[59].mxu1  ;;  %v4802_v40 = vpop.f32.mrb[56].mxu0 }
 0x174   : > { %v3073_v41 = vadd.f32 %v3046_v19, %v2779_v35  ;;  %v2782_v42 = vld [vmem:[#allocation3 + $0x78] sm:$0xff]  ;;  %3319 = vst.msk [vmem:[#allocation3] sm:$0xff] %vm1190_vm2, %v3303_v31  ;;  %v3304_v43 = vadd.f32 %v3243_v39, %v3094_v38  ;;  %v3554_v45 = vpop.f32.mrb[57].mxu0  ;;  %v3103_v10 = vld [vmem:[#allocation3 + $0x50] sm:$0xff] }
 0x175   : > { %3091 = vst.msk [vmem:[#allocation3 + $0x70] sm:$0xff] %vm1190_vm2, %v3075_v34  ;;  %v3076_v28 = vadd.f32 %v4775_v22, %v2782_v42  ;;  %v2780_v46 = vld [vmem:[#allocation3 + $0x68] sm:$0xff]  ;;  %3322 = vst.msk [vmem:[#allocation3 + $0x18] sm:$0xff] %vm1190_vm2, %v3306_v37  ;;  %v4803_v47 = vpop.f32.mrb[58].mxu0  ;;  %v3101_v13 = vld [vmem:[#allocation3 + $0x40] sm:$0xff] }
 0x176   : > { %3089 = vst.msk [vmem:[#allocation3 + $0x60] sm:$0xff] %vm1190_vm2, %v3073_v41  ;;  %v3074_v48 = vadd.f32 %v3049_v24, %v2780_v46  ;;  %3320 = vst.msk [vmem:[#allocation3 + $0x8] sm:$0xff] %vm1190_vm2, %v3304_v43  ;;  %v3557_v49 = vpop.f32.mrb[59].mxu0  ;;  %v3104_v16 = vld [vmem:[#allocation3 + $0x58] sm:$0xff] }
 0x177   : > { %3092 = vst.msk [vmem:[#allocation3 + $0x78] sm:$0xff] %vm1190_vm2, %v3076_v28  ;;  %v3102_v21 = vld [vmem:[#allocation3 + $0x48] sm:$0xff] }
 0x178   : > { %3090 = vst.msk [vmem:[#allocation3 + $0x68] sm:$0xff] %vm1190_vm2, %v3074_v48  ;;  %v4786_v51 = vpop.f32.mrb[60].mxu1 }
 0x179   : > { %v3309_v53 = vadd.f32 %v4786_v51, %v3099_v50  ;;  %v3256_v54 = vpop.f32.mrb[61].mxu1 }
 0x17a   : > { %v3337_v55 = vld [vmem:[#allocation3 + $0x10] sm:$0xff]  ;;  %v3307_v56 = vadd.f32 %v3256_v54, %v3097_v36  ;;  %v4787_v5 = vpop.f32.mrb[62].mxu1 }
 0x17b   : > { %v3619_v58 = vadd.f32 %v4802_v40, %v3337_v55  ;;  %3325 = vst.msk [vmem:[#allocation3 + $0x30] sm:$0xff] %vm1190_vm2, %v3309_v53  ;;  %v3335_v59 = vld [vmem:[#allocation3] sm:$0xff]  ;;  %v3310_v60 = vadd.f32 %v4787_v5, %v3100_v57  ;;  %v3259_v62 = vpop.f32.mrb[63].mxu1  ;;  %v4806_v63 = vpop.f32.mrb[60].mxu0 }
 0x17c   : > { %v3617_v0 = vadd.f32 %v3554_v45, %v3335_v59  ;;  %3323 = vst.msk [vmem:[#allocation3 + $0x20] sm:$0xff] %vm1190_vm2, %v3307_v56  ;;  %v3338_v1 = vld [vmem:[#allocation3 + $0x18] sm:$0xff]  ;;  %v3308_v2 = vadd.f32 %v3259_v62, %v3098_v61  ;;  %v3570_v7 = vpop.f32.mrb[61].mxu0  ;;  %v3107_v42 = vld [vmem:[#allocation3 + $0x70] sm:$0xff] }
 0x17d   : > { %3635 = vst.msk [vmem:[#allocation3 + $0x10] sm:$0xff] %vm1190_vm2, %v3619_v58  ;;  %v3620_v3 = vadd.f32 %v4803_v47, %v3338_v1  ;;  %3326 = vst.msk [vmem:[#allocation3 + $0x38] sm:$0xff] %vm1190_vm2, %v3310_v60  ;;  %v3336_v4 = vld [vmem:[#allocation3 + $0x8] sm:$0xff]  ;;  %v4807_v6 = vpop.f32.mrb[62].mxu0  ;;  %v3105_v28 = vld [vmem:[#allocation3 + $0x60] sm:$0xff] }
 0x17e   : > { %3633 = vst.msk [vmem:[#allocation3] sm:$0xff] %vm1190_vm2, %v3617_v0  ;;  %v3618_v8 = vadd.f32 %v3557_v49, %v3336_v4  ;;  %3324 = vst.msk [vmem:[#allocation3 + $0x28] sm:$0xff] %vm1190_vm2, %v3308_v2  ;;  %v3573_v9 = vpop.f32.mrb[63].mxu0  ;;  %v3108_v49 = vld [vmem:[#allocation3 + $0x78] sm:$0xff] }
 0x17f   : > { %3636 = vst.msk [vmem:[#allocation3 + $0x18] sm:$0xff] %vm1190_vm2, %v3620_v3  ;;  %v3106_v54 = vld [vmem:[#allocation3 + $0x68] sm:$0xff] }
 0x180   : > { %3634 = vst.msk [vmem:[#allocation3 + $0x8] sm:$0xff] %vm1190_vm2, %v3618_v8  ;;  %v4790_v11 = vpop.f32.mrb[64].mxu1 }
 0x181   : > { %v3313_v12 = vadd.f32 %v4790_v11, %v3103_v10  ;;  %v3272_v14 = vpop.f32.mrb[65].mxu1 }
 0x182   : > { %v3341_v44 = vld [vmem:[#allocation3 + $0x30] sm:$0xff]  ;;  %v3311_v15 = vadd.f32 %v3272_v14, %v3101_v13  ;;  %v4791_v17 = vpop.f32.mrb[66].mxu1 }
 0x183   : > { %v3623_v18 = vadd.f32 %v4806_v63, %v3341_v44  ;;  %3329 = vst.msk [vmem:[#allocation3 + $0x50] sm:$0xff] %vm1190_vm2, %v3313_v12  ;;  %v3339_v19 = vld [vmem:[#allocation3 + $0x20] sm:$0xff]  ;;  %v3314_v20 = vadd.f32 %v4791_v17, %v3104_v16  ;;  %v3275_v22 = vpop.f32.mrb[67].mxu1  ;;  %v4810_v23 = vpop.f32.mrb[64].mxu0 }
 0x184   : > { %v3651_v24 = vld [vmem:[#allocation3 + $0x10] sm:$0xff]  ;;  %v3621_v25 = vadd.f32 %v3570_v7, %v3339_v19  ;;  %3327 = vst.msk [vmem:[#allocation3 + $0x40] sm:$0xff] %vm1190_vm2, %v3311_v15  ;;  %v3342_v52 = vld [vmem:[#allocation3 + $0x38] sm:$0xff]  ;;  %v3312_v26 = vadd.f32 %v3275_v22, %v3102_v21  ;;  %v3586_v27 = vpop.f32.mrb[65].mxu0 }
 0x185   : > { %v4532_v29 = vpack.c.bf16 %v3651_v24, %v3651_v24  ;;  %v3649_v30 = vld [vmem:[#allocation3] sm:$0xff]  ;;  %3639 = vst.msk [vmem:[#allocation3 + $0x30] sm:$0xff] %vm1190_vm2, %v3623_v18  ;;  %v3624_v31 = vadd.f32 %v4807_v6, %v3342_v52  ;;  %3330 = vst.msk [vmem:[#allocation3 + $0x58] sm:$0xff] %vm1190_vm2, %v3314_v20  ;;  %v3340_v32 = vld [vmem:[#allocation3 + $0x28] sm:$0xff]  ;;  %v4811_v33 = vpop.f32.mrb[66].mxu0  ;;  %v4030_v57 = vmul.f32 %v3651_v24, %v3651_v24  ;;  %v3992_v63 = vsel %vm1190_vm2, %v3651_v24, 0.0 }
 0x186   : > { %v4530_v34 = vpack.c.bf16 %v3649_v30, %v3649_v30  ;;  %v3652_v35 = vld [vmem:[#allocation3 + $0x18] sm:$0xff]  ;;  %3637 = vst.msk [vmem:[#allocation3 + $0x20] sm:$0xff] %vm1190_vm2, %v3621_v25  ;;  %v3622_v37 = vadd.f32 %v3573_v9, %v3340_v32  ;;  %3328 = vst.msk [vmem:[#allocation3 + $0x48] sm:$0xff] %vm1190_vm2, %v3312_v26  ;;  %v3589_v38 = vpop.f32.mrb[67].mxu0  ;;  %v4028_v5 = vmul.f32 %v3649_v30, %v3649_v30  ;;  %v3989_v4 = vsel %vm1190_vm2, %v3649_v30, 0.0 }
 0x187   : > { %3731 = vst.msk [vmem:[%s5385_s22 + $0x8] sm:$0xf] %vm1009_vm0, %v4532_v29  ;;  %v4533_v39 = vpack.c.bf16 %v3652_v35, %v3652_v35  ;;  %v3650_v40 = vld [vmem:[#allocation3 + $0x8] sm:$0xff]  ;;  %v4047_v14 = vsel %vm1190_vm2, %v4030_v57, 0.0  ;;  %v3993_v17 = vadd.f32 %v3992_v63, %v3989_v4 }
 0x188   : > { %3640 = vst.msk [vmem:[#allocation3 + $0x38] sm:$0xff] %vm1190_vm2, %v3624_v31  ;;  %v4531_v41 = vpack.c.bf16 %v3650_v40, %v3650_v40  ;;  %3638 = vst.msk [vmem:[#allocation3 + $0x28] sm:$0xff] %vm1190_vm2, %v3622_v37  ;;  %v4794_v43 = vpop.f32.mrb[68].mxu1  ;;  %v4044_v44 = vsel %vm1190_vm2, %v4028_v5, 0.0 }
 0x189   : > { %3729 = vst.msk [vmem:[%s5385_s22] sm:$0xf] %vm1009_vm0, %v4530_v34  ;;  %3732 = vst.msk [vmem:[%s5385_s22 + $0xc] sm:$0xf] %vm1009_vm0, %v4533_v39  ;;  %v3317_v45 = vadd.f32 %v4794_v43, %v3107_v42  ;;  %v3288_v46 = vpop.f32.mrb[69].mxu1  ;;  %v4048_v20 = vadd.f32 %v4047_v14, %v4044_v44 }
 0x18a   : > { %3730 = vst.msk [vmem:[%s5385_s22 + $0x4] sm:$0xf] %vm1009_vm0, %v4531_v41  ;;  %v3345_v47 = vld [vmem:[#allocation3 + $0x50] sm:$0xff]  ;;  %v3315_v48 = vadd.f32 %v3288_v46, %v3105_v28  ;;  %v4795_v50 = vpop.f32.mrb[70].mxu1 }
 0x18b   : > { %v3627_v51 = vadd.f32 %v4810_v23, %v3345_v47  ;;  %3333 = vst.msk [vmem:[#allocation3 + $0x70] sm:$0xff] %vm1190_vm2, %v3317_v45  ;;  %v3343_v53 = vld [vmem:[#allocation3 + $0x40] sm:$0xff]  ;;  %v3318_v36 = vadd.f32 %v4795_v50, %v3108_v49  ;;  %v3291_v55 = vpop.f32.mrb[71].mxu1  ;;  %v4814_v56 = vpop.f32.mrb[68].mxu0 }
 0x18c   : > { %v3655_v58 = vld [vmem:[#allocation3 + $0x30] sm:$0xff]  ;;  %v3625_v59 = vadd.f32 %v3586_v27, %v3343_v53  ;;  %3331 = vst.msk [vmem:[#allocation3 + $0x60] sm:$0xff] %vm1190_vm2, %v3315_v48  ;;  %v3346_v60 = vld [vmem:[#allocation3 + $0x58] sm:$0xff]  ;;  %v3316_v61 = vadd.f32 %v3291_v55, %v3106_v54  ;;  %v3602_v62 = vpop.f32.mrb[69].mxu0 }
 0x18d   : > { %v4536_v0 = vpack.c.bf16 %v3655_v58, %v3655_v58  ;;  %v3653_v1 = vld [vmem:[#allocation3 + $0x20] sm:$0xff]  ;;  %3643 = vst.msk [vmem:[#allocation3 + $0x50] sm:$0xff] %vm1190_vm2, %v3627_v51  ;;  %v3628_v2 = vadd.f32 %v4811_v33, %v3346_v60  ;;  %3334 = vst.msk [vmem:[#allocation3 + $0x78] sm:$0xff] %vm1190_vm2, %v3318_v36  ;;  %v3344_v7 = vld [vmem:[#allocation3 + $0x48] sm:$0xff]  ;;  %v4815_v3 = vpop.f32.mrb[70].mxu0  ;;  %v4034_v24 = vmul.f32 %v3655_v58, %v3655_v58  ;;  %v4000_v27 = vsel %vm1190_vm2, %v3655_v58, 0.0 }
 0x18e   : > { %v4534_v6 = vpack.c.bf16 %v3653_v1, %v3653_v1  ;;  %v4032_v8 = vmul.f32 %v3653_v1, %v3653_v1  ;;  %3641 = vst.msk [vmem:[#allocation3 + $0x40] sm:$0xff] %vm1190_vm2, %v3625_v59  ;;  %v3626_v10 = vadd.f32 %v3589_v38, %v3344_v7  ;;  %3332 = vst.msk [vmem:[#allocation3 + $0x68] sm:$0xff] %vm1190_vm2, %v3316_v61  ;;  %v3605_v11 = vpop.f32.mrb[71].mxu0  ;;  %v3996_v15 = vsel %vm1190_vm2, %v3653_v1, 0.0 }
 0x18f   : > { %v3656_v9 = vld [vmem:[#allocation3 + $0x38] sm:$0xff]  ;;  %3735 = vst.msk [vmem:[%s5385_s22 + $0x18] sm:$0xf] %vm1009_vm0, %v4536_v0  ;;  %v3654_v13 = vld [vmem:[#allocation3 + $0x28] sm:$0xff]  ;;  %v3997_v21 = vadd.f32 %v3996_v15, %v3993_v17  ;;  %v4055_v43 = vsel %vm1190_vm2, %v4034_v24, 0.0 }
 0x190   : > { %v4537_v12 = vpack.c.bf16 %v3656_v9, %v3656_v9  ;;  %3644 = vst.msk [vmem:[#allocation3 + $0x58] sm:$0xff] %vm1190_vm2, %v3628_v2  ;;  %v4535_v16 = vpack.c.bf16 %v3654_v13, %v3654_v13  ;;  %3642 = vst.msk [vmem:[#allocation3 + $0x48] sm:$0xff] %vm1190_vm2, %v3626_v10  ;;  %v4051_v18 = vsel %vm1190_vm2, %v4032_v8, 0.0 }
 0x191   : > { %3733 = vst.msk [vmem:[%s5385_s22 + $0x10] sm:$0xf] %vm1009_vm0, %v4534_v6  ;;  %v4052_v29 = vadd.f32 %v4051_v18, %v4048_v20  ;;  %v4001_v40 = vadd.f32 %v4000_v27, %v3997_v21 }
 0x192   : > { %3736 = vst.msk [vmem:[%s5385_s22 + $0x1c] sm:$0xf] %vm1009_vm0, %v4537_v12  ;;  %3734 = vst.msk [vmem:[%s5385_s22 + $0x14] sm:$0xf] %vm1009_vm0, %v4535_v16  ;;  %v3349_v19 = vld [vmem:[#allocation3 + $0x70] sm:$0xff] }
 0x193   : > { %v3631_v22 = vadd.f32 %v4814_v56, %v3349_v19  ;;  %v3347_v23 = vld [vmem:[#allocation3 + $0x60] sm:$0xff]  ;;  %v4056_v48 = vadd.f32 %v4055_v43, %v4052_v29 }
 0x194   : > { %v3659_v25 = vld [vmem:[#allocation3 + $0x50] sm:$0xff]  ;;  %v3629_v52 = vadd.f32 %v3602_v62, %v3347_v23  ;;  %v3350_v26 = vld [vmem:[#allocation3 + $0x78] sm:$0xff] }
 0x195   : > { %v4540_v30 = vpack.c.bf16 %v3659_v25, %v3659_v25  ;;  %v3657_v31 = vld [vmem:[#allocation3 + $0x40] sm:$0xff]  ;;  %3647 = vst.msk [vmem:[#allocation3 + $0x70] sm:$0xff] %vm1190_vm2, %v3631_v22  ;;  %v3632_v32 = vadd.f32 %v4815_v3, %v3350_v26  ;;  %v3348_v33 = vld [vmem:[#allocation3 + $0x68] sm:$0xff]  ;;  %v4038_v46 = vmul.f32 %v3659_v25, %v3659_v25  ;;  %v4008_v50 = vsel %vm1190_vm2, %v3659_v25, 0.0 }
 0x196   : > { %v4538_v34 = vpack.c.bf16 %v3657_v31, %v3657_v31  ;;  %v4004_v35 = vsel %vm1190_vm2, %v3657_v31, 0.0  ;;  %v4036_v37 = vmul.f32 %v3657_v31, %v3657_v31  ;;  %3645 = vst.msk [vmem:[#allocation3 + $0x60] sm:$0xff] %vm1190_vm2, %v3629_v52  ;;  %v3630_v39 = vadd.f32 %v3605_v11, %v3348_v33 }
 0x197   : > { %v3660_v38 = vld [vmem:[#allocation3 + $0x58] sm:$0xff]  ;;  %3739 = vst.msk [vmem:[%s5385_s22 + $0x28] sm:$0xf] %vm1009_vm0, %v4540_v30  ;;  %v3658_v42 = vld [vmem:[#allocation3 + $0x48] sm:$0xff]  ;;  %v4005_v47 = vadd.f32 %v4004_v35, %v4001_v40  ;;  %v4063_v53 = vsel %vm1190_vm2, %v4038_v46, 0.0 }
 0x198   : > { %v4541_v41 = vpack.c.bf16 %v3660_v38, %v3660_v38  ;;  %3648 = vst.msk [vmem:[#allocation3 + $0x78] sm:$0xff] %vm1190_vm2, %v3632_v32  ;;  %v4059_v45 = vsel %vm1190_vm2, %v4036_v37, 0.0  ;;  %v4539_v28 = vpack.c.bf16 %v3658_v42, %v3658_v42  ;;  %3646 = vst.msk [vmem:[#allocation3 + $0x68] sm:$0xff] %vm1190_vm2, %v3630_v39 }
 0x199   : > { %3737 = vst.msk [vmem:[%s5385_s22 + $0x20] sm:$0xf] %vm1009_vm0, %v4538_v34  ;;  %v4060_v49 = vadd.f32 %v4059_v45, %v4056_v48  ;;  %v4009_v55 = vadd.f32 %v4008_v50, %v4005_v47 }
 0x19a   : > { %3740 = vst.msk [vmem:[%s5385_s22 + $0x2c] sm:$0xf] %vm1009_vm0, %v4541_v41  ;;  %3738 = vst.msk [vmem:[%s5385_s22 + $0x24] sm:$0xf] %vm1009_vm0, %v4539_v28 }
 0x19b   : > { %v4064_v61 = vadd.f32 %v4063_v53, %v4060_v49 }
 0x19c   : > { %v3663_v51 = vld [vmem:[#allocation3 + $0x70] sm:$0xff] }
 0x19d   : > { %v4544_v36 = vpack.c.bf16 %v3663_v51, %v3663_v51  ;;  %v3661_v54 = vld [vmem:[#allocation3 + $0x60] sm:$0xff]  ;;  %v4042_v56 = vmul.f32 %v3663_v51, %v3663_v51  ;;  %v4016_v0 = vsel %vm1190_vm2, %v3663_v51, 0.0 }
 0x19e   : > { %v4542_v57 = vpack.c.bf16 %v3661_v54, %v3661_v54  ;;  %v4012_v5 = vsel %vm1190_vm2, %v3661_v54, 0.0  ;;  %v4040_v58 = vmul.f32 %v3661_v54, %v3661_v54 }
 0x19f   : > { %v3664_v59 = vld [vmem:[#allocation3 + $0x78] sm:$0xff]  ;;  %3743 = vst.msk [vmem:[%s5385_s22 + $0x38] sm:$0xf] %vm1009_vm0, %v4544_v36  ;;  %v4013_v60 = vadd.f32 %v4012_v5, %v4009_v55  ;;  %v3662_v63 = vld [vmem:[#allocation3 + $0x68] sm:$0xff]  ;;  %v4071_v4 = vsel %vm1190_vm2, %v4042_v56, 0.0 }
 0x1a0   : > { %v4545_v62 = vpack.c.bf16 %v3664_v59, %v3664_v59  ;;  %3741 = vst.msk [vmem:[%s5385_s22 + $0x30] sm:$0xf] %vm1009_vm0, %v4542_v57  ;;  %v4067_v1 = vsel %vm1190_vm2, %v4040_v58, 0.0  ;;  %v4543_v2 = vpack.c.bf16 %v3662_v63, %v3662_v63 }
 0x1a1   : > { %v4017_v7 = vadd.f32 %v4016_v0, %v4013_v60  ;;  %v4068_v3 = vadd.f32 %v4067_v1, %v4064_v61 }
 0x1a2   : > { %3744 = vst.msk [vmem:[%s5385_s22 + $0x3c] sm:$0xf] %vm1009_vm0, %v4545_v62  ;;  %3742 = vst.msk [vmem:[%s5385_s22 + $0x34] sm:$0xf] %vm1009_vm0, %v4543_v2 }
 0x1a3   : > { %v4020_v6 = vrot.slane %v4017_v7, 4  ;;  %v4072_v8 = vadd.f32 %v4071_v4, %v4068_v3 }
 0x1a5   : > { %v4021_v9 = vadd.f32 %v4020_v6, %v4017_v7  ;;  %v4075_v10 = vrot.slane %v4072_v8, 4 }
 0x1a7   : > { %v4022_v11 = vrot.slane %v4021_v9, 2  ;;  %v4076_v12 = vadd.f32 %v4075_v10, %v4072_v8 }
 0x1a9   : > { %v4023_v13 = vadd.f32 %v4022_v11, %v4021_v9  ;;  %v4077_v14 = vrot.slane %v4076_v12, 2 }
 0x1ab   : > { %v4024_v44 = vrot.slane %v4023_v13, 1  ;;  %v4078_v15 = vadd.f32 %v4077_v14, %v4076_v12 }
 0x1ad   : > { %v4025_v16 = vadd.f32 %v4024_v44, %v4023_v13  ;;  %v4079_v17 = vrot.slane %v4078_v15, 1 }
 0x1af   : > { %4027 = vst.msk [vmem:[%s284_s26] sm:$0x1] %vm4026_vm4, %v4025_v16  ;;  %v4080_v18 = vadd.f32 %v4079_v17, %v4078_v15 }
 0x1b1   : > { %4081 = vst.msk [vmem:[%s284_s26 + $0x1] sm:$0x1] %vm4026_vm4, %v4080_v18 }
 0x1b2 PF: > { %s15_s17 = sadd.s32 1, %s4964_s17   ;;  %s5472_s15 = smov %s4960_s16 }
 0x1b3   : > { %p12_p5 = scmp.ge.s32.totalorder %s15_s17, 4   ;;  %s5473_s16 = smov %s5475_s18 }
 0x1b5   :  { %14 = sbr.rel (!%p12_p5) target bundleno = 2 (0x2), region = 88 }

</bundles_post_ra>
